<compile_context>
chip_gen: v5e
topology: v5e:2x2
jax: 0.10.0
libtpu: 0.0.40
codegen_flags: <defaults>
</compile_context>

<pallas_src>
import jax
import jax.numpy as jnp
import numpy as np
from jax.experimental import pallas as pl
from jax.experimental.pallas import tpu as pltpu

_MAX_BLOCK = 256   # images per grid step (multiple of 8)


# ------------------------------- Pallas kernel ------------------------------ #

def _encoder_fused_kernel(xp_ref, w1e_ref, b1e_ref, w2e_ref, b2e_ref, o_ref):
  # ---- stage 1: conv1 (3x3, stride 3, pad 1) + 2x2 max-pool + bias + ReLU ----
  # One MXU matmul evaluates conv1 at all 4 positions of every 2x2 pool window:
  # lane = q*512 + ph*80 + pw*16 + c, with q = 2*dr + dc the pool-tap offset.
  c = jnp.dot(xp_ref[...], w1e_ref[...],
              preferred_element_type=jnp.float32)                   # (B, 2048)
  m = jnp.maximum(jnp.maximum(c[:, 0:512], c[:, 512:1024]),
                  jnp.maximum(c[:, 1024:1536], c[:, 1536:2048]))     # (B, 512)
  # Per-channel bias commutes with max-pool: max(conv) + b == max(conv + b).
  y1 = jnp.maximum(m + b1e_ref[...], 0.0)                            # (B, 512)

  # ---- stage 2: conv2 (3x3, stride 2, pad 1) + identity pool + bias + ReLU ---
  # im2col selection (incl. zero padding) is folded into w2e on the host, so
  # this is a single matmul; output lane = oh*24 + ow*8 + co (lanes 72..127
  # are zero weight / zero bias -> zero).
  y2 = jnp.dot(y1, w2e_ref[...], preferred_element_type=jnp.float32)  # (B, 128)
  o_ref[...] = jnp.maximum(y2 + b2e_ref[...], 0.0)


def _encoder_pallas_call(xp_pad, w1e, b1e, w2e, b2e, bb):
  n_pad = xp_pad.shape[0]
  grid = (n_pad // bb,)
  flops = n_pad * 2 * (784 * 2048 + 512 * 128)
  bytes_accessed = 4 * (xp_pad.size + w1e.size + b1e.size + w2e.size
                        + b2e.size + n_pad * 128)
  return pl.pallas_call(
      _encoder_fused_kernel,
      out_shape=jax.ShapeDtypeStruct((n_pad, 128), jnp.float32),
      grid=grid,
      in_specs=[
          pl.BlockSpec((bb, 784), lambda i: (i, 0)),      # B flattened images
          pl.BlockSpec((784, 2048), lambda i: (0, 0)),    # expanded conv1 weights
          pl.BlockSpec((1, 512), lambda i: (0, 0)),       # conv1 bias, tiled per (ph,pw)
          pl.BlockSpec((512, 128), lambda i: (0, 0)),     # expanded conv2 weights
          pl.BlockSpec((1, 128), lambda i: (0, 0)),       # conv2 bias, tiled per (oh,ow)
      ],
      out_specs=pl.BlockSpec((bb, 128), lambda i: (i, 0)),  # lane-dense output
      compiler_params=pltpu.CompilerParams(
          dimension_semantics=("parallel",),
          vmem_limit_bytes=40 * 1024 * 1024),
      cost_estimate=pl.CostEstimate(flops=int(flops), transcendentals=0,
                                    bytes_accessed=int(bytes_accessed)),
  )(xp_pad, w1e, b1e, w2e, b2e)


# ------------------- one-time host-side weight expansion --------------------- #

def prepare_encoder_params(w1, b1, w2, b2):
  """Fold conv1+pool-taps and conv2 im2col into dense matmul operands (NumPy, once)."""
  w1 = np.asarray(w1, np.float32)   # (16, 1, 3, 3) OIHW
  b1 = np.asarray(b1, np.float32)   # (16,)
  w2 = np.asarray(w2, np.float32)   # (8, 16, 3, 3) OIHW
  b2 = np.asarray(b2, np.float32)   # (8,)

  # conv1: input row index k = r*28 + cc (raw pixel); zero padding handled by
  # simply dropping out-of-range taps.  Output lane = q*512 + ph*80 + pw*16 + c.
  w1e = np.zeros((784, 2048), np.float32)
  for dr in range(2):
    for dc in range(2):
      q = 2 * dr + dc
      for ph in range(5):
        for pw in range(5):
          col0 = q * 512 + ph * 80 + pw * 16
          for kh in range(3):
            for kw in range(3):
              r = 3 * (2 * ph + dr) + kh - 1     # padded row - 1
              cc = 3 * (2 * pw + dc) + kw - 1    # padded col - 1
              if 0 <= r < 28 and 0 <= cc < 28:
                w1e[r * 28 + cc, col0:col0 + 16] = w1[:, 0, kh, kw]
  b1e = np.zeros((1, 512), np.float32)
  for ph in range(5):
    for pw in range(5):
      b1e[0, ph * 80 + pw * 16: ph * 80 + pw * 16 + 16] = b1

  # conv2: y1 lane = ph*80 + pw*16 + ci ; output lane = oh*24 + ow*8 + co.
  w2e = np.zeros((512, 128), np.float32)
  for oh in range(3):
    for ow in range(3):
      col0 = oh * 24 + ow * 8
      for kh in range(3):
        for kw in range(3):
          ph = 2 * oh + kh - 1
          pw = 2 * ow + kw - 1
          if 0 <= ph < 5 and 0 <= pw < 5:
            for ci in range(16):
              w2e[ph * 80 + pw * 16 + ci, col0:col0 + 8] = w2[:, ci, kh, kw]
  b2e = np.zeros((1, 128), np.float32)
  for oh in range(3):
    for ow in range(3):
      b2e[0, oh * 24 + ow * 8: oh * 24 + ow * 8 + 8] = b2

  return (jnp.asarray(w1e), jnp.asarray(b1e), jnp.asarray(w2e), jnp.asarray(b2e))


# ------------------------------ JAX wrapper --------------------------------- #

@jax.jit
def encoder_forward(x_nchw, w1e, b1e, w2e, b2e):
  n, cin, h, w = x_nchw.shape
  assert (cin, h, w) == (1, 28, 28), "kernel is specialized to 1x28x28 inputs"

  xp = x_nchw.reshape(n, 28 * 28)                     # one lane-dense row / image
  if n <= _MAX_BLOCK:
    bb, n_pad = n, n
  else:
    bb = _MAX_BLOCK
    n_pad = -(-n // bb) * bb
  if n_pad != n:
    xp = jnp.pad(xp, ((0, n_pad - n), (0, 0)))

  y2 = _encoder_pallas_call(xp, w1e, b1e, w2e, b2e, bb)   # (n_pad, 128)
  y2 = y2[:n, :72].reshape(n, 3, 3, 8)                    # (oh, ow, co)
  return jnp.transpose(y2, (0, 3, 1, 2))                  # (N, 8, 3, 3)


# --------------------------- pure-JAX reference ------------------------------ #

def encoder_reference(x_nchw, w1, b1, w2, b2):
  y = jax.lax.conv_general_dilated(
      x_nchw, w1, window_strides=(3, 3), padding=((1, 1), (1, 1)),
      dimension_numbers=("NCHW", "OIHW", "NCHW")) + b1.reshape(1, -1, 1, 1)
  y = jax.lax.reduce_window(y, -jnp.inf, jax.lax.max,
                            (1, 1, 2, 2), (1, 1, 2, 2), "VALID")
  y = jnp.maximum(y, 0.0)
  y = jax.lax.conv_general_dilated(
      y, w2, window_strides=(2, 2), padding=((1, 1), (1, 1)),
      dimension_numbers=("NCHW", "OIHW", "NCHW")) + b2.reshape(1, -1, 1, 1)
  return jnp.maximum(y, 0.0)            # maxpool(kernel=1) == identity


# --------------------------------- main -------------------------------------- #

if __name__ == "__main__":
  key = jax.random.PRNGKey(0)
  kx, k1, k2, k3, k4 = jax.random.split(key, 5)

  # Deterministic synthetic parameters (PyTorch shapes: OIHW weights, 1-D bias).
  w1 = jax.random.normal(k1, (16, 1, 3, 3), jnp.float32) * 0.2
  b1 = jax.random.normal(k2, (16,), jnp.float32) * 0.1
  w2 = jax.random.normal(k3, (8, 16, 3, 3), jnp.float32) * 0.1
  b2 = jax.random.normal(k4, (8,), jnp.float32) * 0.1

  # MNIST-like input, NCHW: (batch=2, channels=1, 28, 28).
  x = jax.random.normal(kx, (2, 1, 28, 28), jnp.float32)

  # One-time host-side weight expansion (outside the jitted forward).
  params = prepare_encoder_params(w1, b1, w2, b2)

  out = jax.block_until_ready(encoder_forward(x, *params))
  assert out.shape == (2, 8, 3, 3), out.shape

  ref = jax.block_until_ready(encoder_reference(x, w1, b1, w2, b2))
  np.testing.assert_allclose(np.asarray(out), np.asarray(ref), rtol=1e-4, atol=1e-4)

  print("KERNEL_OK")
</pallas_src>

<mosaic_0001>
module attributes {stable_mosaic.version = 11 : i64} {
  func.func @_encoder_fused_kernel(%arg0: i32, %arg1: memref<2x784xf32, #tpu.memory_space<vmem>>, %arg2: memref<784x2048xf32, #tpu.memory_space<vmem>>, %arg3: memref<1x512xf32, #tpu.memory_space<vmem>>, %arg4: memref<512x128xf32, #tpu.memory_space<vmem>>, %arg5: memref<1x128xf32, #tpu.memory_space<vmem>>, %arg6: memref<2x128xf32, #tpu.memory_space<vmem>>) attributes {dimension_semantics = [#tpu.dimension_semantics<parallel>], iteration_bounds = array<i64: 1>, scalar_prefetch = 0 : i64, scratch_operands = 0 : i64, tpu.core_type = #tpu.core_type<tc>, window_params = [{transform_indices = @transform_0, window_bounds = array<i64: 2, 784>}, {pipeline_mode = #tpu.pipeline_mode<synchronous>, transform_indices = @transform_1, window_bounds = array<i64: 784, 2048>}, {pipeline_mode = #tpu.pipeline_mode<synchronous>, transform_indices = @transform_2, window_bounds = array<i64: 1, 512>}, {pipeline_mode = #tpu.pipeline_mode<synchronous>, transform_indices = @transform_3, window_bounds = array<i64: 512, 128>}, {pipeline_mode = #tpu.pipeline_mode<synchronous>, transform_indices = @transform_4, window_bounds = array<i64: 1, 128>}, {transform_indices = @transform_5, window_bounds = array<i64: 2, 128>}]} {
    %c0 = arith.constant 0 : index
    %c0_0 = arith.constant 0 : index
    %0 = vector.load %arg1[%c0, %c0_0] : memref<2x784xf32, #tpu.memory_space<vmem>>, vector<2x784xf32>
    %c0_1 = arith.constant 0 : index
    %c0_2 = arith.constant 0 : index
    %1 = vector.load %arg2[%c0_1, %c0_2] : memref<784x2048xf32, #tpu.memory_space<vmem>>, vector<784x2048xf32>
    %cst = arith.constant dense<0.000000e+00> : vector<2x2048xf32>
    %2 = tpu.matmul %0, %1, %cst {dimension_numbers = #tpu.dot_dimension_numbers<[1], [0], [0], [1], [0, 0, 1, 1], [], []>} : vector<2x784xf32>, vector<784x2048xf32>, vector<2x2048xf32> -> vector<2x2048xf32>
    %3 = vector.extract_strided_slice %2 {offsets = [0, 0], sizes = [2, 512], strides = [1, 1]} : vector<2x2048xf32> to vector<2x512xf32>
    %4 = vector.extract_strided_slice %2 {offsets = [0, 512], sizes = [2, 512], strides = [1, 1]} : vector<2x2048xf32> to vector<2x512xf32>
    %5 = arith.maximumf %3, %4 : vector<2x512xf32>
    %6 = vector.extract_strided_slice %2 {offsets = [0, 1024], sizes = [2, 512], strides = [1, 1]} : vector<2x2048xf32> to vector<2x512xf32>
    %7 = vector.extract_strided_slice %2 {offsets = [0, 1536], sizes = [2, 512], strides = [1, 1]} : vector<2x2048xf32> to vector<2x512xf32>
    %8 = arith.maximumf %6, %7 : vector<2x512xf32>
    %9 = arith.maximumf %5, %8 : vector<2x512xf32>
    %c0_3 = arith.constant 0 : index
    %c0_4 = arith.constant 0 : index
    %10 = vector.load %arg3[%c0_3, %c0_4] : memref<1x512xf32, #tpu.memory_space<vmem>>, vector<1x512xf32>
    %11 = vector.broadcast %10 : vector<1x512xf32> to vector<2x512xf32>
    %12 = arith.addf %9, %11 : vector<2x512xf32>
    %cst_5 = arith.constant 0.000000e+00 : f32
    %13 = vector.broadcast %cst_5 : f32 to vector<2x512xf32>
    %14 = arith.maximumf %12, %13 : vector<2x512xf32>
    %c0_6 = arith.constant 0 : index
    %c0_7 = arith.constant 0 : index
    %15 = vector.load %arg4[%c0_6, %c0_7] : memref<512x128xf32, #tpu.memory_space<vmem>>, vector<512x128xf32>
    %cst_8 = arith.constant dense<0.000000e+00> : vector<2x128xf32>
    %16 = tpu.matmul %14, %15, %cst_8 {dimension_numbers = #tpu.dot_dimension_numbers<[1], [0], [0], [1], [0, 0, 1, 1], [], []>} : vector<2x512xf32>, vector<512x128xf32>, vector<2x128xf32> -> vector<2x128xf32>
    %c0_9 = arith.constant 0 : index
    %c0_10 = arith.constant 0 : index
    %17 = vector.load %arg5[%c0_9, %c0_10] : memref<1x128xf32, #tpu.memory_space<vmem>>, vector<1x128xf32>
    %18 = vector.broadcast %17 : vector<1x128xf32> to vector<2x128xf32>
    %19 = arith.addf %16, %18 : vector<2x128xf32>
    %cst_11 = arith.constant 0.000000e+00 : f32
    %20 = vector.broadcast %cst_11 : f32 to vector<2x128xf32>
    %21 = arith.maximumf %19, %20 : vector<2x128xf32>
    %c0_12 = arith.constant 0 : index
    %c0_13 = arith.constant 0 : index
    %22 = vector.load %arg6[%c0_12, %c0_13] : memref<2x128xf32, #tpu.memory_space<vmem>>, vector<2x128xf32>
    tpu.vector_store %arg6[%c0_12, %c0_13], %21 {strides = array<i32>} : memref<2x128xf32, #tpu.memory_space<vmem>>, vector<2x128xf32>,
    return
  }
  func.func @transform_0(%arg0: i32) -> (i32, i32) {
    %c0_i32 = arith.constant 0 : i32
    %c0_i32_0 = arith.constant 0 : i32
    return %arg0, %c0_i32 : i32, i32
  }
  func.func @transform_1(%arg0: i32) -> (i32, i32) {
    %c0_i32 = arith.constant 0 : i32
    %c0_i32_0 = arith.constant 0 : i32
    %c0_i32_1 = arith.constant 0 : i32
    return %c0_i32, %c0_i32_0 : i32, i32
  }
  func.func @transform_2(%arg0: i32) -> (i32, i32) {
    %c0_i32 = arith.constant 0 : i32
    %c0_i32_0 = arith.constant 0 : i32
    %c0_i32_1 = arith.constant 0 : i32
    return %c0_i32, %c0_i32_0 : i32, i32
  }
  func.func @transform_3(%arg0: i32) -> (i32, i32) {
    %c0_i32 = arith.constant 0 : i32
    %c0_i32_0 = arith.constant 0 : i32
    %c0_i32_1 = arith.constant 0 : i32
    return %c0_i32, %c0_i32_0 : i32, i32
  }
  func.func @transform_4(%arg0: i32) -> (i32, i32) {
    %c0_i32 = arith.constant 0 : i32
    %c0_i32_0 = arith.constant 0 : i32
    %c0_i32_1 = arith.constant 0 : i32
    return %c0_i32, %c0_i32_0 : i32, i32
  }
  func.func @transform_5(%arg0: i32) -> (i32, i32) {
    %c0_i32 = arith.constant 0 : i32
    %c0_i32_0 = arith.constant 0 : i32
    return %arg0, %c0_i32 : i32, i32
  }
}

</mosaic_0001>

<bundles_post_ra>
// kernel: encoder_forward.1
= control target key start
LH: loop header
LB: loop body
LE: loop exit
PB: predicated region body
PF: predicated region fallthrough
CT: control target
= control target key end

     0   :  { %10 = vsyncpa [#allocation3], 0  ;;  %s4657_s0 = inlined_call_operand.vmem [shape: f32[2,784], index: 0, kind: input, shape index: {}]   ;;  %s4658_s1 = inlined_call_operand.hbm [shape: f32[784,2048], index: 1, kind: input, shape index: {}]   ;;  %s4659_s2 = inlined_call_operand.hbm [shape: f32[1,512], index: 2, kind: input, shape index: {}]   ;;  %s4660_s3 = inlined_call_operand.hbm [shape: f32[512,128], index: 3, kind: input, shape index: {}]   ;;  %s4661_s4 = inlined_call_operand.hbm [shape: f32[1,128], index: 4, kind: input, shape index: {}]   ;;  %s4662_s5 = inlined_call_operand.vmem [shape: f32[2,128], index: 5, kind: output, shape index: {}]  }
   0x1   :  { %11 = vsyncpa [#allocation5], 0  ;;  %s33_s20 = sshll.u32 %s4659_s2, 4  ;;  %s34_s20 = int_to_ptr.hbm [resolvable:$true] %s33_s20 }
   0x2   :  { %12 = vsyncpa [#allocation8], 0  ;;  %s4258_s21 = smov [#allocation4]   ;;  %s19_s25 = sshll.u32 %s4658_s1, 4  ;;  %s20_s25 = int_to_ptr.hbm [resolvable:$true] %s19_s25 }
   0x3   :  { %s35_s22 = sshll.u32 %s4258_s21, 4  ;;  %s4259_s26 = smov [#allocation2]   ;;  %s36_s22 = int_to_ptr.vmem [resolvable:$true] %s35_s22 }
   0x4   :  { %38 = dma.hbm_to_vmem [thread:$0]  %s34_s20, 64, %s36_s22, [#allocation5]  }
   0x5   :  { %s21_s27 = sshll.u32 %s4259_s26, 4  ;;  %s4260_s28 = smov 2048   ;;  %s22_s27 = int_to_ptr.vmem [resolvable:$true] %s21_s27 }
   0x6   :  { %s4261_s29 = smov 128   ;;  %s43_s2 = sshll.u32 %s4660_s3, 4  ;;  %s44_s2 = int_to_ptr.hbm [resolvable:$true] %s43_s2 }
   0x7   :  { %27 = dma.hbm_to_vmem [thread:$0]  %s20_s25, 200704, %s22_s27, [#allocation3], %s4260_s28, %s4260_s28, %s4261_s29  }
   0x8   :  { %s4262_s7 = smov [#allocation6]   ;;  %s4263_s9 = smov 8  }
   0x9   :  { %s45_s8 = sshll.u32 %s4262_s7, 4  ;;  %s57_s11 = sshll.u32 %s4661_s4, 4  ;;  %s46_s8 = int_to_ptr.vmem [resolvable:$true] %s45_s8  ;;  %s58_s11 = int_to_ptr.hbm [resolvable:$true] %s57_s11 }
   0xa   :  { %51 = dma.hbm_to_vmem [thread:$0]  %s44_s2, 8192, %s46_s8, [#allocation5], %s4261_s29, %s4261_s29, %s4263_s9  }
   0xb   :  { %s4264_s12 = smov [#allocation7]  }
   0xc   :  { %s59_s13 = sshll.u32 %s4264_s12, 4  ;;  %s60_s13 = int_to_ptr.vmem [resolvable:$true] %s59_s13 }
   0xd   :  { %62 = dma.hbm_to_vmem [thread:$0]  %s58_s11, 16, %s60_s13, [#allocation8]  }
   0xe   :  { %4252 = dma.done.wait [#allocation3], 200704  }
   0xf   :  { %4253 = vsyncadd [#allocation3], 4294766592 }
  0x10   :  { %4254 = dma.done.wait [#allocation5], 8256  }
  0x11   :  { %4255 = vsyncadd [#allocation5], 4294959040 }
  0x12   :  { %4256 = dma.done.wait [#allocation8], 16  }
  0x13   :  { %4257 = vsyncadd [#allocation8], 4294967280  ;;  %v321_v0 = vld [vmem:[#allocation2 + $0x780] sm:$0xff]  ;;  %v79_v54 = vld [vmem:[%s4657_s0] sm:$0xff]  ;;  %vm1667_vm0 = vcmask 130048  }
  0x14   :  { %v577_v1 = vld [vmem:[#allocation2 + $0xf80] sm:$0xff]  ;;  %1670 = vmatpush.msra.mxu0 %v321_v0  ;;  %1651 = vst [vmem:[#allocation1] ss:$4 sm:$0xff] %v79_v54  ;;  %v418_v54 = vld [vmem:[#allocation2 + $0xa88] sm:$0xff] }
  0x15   :  { %v833_v2 = vld [vmem:[#allocation2 + $0x1780] sm:$0xff]  ;;  %1690 = vmatpush.msra.mxu1 %v577_v1 }
  0x16   :  { %v1089_v3 = vld [vmem:[#allocation2 + $0x1f80] sm:$0xff]  ;;  %1710 = vmatpush.msra.mxu2 %v833_v2 }
  0x17   :  { %v305_v4 = vld [vmem:[#allocation2 + $0x700] sm:$0xff]  ;;  %1730 = vmatpush.msra.mxu3 %v1089_v3 }
  0x18   :  { %v561_v5 = vld [vmem:[#allocation2 + $0xf00] sm:$0xff]  ;;  %1671 = vmatpush.msra.mxu0 %v305_v4  ;;  %v322_v4 = vld [vmem:[#allocation2 + $0x788] sm:$0xff] }
  0x19   :  { %v817_v6 = vld [vmem:[#allocation2 + $0x1700] sm:$0xff]  ;;  %1691 = vmatpush.msra.mxu1 %v561_v5 }
  0x1a   :  { %v1073_v7 = vld [vmem:[#allocation2 + $0x1f00] sm:$0xff]  ;;  %1711 = vmatpush.msra.mxu2 %v817_v6 }
  0x1b   :  { %v289_v8 = vld [vmem:[#allocation2 + $0x680] sm:$0xff]  ;;  %1731 = vmatpush.msra.mxu3 %v1073_v7 }
  0x1c   :  { %v545_v9 = vld [vmem:[#allocation2 + $0xe80] sm:$0xff]  ;;  %1672 = vmatpush.msra.mxu0 %v289_v8  ;;  %v306_v8 = vld [vmem:[#allocation2 + $0x708] sm:$0xff] }
  0x1d   :  { %v801_v10 = vld [vmem:[#allocation2 + $0x1680] sm:$0xff]  ;;  %1692 = vmatpush.msra.mxu1 %v545_v9  ;;  %v4310_v9 = vld.sshfl [vmem:[#allocation1 + $0x10] sm:$0xff pattern:$0x73625140] }
  0x1e   :  { %v1057_v11 = vld [vmem:[#allocation2 + $0x1e80] sm:$0xff]  ;;  %1712 = vmatpush.msra.mxu2 %v801_v10 }
  0x1f   :  { %v273_v12 = vld [vmem:[#allocation2 + $0x600] sm:$0xff]  ;;  %1732 = vmatpush.msra.mxu3 %v1057_v11  ;;  %v578_v11 = vld [vmem:[#allocation2 + $0xf88] sm:$0xff] }
  0x20   :  { %v529_v13 = vld [vmem:[#allocation2 + $0xe00] sm:$0xff]  ;;  %1673 = vmatpush.msra.mxu0 %v273_v12 }
  0x21   :  { %v785_v14 = vld [vmem:[#allocation2 + $0x1600] sm:$0xff]  ;;  %1693 = vmatpush.msra.mxu1 %v529_v13  ;;  %v290_v13 = vld [vmem:[#allocation2 + $0x688] sm:$0xff] }
  0x22   :  { %v1041_v15 = vld [vmem:[#allocation2 + $0x1e00] sm:$0xff]  ;;  %1713 = vmatpush.msra.mxu2 %v785_v14 }
  0x23   :  { %v257_v16 = vld [vmem:[#allocation2 + $0x580] sm:$0xff]  ;;  %1733 = vmatpush.msra.mxu3 %v1041_v15  ;;  %v562_v15 = vld [vmem:[#allocation2 + $0xf08] sm:$0xff] }
  0x24   :  { %v513_v17 = vld [vmem:[#allocation2 + $0xd80] sm:$0xff]  ;;  %1674 = vmatpush.msra.mxu0 %v257_v16 }
  0x25   :  { %v769_v18 = vld [vmem:[#allocation2 + $0x1580] sm:$0xff]  ;;  %1694 = vmatpush.msra.mxu1 %v513_v17  ;;  %v274_v17 = vld [vmem:[#allocation2 + $0x608] sm:$0xff] }
  0x26   :  { %v1025_v19 = vld [vmem:[#allocation2 + $0x1d80] sm:$0xff]  ;;  %1714 = vmatpush.msra.mxu2 %v769_v18 }
  0x27   :  { %v241_v20 = vld [vmem:[#allocation2 + $0x500] sm:$0xff]  ;;  %1734 = vmatpush.msra.mxu3 %v1025_v19  ;;  %v4313_v19 = vld.sshfl [vmem:[#allocation1 + $0x18] sm:$0xff pattern:$0x73625140] }
  0x28   :  { %v497_v21 = vld [vmem:[#allocation2 + $0xd00] sm:$0xff]  ;;  %1675 = vmatpush.msra.mxu0 %v241_v20  ;;  %v546_v20 = vld [vmem:[#allocation2 + $0xe88] sm:$0xff] }
  0x29   :  { %v753_v22 = vld [vmem:[#allocation2 + $0x1500] sm:$0xff]  ;;  %1695 = vmatpush.msra.mxu1 %v497_v21 }
  0x2a   :  { %v1009_v23 = vld [vmem:[#allocation2 + $0x1d00] sm:$0xff]  ;;  %1715 = vmatpush.msra.mxu2 %v753_v22  ;;  %v258_v22 = vld [vmem:[#allocation2 + $0x588] sm:$0xff] }
  0x2b   :  { %v225_v24 = vld [vmem:[#allocation2 + $0x480] sm:$0xff]  ;;  %1735 = vmatpush.msra.mxu3 %v1009_v23  ;;  %v4315_v23 = vld.sshfl [vmem:[#allocation1] sm:$0xff pattern:$0x73625140] }
  0x2c   :  { %v481_v25 = vld [vmem:[#allocation2 + $0xc80] sm:$0xff]  ;;  %1676 = vmatpush.msra.mxu0 %v225_v24 }
  0x2d   :  { %v737_v26 = vld [vmem:[#allocation2 + $0x1480] sm:$0xff]  ;;  %1696 = vmatpush.msra.mxu1 %v481_v25  ;;  %v530_v25 = vld [vmem:[#allocation2 + $0xe08] sm:$0xff] }
  0x2e   :  { %v993_v27 = vld [vmem:[#allocation2 + $0x1c80] sm:$0xff]  ;;  %1716 = vmatpush.msra.mxu2 %v737_v26 }
  0x2f   :  { %v209_v28 = vld [vmem:[#allocation2 + $0x400] sm:$0xff]  ;;  %1736 = vmatpush.msra.mxu3 %v993_v27 }
  0x30   :  { %v465_v29 = vld [vmem:[#allocation2 + $0xc00] sm:$0xff]  ;;  %1677 = vmatpush.msra.mxu0 %v209_v28  ;;  %v242_v28 = vld [vmem:[#allocation2 + $0x508] sm:$0xff] }
  0x31   :  { %v721_v30 = vld [vmem:[#allocation2 + $0x1400] sm:$0xff]  ;;  %1697 = vmatpush.msra.mxu1 %v465_v29 }
  0x32   :  { %v977_v31 = vld [vmem:[#allocation2 + $0x1c00] sm:$0xff]  ;;  %1717 = vmatpush.msra.mxu2 %v721_v30  ;;  %v514_v30 = vld [vmem:[#allocation2 + $0xd88] sm:$0xff] }
  0x33   :  { %v193_v32 = vld [vmem:[#allocation2 + $0x380] sm:$0xff]  ;;  %1737 = vmatpush.msra.mxu3 %v977_v31 }
  0x34   :  { %v449_v33 = vld [vmem:[#allocation2 + $0xb80] sm:$0xff]  ;;  %1678 = vmatpush.msra.mxu0 %v193_v32 }
  0x35   :  { %v705_v34 = vld [vmem:[#allocation2 + $0x1380] sm:$0xff]  ;;  %1698 = vmatpush.msra.mxu1 %v449_v33  ;;  %v226_v33 = vld [vmem:[#allocation2 + $0x488] sm:$0xff] }
  0x36   :  { %v961_v35 = vld [vmem:[#allocation2 + $0x1b80] sm:$0xff]  ;;  %1718 = vmatpush.msra.mxu2 %v705_v34  ;;  %v498_v34 = vld [vmem:[#allocation2 + $0xd08] sm:$0xff] }
  0x37   :  { %v177_v36 = vld [vmem:[#allocation2 + $0x300] sm:$0xff]  ;;  %1738 = vmatpush.msra.mxu3 %v961_v35 }
  0x38   :  { %v433_v37 = vld [vmem:[#allocation2 + $0xb00] sm:$0xff]  ;;  %1679 = vmatpush.msra.mxu0 %v177_v36 }
  0x39   :  { %v689_v38 = vld [vmem:[#allocation2 + $0x1300] sm:$0xff]  ;;  %1699 = vmatpush.msra.mxu1 %v433_v37  ;;  %v210_v37 = vld [vmem:[#allocation2 + $0x408] sm:$0xff] }
  0x3a   :  { %v945_v39 = vld [vmem:[#allocation2 + $0x1b00] sm:$0xff]  ;;  %1719 = vmatpush.msra.mxu2 %v689_v38  ;;  %v482_v38 = vld [vmem:[#allocation2 + $0xc88] sm:$0xff] }
  0x3b   :  { %v161_v40 = vld [vmem:[#allocation2 + $0x280] sm:$0xff]  ;;  %1739 = vmatpush.msra.mxu3 %v945_v39 }
  0x3c   :  { %v417_v41 = vld [vmem:[#allocation2 + $0xa80] sm:$0xff]  ;;  %1680 = vmatpush.msra.mxu0 %v161_v40 }
  0x3d   :  { %v673_v42 = vld [vmem:[#allocation2 + $0x1280] sm:$0xff]  ;;  %1700 = vmatpush.msra.mxu1 %v417_v41  ;;  %v194_v41 = vld [vmem:[#allocation2 + $0x388] sm:$0xff] }
  0x3e   :  { %v929_v43 = vld [vmem:[#allocation2 + $0x1a80] sm:$0xff]  ;;  %1720 = vmatpush.msra.mxu2 %v673_v42  ;;  %v466_v42 = vld [vmem:[#allocation2 + $0xc08] sm:$0xff] }
  0x3f   :  { %v145_v44 = vld [vmem:[#allocation2 + $0x200] sm:$0xff]  ;;  %1740 = vmatpush.msra.mxu3 %v929_v43 }
  0x40   :  { %v401_v45 = vld [vmem:[#allocation2 + $0xa00] sm:$0xff]  ;;  %1681 = vmatpush.msra.mxu0 %v145_v44 }
  0x41   :  { %v657_v46 = vld [vmem:[#allocation2 + $0x1200] sm:$0xff]  ;;  %1701 = vmatpush.msra.mxu1 %v401_v45  ;;  %v178_v45 = vld [vmem:[#allocation2 + $0x308] sm:$0xff] }
  0x42   :  { %v913_v47 = vld [vmem:[#allocation2 + $0x1a00] sm:$0xff]  ;;  %1721 = vmatpush.msra.mxu2 %v657_v46  ;;  %v450_v46 = vld [vmem:[#allocation2 + $0xb88] sm:$0xff] }
  0x43   :  { %v129_v48 = vld [vmem:[#allocation2 + $0x180] sm:$0xff]  ;;  %1741 = vmatpush.msra.mxu3 %v913_v47 }
  0x44   :  { %v385_v49 = vld [vmem:[#allocation2 + $0x980] sm:$0xff]  ;;  %1682 = vmatpush.msra.mxu0 %v129_v48 }
  0x45   :  { %v641_v50 = vld [vmem:[#allocation2 + $0x1180] sm:$0xff]  ;;  %1702 = vmatpush.msra.mxu1 %v385_v49  ;;  %v162_v49 = vld [vmem:[#allocation2 + $0x288] sm:$0xff] }
  0x46   :  { %v897_v51 = vld [vmem:[#allocation2 + $0x1980] sm:$0xff]  ;;  %1722 = vmatpush.msra.mxu2 %v641_v50  ;;  %v434_v50 = vld [vmem:[#allocation2 + $0xb08] sm:$0xff] }
  0x47   :  { %v113_v52 = vld [vmem:[#allocation2 + $0x100] sm:$0xff]  ;;  %1742 = vmatpush.msra.mxu3 %v897_v51 }
  0x48   :  { %v369_v53 = vld [vmem:[#allocation2 + $0x900] sm:$0xff]  ;;  %1683 = vmatpush.msra.mxu0 %v113_v52 }
  0x49   :  { %v625_v55 = vld [vmem:[#allocation2 + $0x1100] sm:$0xff]  ;;  %1703 = vmatpush.msra.mxu1 %v369_v53  ;;  %v146_v53 = vld [vmem:[#allocation2 + $0x208] sm:$0xff] }
  0x4a   :  { %v881_v56 = vld [vmem:[#allocation2 + $0x1900] sm:$0xff]  ;;  %1723 = vmatpush.msra.mxu2 %v625_v55 }
  0x4b   :  { %v97_v57 = vld [vmem:[#allocation2 + $0x80] sm:$0xff]  ;;  %1743 = vmatpush.msra.mxu3 %v881_v56 }
  0x4c   :  { %v353_v58 = vld [vmem:[#allocation2 + $0x880] sm:$0xff]  ;;  %1684 = vmatpush.msra.mxu0 %v97_v57  ;;  %v130_v57 = vld [vmem:[#allocation2 + $0x188] sm:$0xff] }
  0x4d   :  { %v609_v59 = vld [vmem:[#allocation2 + $0x1080] sm:$0xff]  ;;  %1704 = vmatpush.msra.mxu1 %v353_v58  ;;  %v402_v58 = vld [vmem:[#allocation2 + $0xa08] sm:$0xff] }
  0x4e   :  { %v865_v60 = vld [vmem:[#allocation2 + $0x1880] sm:$0xff]  ;;  %1724 = vmatpush.msra.mxu2 %v609_v59 }
  0x4f   :  { %v81_v61 = vld [vmem:[#allocation2] sm:$0xff]  ;;  %1744 = vmatpush.msra.mxu3 %v865_v60 }
  0x50   :  { %v337_v62 = vld [vmem:[#allocation2 + $0x800] sm:$0xff]  ;;  %1685 = vmatpush.msra.mxu0 %v81_v61  ;;  %v114_v61 = vld [vmem:[#allocation2 + $0x108] sm:$0xff] }
  0x51   :  { %v593_v63 = vld [vmem:[#allocation2 + $0x1000] sm:$0xff]  ;;  %1705 = vmatpush.msra.mxu1 %v337_v62  ;;  %1686 = vmatmul.f32.vlgmr.msra.gmra.mxu0 %v4315_v23  ;;  %v386_v62 = vld [vmem:[#allocation2 + $0x988] sm:$0xff] }
  0x52   :  { %v849_v0 = vld [vmem:[#allocation2 + $0x1800] sm:$0xff]  ;;  %1725 = vmatpush.msra.mxu2 %v593_v63 }
  0x53   :  { %v1345_v1 = vld [vmem:[#allocation2 + $0x2780] sm:$0xff]  ;;  %1745 = vmatpush.msra.mxu3 %v849_v0  ;;  %1726 = vmatmul.f32.vlgmr.msra.gmra.mxu2 %v4310_v9 }
  0x54   :  { %v1601_v2 = vld [vmem:[#allocation2 + $0x2f80] sm:$0xff]  ;;  %1750 = vmatpush.msrb.mxu0 %v1345_v1  ;;  %1746 = vmatmul.f32.vlgmr.msra.gmra.mxu3 %v4313_v19  ;;  %v98_v1 = vld [vmem:[#allocation2 + $0x88] sm:$0xff] }
  0x55   :  { %v1633_v3 = vld [vmem:[#allocation2 + $0x3080] sm:$0xff]  ;;  %1770 = vmatpush.msrb.mxu1 %v1601_v2  ;;  %1810 = vmatpush.msrb.mxu3 %v322_v4  ;;  %v370_v4 = vld [vmem:[#allocation2 + $0x908] sm:$0xff] }
  0x56   :  { %v1329_v5 = vld [vmem:[#allocation2 + $0x2700] sm:$0xff]  ;;  %1804 = vmatpush.msrb.mxu2 %v1633_v3 }
  0x57   :  { %v1585_v6 = vld [vmem:[#allocation2 + $0x2f00] sm:$0xff]  ;;  %1751 = vmatpush.msrb.mxu0 %v1329_v5  ;;  %1811 = vmatpush.msrb.mxu3 %v306_v8  ;;  %v354_v8 = vld [vmem:[#allocation2 + $0x888] sm:$0xff] }
  0x58   :  { %v1617_v7 = vld [vmem:[#allocation2 + $0x3000] sm:$0xff]  ;;  %1771 = vmatpush.msrb.mxu1 %v1585_v6  ;;  %v82_v6 = vld [vmem:[#allocation2 + $0x8] sm:$0xff] }
  0x59   :  { %v1313_v10 = vld [vmem:[#allocation2 + $0x2680] sm:$0xff]  ;;  %1805 = vmatpush.msrb.mxu2 %v1617_v7  ;;  %1812 = vmatpush.msrb.mxu3 %v290_v13  ;;  %v338_v13 = vld [vmem:[#allocation2 + $0x808] sm:$0xff] }
  0x5a   :  { %v1569_v12 = vld [vmem:[#allocation2 + $0x2e80] sm:$0xff]  ;;  %1752 = vmatpush.msrb.mxu0 %v1313_v10  ;;  %v1090_v10 = vld [vmem:[#allocation2 + $0x1f88] sm:$0xff] }
  0x5b   :  { %v1297_v14 = vld [vmem:[#allocation2 + $0x2600] sm:$0xff]  ;;  %1830 = vmatpush.msra.mxu2 %v578_v11  ;;  %1772 = vmatpush.msrb.mxu1 %v1569_v12  ;;  %v1346_v11 = vld [vmem:[#allocation2 + $0x2788] sm:$0xff] }
  0x5c   :  { %v1553_v16 = vld [vmem:[#allocation2 + $0x2e00] sm:$0xff]  ;;  %1753 = vmatpush.msrb.mxu0 %v1297_v14  ;;  %1813 = vmatpush.msrb.mxu3 %v274_v17  ;;  %v1074_v14 = vld [vmem:[#allocation2 + $0x1f08] sm:$0xff] }
  0x5d   :  { %v1281_v18 = vld [vmem:[#allocation2 + $0x2580] sm:$0xff]  ;;  %1831 = vmatpush.msra.mxu2 %v562_v15  ;;  %1773 = vmatpush.msrb.mxu1 %v1553_v16  ;;  %v1330_v15 = vld [vmem:[#allocation2 + $0x2708] sm:$0xff] }
  0x5e   :  { %v1537_v21 = vld [vmem:[#allocation2 + $0x2d80] sm:$0xff]  ;;  %1754 = vmatpush.msrb.mxu0 %v1281_v18  ;;  %1814 = vmatpush.msrb.mxu3 %v258_v22  ;;  %v834_v16 = vld [vmem:[#allocation2 + $0x1788] sm:$0xff] }
  0x5f   :  { %v4317_v24 = vld.sshfl [vmem:[#allocation1 + $0x8] sm:$0xff pattern:$0x73625140]  ;;  %1832 = vmatpush.msra.mxu2 %v546_v20  ;;  %1774 = vmatpush.msrb.mxu1 %v1537_v21  ;;  %v1602_v17 = vld [vmem:[#allocation2 + $0x2f88] sm:$0xff] }
  0x60   :  { %v1265_v26 = vld [vmem:[#allocation2 + $0x2500] sm:$0xff]  ;;  %1706 = vmatmul.f32.vlgmr.msra.gmra.mxu1 %v4317_v24  ;;  %1815 = vmatpush.msrb.mxu3 %v242_v28  ;;  %v1058_v18 = vld [vmem:[#allocation2 + $0x1e88] sm:$0xff] }
  0x61   :  { %v1521_v27 = vld [vmem:[#allocation2 + $0x2d00] sm:$0xff]  ;;  %1833 = vmatpush.msra.mxu2 %v530_v25  ;;  %1755 = vmatpush.msrb.mxu0 %v1265_v26  ;;  %v1314_v20 = vld [vmem:[#allocation2 + $0x2688] sm:$0xff] }
  0x62   :  { %v80_v29 = vld [vmem:[%s4657_s0 + $0x8] sm:$0x3f]  ;;  %1775 = vmatpush.msrb.mxu1 %v1521_v27  ;;  %1816 = vmatpush.msrb.mxu3 %v226_v33  ;;  %v818_v21 = vld [vmem:[#allocation2 + $0x1708] sm:$0xff] }
  0x63   :  { %v1249_v31 = vld [vmem:[#allocation2 + $0x2480] sm:$0xff]  ;;  %1653 = vst [vmem:[#allocation1 + $0x20] ss:$4 sm:$0xff] %v80_v29  ;;  %1834 = vmatpush.msra.mxu2 %v514_v30  ;;  %v1586_v22 = vld [vmem:[#allocation2 + $0x2f08] sm:$0xff] }
  0x64   :  { %v1505_v32 = vld [vmem:[#allocation2 + $0x2c80] sm:$0xff]  ;;  %1756 = vmatpush.msrb.mxu0 %v1249_v31  ;;  %1817 = vmatpush.msrb.mxu3 %v210_v37  ;;  %v1042_v25 = vld [vmem:[#allocation2 + $0x1e08] sm:$0xff] }
  0x65   :  { %v1233_v35 = vld [vmem:[#allocation2 + $0x2400] sm:$0xff]  ;;  %1776 = vmatpush.msrb.mxu1 %v1505_v32  ;;  %1835 = vmatpush.msra.mxu2 %v498_v34  ;;  %v1298_v26 = vld [vmem:[#allocation2 + $0x2608] sm:$0xff] }
  0x66   :  { %v1489_v36 = vld [vmem:[#allocation2 + $0x2c00] sm:$0xff]  ;;  %1757 = vmatpush.msrb.mxu0 %v1233_v35  ;;  %1818 = vmatpush.msrb.mxu3 %v194_v41  ;;  %v802_v27 = vld [vmem:[#allocation2 + $0x1688] sm:$0xff] }
  0x67   :  { %v1217_v39 = vld [vmem:[#allocation2 + $0x2380] sm:$0xff]  ;;  %1777 = vmatpush.msrb.mxu1 %v1489_v36  ;;  %1836 = vmatpush.msra.mxu2 %v482_v38  ;;  %v1570_v28 = vld [vmem:[#allocation2 + $0x2e88] sm:$0xff] }
  0x68   :  { %v1473_v40 = vld [vmem:[#allocation2 + $0x2b80] sm:$0xff]  ;;  %1758 = vmatpush.msrb.mxu0 %v1217_v39  ;;  %1819 = vmatpush.msrb.mxu3 %v178_v45  ;;  %v1026_v29 = vld [vmem:[#allocation2 + $0x1d88] sm:$0xff] }
  0x69   :  { %v1201_v43 = vld [vmem:[#allocation2 + $0x2300] sm:$0xff]  ;;  %1778 = vmatpush.msrb.mxu1 %v1473_v40  ;;  %1837 = vmatpush.msra.mxu2 %v466_v42  ;;  %v1282_v30 = vld [vmem:[#allocation2 + $0x2588] sm:$0xff] }
  0x6a   :  { %v1457_v44 = vld [vmem:[#allocation2 + $0x2b00] sm:$0xff]  ;;  %1759 = vmatpush.msrb.mxu0 %v1201_v43  ;;  %1820 = vmatpush.msrb.mxu3 %v162_v49  ;;  %v4325_v2 = vld.sshfl [vmem:[#allocation1 + $0x30] sm:$0xff pattern:$0x73625140] }
  0x6b   :  { %v1185_v47 = vld [vmem:[#allocation2 + $0x2280] sm:$0xff]  ;;  %1779 = vmatpush.msrb.mxu1 %v1457_v44  ;;  %1838 = vmatpush.msra.mxu2 %v450_v46  ;;  %v4327_v7 = vld.sshfl [vmem:[#allocation1 + $0x20] sm:$0xff pattern:$0x73625140]  ;;  %v786_v31 = vld [vmem:[#allocation2 + $0x1608] sm:$0xff] }
  0x6c   :  { %v1441_v48 = vld [vmem:[#allocation2 + $0x2a80] sm:$0xff]  ;;  %1760 = vmatpush.msrb.mxu0 %v1185_v47  ;;  %1821 = vmatpush.msrb.mxu3 %v146_v53  ;;  %v1554_v32 = vld [vmem:[#allocation2 + $0x2e08] sm:$0xff] }
  0x6d   :  { %v1169_v51 = vld [vmem:[#allocation2 + $0x2200] sm:$0xff]  ;;  %1780 = vmatpush.msrb.mxu1 %v1441_v48  ;;  %1839 = vmatpush.msra.mxu2 %v434_v50  ;;  %v1010_v33 = vld [vmem:[#allocation2 + $0x1d08] sm:$0xff] }
  0x6e   :  { %v1425_v52 = vld [vmem:[#allocation2 + $0x2a00] sm:$0xff]  ;;  %1761 = vmatpush.msrb.mxu0 %v1169_v51  ;;  %1822 = vmatpush.msrb.mxu3 %v130_v57  ;;  %v1266_v34 = vld [vmem:[#allocation2 + $0x2508] sm:$0xff] }
  0x6f   :  { %v1153_v55 = vld [vmem:[#allocation2 + $0x2180] sm:$0xff]  ;;  %1781 = vmatpush.msrb.mxu1 %v1425_v52  ;;  %1840 = vmatpush.msra.mxu2 %v418_v54  ;;  %v770_v35 = vld [vmem:[#allocation2 + $0x1588] sm:$0xff] }
  0x70   :  { %v1409_v56 = vld [vmem:[#allocation2 + $0x2980] sm:$0xff]  ;;  %1762 = vmatpush.msrb.mxu0 %v1153_v55  ;;  %1823 = vmatpush.msrb.mxu3 %v114_v61  ;;  %v1538_v36 = vld [vmem:[#allocation2 + $0x2d88] sm:$0xff] }
  0x71   :  { %v1137_v59 = vld [vmem:[#allocation2 + $0x2100] sm:$0xff]  ;;  %1782 = vmatpush.msrb.mxu1 %v1409_v56  ;;  %1841 = vmatpush.msra.mxu2 %v402_v58  ;;  %v994_v37 = vld [vmem:[#allocation2 + $0x1c88] sm:$0xff] }
  0x72   :  { %v1393_v60 = vld [vmem:[#allocation2 + $0x2900] sm:$0xff]  ;;  %1763 = vmatpush.msrb.mxu0 %v1137_v59  ;;  %1824 = vmatpush.msrb.mxu3 %v98_v1  ;;  %v1250_v38 = vld [vmem:[#allocation2 + $0x2488] sm:$0xff] }
  0x73   :  { %v1121_v63 = vld [vmem:[#allocation2 + $0x2080] sm:$0xff]  ;;  %1783 = vmatpush.msrb.mxu1 %v1393_v60  ;;  %1842 = vmatpush.msra.mxu2 %v386_v62  ;;  %v754_v39 = vld [vmem:[#allocation2 + $0x1508] sm:$0xff] }
  0x74   :  { %v1377_v0 = vld [vmem:[#allocation2 + $0x2880] sm:$0xff]  ;;  %1764 = vmatpush.msrb.mxu0 %v1121_v63  ;;  %4097 = vmatmul.msk.f32.vlgmr.msrb.gmra.mxu2 %vm1667_vm0, %v4325_v2  ;;  %v1522_v40 = vld [vmem:[#allocation2 + $0x2d08] sm:$0xff] }
  0x75   :  { %v1105_v3 = vld [vmem:[#allocation2 + $0x2000] sm:$0xff]  ;;  %1784 = vmatpush.msrb.mxu1 %v1377_v0  ;;  %1843 = vmatpush.msra.mxu2 %v370_v4  ;;  %v978_v41 = vld [vmem:[#allocation2 + $0x1c08] sm:$0xff] }
  0x76   :  { %v1361_v5 = vld [vmem:[#allocation2 + $0x2800] sm:$0xff]  ;;  %1765 = vmatpush.msrb.mxu0 %v1105_v3  ;;  %1825 = vmatpush.msrb.mxu3 %v82_v6  ;;  %v1234_v42 = vld [vmem:[#allocation2 + $0x2408] sm:$0xff] }
  0x77   :  { %1785 = vmatpush.msrb.mxu1 %v1361_v5  ;;  %v4331_v12 = vld.sshfl [vmem:[#allocation1 + $0x28] sm:$0xff pattern:$0x73625140]  ;;  %1766 = vmatmul.f32.vlgmr.msrb.gmra.mxu0 %v4327_v7  ;;  %v738_v43 = vld [vmem:[#allocation2 + $0x1488] sm:$0xff] }
  0x78   :  { %1844 = vmatpush.msra.mxu2 %v354_v8  ;;  %1890 = vmatpush.msra.mxu3 %v1346_v11  ;;  %v1506_v44 = vld [vmem:[#allocation2 + $0x2c88] sm:$0xff] }
  0x79   :  { %1870 = vmatpush.msra.mxu1 %v1090_v10  ;;  %1850 = vmatpush.msra.mxu0 %v834_v16  ;;  %v962_v45 = vld [vmem:[#allocation2 + $0x1b88] sm:$0xff] }
  0x7a   :  { %1786 = vmatmul.f32.vlgmr.msrb.gmra.mxu1 %v4331_v12  ;;  %1845 = vmatpush.msra.mxu2 %v338_v13  ;;  %v1218_v46 = vld [vmem:[#allocation2 + $0x2388] sm:$0xff] }
  0x7b   :  { %1871 = vmatpush.msra.mxu1 %v1074_v14  ;;  %1891 = vmatpush.msra.mxu3 %v1330_v15  ;;  %v722_v47 = vld [vmem:[#allocation2 + $0x1408] sm:$0xff] }
  0x7c   :  { %1910 = vmatpush.msrb.mxu2 %v1602_v17  ;;  %1851 = vmatpush.msra.mxu0 %v818_v21  ;;  %v1490_v48 = vld [vmem:[#allocation2 + $0x2c08] sm:$0xff] }
  0x7d   :  { %1872 = vmatpush.msra.mxu1 %v1058_v18  ;;  %1892 = vmatpush.msra.mxu3 %v1314_v20  ;;  %v946_v49 = vld [vmem:[#allocation2 + $0x1b08] sm:$0xff]  ;;  %v323_v18 = vld [vmem:[#allocation2 + $0x790] sm:$0xff] }
  0x7e   :  { %1911 = vmatpush.msrb.mxu2 %v1586_v22  ;;  %1852 = vmatpush.msra.mxu0 %v802_v27  ;;  %v1202_v50 = vld [vmem:[#allocation2 + $0x2308] sm:$0xff]  ;;  %v291_v27 = vld [vmem:[#allocation2 + $0x690] sm:$0xff] }
  0x7f   :  { %1873 = vmatpush.msra.mxu1 %v1042_v25  ;;  %1893 = vmatpush.msra.mxu3 %v1298_v26  ;;  %v706_v51 = vld [vmem:[#allocation2 + $0x1388] sm:$0xff]  ;;  %v307_v25 = vld [vmem:[#allocation2 + $0x710] sm:$0xff] }
  0x80   :  { %1912 = vmatpush.msrb.mxu2 %v1570_v28  ;;  %1853 = vmatpush.msra.mxu0 %v786_v31  ;;  %v1474_v52 = vld [vmem:[#allocation2 + $0x2b88] sm:$0xff]  ;;  %v579_v26 = vld [vmem:[#allocation2 + $0xf90] sm:$0xff] }
  0x81   :  { %1874 = vmatpush.msra.mxu1 %v1026_v29  ;;  %1894 = vmatpush.msra.mxu3 %v1282_v30  ;;  %v930_v53 = vld [vmem:[#allocation2 + $0x1a88] sm:$0xff]  ;;  %v1091_v28 = vld [vmem:[#allocation2 + $0x1f90] sm:$0xff] }
  0x82   :  { %1913 = vmatpush.msrb.mxu2 %v1554_v32  ;;  %1854 = vmatpush.msra.mxu0 %v770_v35  ;;  %v1186_v54 = vld [vmem:[#allocation2 + $0x2288] sm:$0xff]  ;;  %v563_v29 = vld [vmem:[#allocation2 + $0xf10] sm:$0xff] }
  0x83   :  { %1875 = vmatpush.msra.mxu1 %v1010_v33  ;;  %1895 = vmatpush.msra.mxu3 %v1266_v34  ;;  %v690_v55 = vld [vmem:[#allocation2 + $0x1308] sm:$0xff]  ;;  %v275_v30 = vld [vmem:[#allocation2 + $0x610] sm:$0xff] }
  0x84   :  { %1914 = vmatpush.msrb.mxu2 %v1538_v36  ;;  %1855 = vmatpush.msra.mxu0 %v754_v39  ;;  %v1458_v56 = vld [vmem:[#allocation2 + $0x2b08] sm:$0xff]  ;;  %v1075_v31 = vld [vmem:[#allocation2 + $0x1f10] sm:$0xff] }
  0x85   :  { %1876 = vmatpush.msra.mxu1 %v994_v37  ;;  %1896 = vmatpush.msra.mxu3 %v1250_v38  ;;  %v914_v57 = vld [vmem:[#allocation2 + $0x1a08] sm:$0xff]  ;;  %v547_v32 = vld [vmem:[#allocation2 + $0xe90] sm:$0xff] }
  0x86   :  { %1915 = vmatpush.msrb.mxu2 %v1522_v40  ;;  %1856 = vmatpush.msra.mxu0 %v738_v43  ;;  %v1170_v58 = vld [vmem:[#allocation2 + $0x2208] sm:$0xff]  ;;  %v259_v33 = vld [vmem:[#allocation2 + $0x590] sm:$0xff] }
  0x87   :  { %1877 = vmatpush.msra.mxu1 %v978_v41  ;;  %1897 = vmatpush.msra.mxu3 %v1234_v42  ;;  %v674_v59 = vld [vmem:[#allocation2 + $0x1288] sm:$0xff]  ;;  %v1059_v34 = vld [vmem:[#allocation2 + $0x1e90] sm:$0xff] }
  0x88   :  { %1916 = vmatpush.msrb.mxu2 %v1506_v44  ;;  %1857 = vmatpush.msra.mxu0 %v722_v47  ;;  %v1442_v60 = vld [vmem:[#allocation2 + $0x2a88] sm:$0xff]  ;;  %v835_v35 = vld [vmem:[#allocation2 + $0x1790] sm:$0xff] }
  0x89   :  { %1878 = vmatpush.msra.mxu1 %v962_v45  ;;  %1898 = vmatpush.msra.mxu3 %v1218_v46  ;;  %v898_v61 = vld [vmem:[#allocation2 + $0x1988] sm:$0xff]  ;;  %v531_v36 = vld [vmem:[#allocation2 + $0xe10] sm:$0xff] }
  0x8a   :  { %1917 = vmatpush.msrb.mxu2 %v1490_v48  ;;  %1858 = vmatpush.msra.mxu0 %v706_v51  ;;  %v1154_v62 = vld [vmem:[#allocation2 + $0x2188] sm:$0xff]  ;;  %v243_v37 = vld [vmem:[#allocation2 + $0x510] sm:$0xff] }
  0x8b   :  { %1879 = vmatpush.msra.mxu1 %v946_v49  ;;  %1899 = vmatpush.msra.mxu3 %v1202_v50  ;;  %v658_v63 = vld [vmem:[#allocation2 + $0x1208] sm:$0xff]  ;;  %v1043_v38 = vld [vmem:[#allocation2 + $0x1e10] sm:$0xff] }
  0x8c   :  { %1918 = vmatpush.msrb.mxu2 %v1474_v52  ;;  %1859 = vmatpush.msra.mxu0 %v690_v55  ;;  %v1426_v0 = vld [vmem:[#allocation2 + $0x2a08] sm:$0xff]  ;;  %v819_v39 = vld [vmem:[#allocation2 + $0x1710] sm:$0xff] }
  0x8d   :  { %1880 = vmatpush.msra.mxu1 %v930_v53  ;;  %1900 = vmatpush.msra.mxu3 %v1186_v54  ;;  %v882_v1 = vld [vmem:[#allocation2 + $0x1908] sm:$0xff]  ;;  %v515_v40 = vld [vmem:[#allocation2 + $0xd90] sm:$0xff] }
  0x8e   :  { %1919 = vmatpush.msrb.mxu2 %v1458_v56  ;;  %1860 = vmatpush.msra.mxu0 %v674_v59  ;;  %v1138_v3 = vld [vmem:[#allocation2 + $0x2108] sm:$0xff]  ;;  %v227_v41 = vld [vmem:[#allocation2 + $0x490] sm:$0xff] }
  0x8f   :  { %1881 = vmatpush.msra.mxu1 %v914_v57  ;;  %1901 = vmatpush.msra.mxu3 %v1170_v58  ;;  %v642_v4 = vld [vmem:[#allocation2 + $0x1188] sm:$0xff]  ;;  %v1027_v42 = vld [vmem:[#allocation2 + $0x1d90] sm:$0xff] }
  0x90   :  { %1826 = vmatmul.f32.vlgmr.msrb.gmra.mxu3 %v4315_v23  ;;  %1920 = vmatpush.msrb.mxu2 %v1442_v60  ;;  %v1410_v5 = vld [vmem:[#allocation2 + $0x2988] sm:$0xff]  ;;  %v803_v43 = vld [vmem:[#allocation2 + $0x1690] sm:$0xff] }
  0x91   :  { %1882 = vmatpush.msra.mxu1 %v898_v61  ;;  %1902 = vmatpush.msra.mxu3 %v1154_v62  ;;  %v866_v6 = vld [vmem:[#allocation2 + $0x1888] sm:$0xff]  ;;  %v499_v44 = vld [vmem:[#allocation2 + $0xd10] sm:$0xff] }
  0x92   :  { %1861 = vmatpush.msra.mxu0 %v658_v63  ;;  %1921 = vmatpush.msrb.mxu2 %v1426_v0  ;;  %v1122_v8 = vld [vmem:[#allocation2 + $0x2088] sm:$0xff]  ;;  %v211_v45 = vld [vmem:[#allocation2 + $0x410] sm:$0xff] }
  0x93   :  { %1846 = vmatmul.f32.vlgmr.msra.gmra.mxu2 %v4317_v24  ;;  %1883 = vmatpush.msra.mxu1 %v882_v1  ;;  %v626_v10 = vld [vmem:[#allocation2 + $0x1108] sm:$0xff]  ;;  %v1011_v46 = vld [vmem:[#allocation2 + $0x1d10] sm:$0xff] }
  0x94   :  { %1903 = vmatpush.msra.mxu3 %v1138_v3  ;;  %1862 = vmatpush.msra.mxu0 %v642_v4  ;;  %v1394_v11 = vld [vmem:[#allocation2 + $0x2908] sm:$0xff]  ;;  %v787_v47 = vld [vmem:[#allocation2 + $0x1610] sm:$0xff] }
  0x95   :  { %v850_v13 = vld [vmem:[#allocation2 + $0x1808] sm:$0xff]  ;;  %1922 = vmatpush.msrb.mxu2 %v1410_v5  ;;  %1884 = vmatpush.msra.mxu1 %v866_v6  ;;  %v483_v48 = vld [vmem:[#allocation2 + $0xc90] sm:$0xff] }
  0x96   :  { %v1106_v14 = vld [vmem:[#allocation2 + $0x2008] sm:$0xff]  ;;  %1904 = vmatpush.msra.mxu3 %v1122_v8  ;;  %1863 = vmatpush.msra.mxu0 %v626_v10  ;;  %v195_v49 = vld [vmem:[#allocation2 + $0x390] sm:$0xff] }
  0x97   :  { %v610_v15 = vld [vmem:[#allocation2 + $0x1088] sm:$0xff]  ;;  %1923 = vmatpush.msrb.mxu2 %v1394_v11  ;;  %1885 = vmatpush.msra.mxu1 %v850_v13  ;;  %v995_v50 = vld [vmem:[#allocation2 + $0x1c90] sm:$0xff] }
  0x98   :  { %v1378_v16 = vld [vmem:[#allocation2 + $0x2888] sm:$0xff]  ;;  %1905 = vmatpush.msra.mxu3 %v1106_v14  ;;  %1864 = vmatpush.msra.mxu0 %v610_v15  ;;  %v771_v51 = vld [vmem:[#allocation2 + $0x1590] sm:$0xff] }
  0x99   :  { %v1634_v17 = vld [vmem:[#allocation2 + $0x3088] sm:$0xff]  ;;  %1906 = vmatmul.f32.vlgmr.msra.gmra.mxu3 %v4327_v7  ;;  %1924 = vmatpush.msrb.mxu2 %v1378_v16  ;;  %v467_v52 = vld [vmem:[#allocation2 + $0xc10] sm:$0xff] }
  0x9a   :  { %v594_v20 = vld [vmem:[#allocation2 + $0x1008] sm:$0xff]  ;;  %1944 = vmatpush.msrb.mxu3 %v1634_v17  ;;  %1950 = vmatpush.msrb.mxu1 %v323_v18  ;;  %v179_v53 = vld [vmem:[#allocation2 + $0x310] sm:$0xff] }
  0x9b   :  { %v1362_v21 = vld [vmem:[#allocation2 + $0x2808] sm:$0xff]  ;;  %1865 = vmatpush.msra.mxu0 %v594_v20  ;;  %1886 = vmatmul.f32.vlgmr.msra.gmra.mxu1 %v4313_v19  ;;  %v979_v54 = vld [vmem:[#allocation2 + $0x1c10] sm:$0xff] }
  0x9c   :  { %v1618_v22 = vld [vmem:[#allocation2 + $0x3008] sm:$0xff]  ;;  %1925 = vmatpush.msrb.mxu2 %v1362_v21  ;;  %1951 = vmatpush.msrb.mxu1 %v307_v25  ;;  %v755_v55 = vld [vmem:[#allocation2 + $0x1510] sm:$0xff] }
  0x9d   :  { %1945 = vmatpush.msrb.mxu3 %v1618_v22  ;;  %1866 = vmatmul.f32.vlgmr.msra.gmra.mxu0 %v4310_v9  ;;  %v451_v56 = vld [vmem:[#allocation2 + $0xb90] sm:$0xff] }
  0x9e   :  { %1926 = vmatmul.f32.vlgmr.msrb.gmra.mxu2 %v4331_v12  ;;  %1952 = vmatpush.msrb.mxu1 %v291_v27  ;;  %v163_v57 = vld [vmem:[#allocation2 + $0x290] sm:$0xff] }
  0x9f   :  { %1970 = vmatpush.msra.mxu3 %v579_v26  ;;  %2010 = vmatpush.msra.mxu2 %v1091_v28  ;;  %v963_v58 = vld [vmem:[#allocation2 + $0x1b90] sm:$0xff] }
  0xa0   :  { %1953 = vmatpush.msrb.mxu1 %v275_v30  ;;  %1990 = vmatpush.msrb.mxu0 %v835_v35  ;;  %v739_v59 = vld [vmem:[#allocation2 + $0x1490] sm:$0xff] }
  0xa1   :  { %1971 = vmatpush.msra.mxu3 %v563_v29  ;;  %2011 = vmatpush.msra.mxu2 %v1075_v31  ;;  %v435_v60 = vld [vmem:[#allocation2 + $0xb10] sm:$0xff] }
  0xa2   :  { %4098 = vmatmul.msk.f32.vlgmr.msrb.gmra.mxu3 %vm1667_vm0, %v4325_v2  ;;  %1954 = vmatpush.msrb.mxu1 %v259_v33  ;;  %v147_v61 = vld [vmem:[#allocation2 + $0x210] sm:$0xff] }
  0xa3   :  { %1972 = vmatpush.msra.mxu3 %v547_v32  ;;  %2012 = vmatpush.msra.mxu2 %v1059_v34  ;;  %v947_v62 = vld [vmem:[#allocation2 + $0x1b10] sm:$0xff]  ;;  %v324_v34 = vld [vmem:[#allocation2 + $0x798] sm:$0xff] }
  0xa4   :  { %1955 = vmatpush.msrb.mxu1 %v243_v37  ;;  %1991 = vmatpush.msrb.mxu0 %v819_v39  ;;  %v723_v63 = vld [vmem:[#allocation2 + $0x1410] sm:$0xff] }
  0xa5   :  { %1973 = vmatpush.msra.mxu3 %v531_v36  ;;  %2013 = vmatpush.msra.mxu2 %v1043_v38  ;;  %v419_v0 = vld [vmem:[#allocation2 + $0xa90] sm:$0xff]  ;;  %v308_v38 = vld [vmem:[#allocation2 + $0x718] sm:$0xff] }
  0xa6   :  { %1956 = vmatpush.msrb.mxu1 %v227_v41  ;;  %1992 = vmatpush.msrb.mxu0 %v803_v43  ;;  %v131_v1 = vld [vmem:[#allocation2 + $0x190] sm:$0xff] }
  0xa7   :  { %1974 = vmatpush.msra.mxu3 %v515_v40  ;;  %2014 = vmatpush.msra.mxu2 %v1027_v42  ;;  %v931_v3 = vld [vmem:[#allocation2 + $0x1a90] sm:$0xff]  ;;  %v292_v42 = vld [vmem:[#allocation2 + $0x698] sm:$0xff] }
  0xa8   :  { %1957 = vmatpush.msrb.mxu1 %v211_v45  ;;  %1993 = vmatpush.msrb.mxu0 %v787_v47  ;;  %v707_v4 = vld [vmem:[#allocation2 + $0x1390] sm:$0xff]  ;;  %v276_v45 = vld [vmem:[#allocation2 + $0x618] sm:$0xff] }
  0xa9   :  { %1975 = vmatpush.msra.mxu3 %v499_v44  ;;  %2015 = vmatpush.msra.mxu2 %v1011_v46  ;;  %v403_v5 = vld [vmem:[#allocation2 + $0xa10] sm:$0xff] }
  0xaa   :  { %1958 = vmatpush.msrb.mxu1 %v195_v49  ;;  %1994 = vmatpush.msrb.mxu0 %v771_v51  ;;  %v115_v6 = vld [vmem:[#allocation2 + $0x110] sm:$0xff]  ;;  %v260_v49 = vld [vmem:[#allocation2 + $0x598] sm:$0xff] }
  0xab   :  { %1976 = vmatpush.msra.mxu3 %v483_v48  ;;  %2016 = vmatpush.msra.mxu2 %v995_v50  ;;  %v915_v8 = vld [vmem:[#allocation2 + $0x1a10] sm:$0xff]  ;;  %v580_v50 = vld [vmem:[#allocation2 + $0xf98] sm:$0xff] }
  0xac   :  { %1959 = vmatpush.msrb.mxu1 %v179_v53  ;;  %1995 = vmatpush.msrb.mxu0 %v755_v55  ;;  %v691_v10 = vld [vmem:[#allocation2 + $0x1310] sm:$0xff]  ;;  %v564_v53 = vld [vmem:[#allocation2 + $0xf18] sm:$0xff] }
  0xad   :  { %1977 = vmatpush.msra.mxu3 %v467_v52  ;;  %2017 = vmatpush.msra.mxu2 %v979_v54  ;;  %v387_v11 = vld [vmem:[#allocation2 + $0x990] sm:$0xff]  ;;  %v244_v52 = vld [vmem:[#allocation2 + $0x518] sm:$0xff] }
  0xae   :  { %1960 = vmatpush.msrb.mxu1 %v163_v57  ;;  %1996 = vmatpush.msrb.mxu0 %v739_v59  ;;  %v99_v13 = vld [vmem:[#allocation2 + $0x90] sm:$0xff]  ;;  %v212_v59 = vld [vmem:[#allocation2 + $0x418] sm:$0xff] }
  0xaf   :  { %1978 = vmatpush.msra.mxu3 %v451_v56  ;;  %2018 = vmatpush.msra.mxu2 %v963_v58  ;;  %v899_v14 = vld [vmem:[#allocation2 + $0x1990] sm:$0xff]  ;;  %v228_v56 = vld [vmem:[#allocation2 + $0x498] sm:$0xff] }
  0xb0   :  { %1961 = vmatpush.msrb.mxu1 %v147_v61  ;;  %1997 = vmatpush.msrb.mxu0 %v723_v63  ;;  %v675_v15 = vld [vmem:[#allocation2 + $0x1290] sm:$0xff]  ;;  %v516_v63 = vld [vmem:[#allocation2 + $0xd98] sm:$0xff] }
  0xb1   :  { %1979 = vmatpush.msra.mxu3 %v435_v60  ;;  %2019 = vmatpush.msra.mxu2 %v947_v62  ;;  %v371_v16 = vld [vmem:[#allocation2 + $0x910] sm:$0xff]  ;;  %v532_v60 = vld [vmem:[#allocation2 + $0xe18] sm:$0xff] }
  0xb2   :  { %1962 = vmatpush.msrb.mxu1 %v131_v1  ;;  %1998 = vmatpush.msrb.mxu0 %v707_v4  ;;  %v83_v17 = vld [vmem:[#allocation2 + $0x10] sm:$0xff]  ;;  %v196_v62 = vld [vmem:[#allocation2 + $0x398] sm:$0xff] }
  0xb3   :  { %1980 = vmatpush.msra.mxu3 %v419_v0  ;;  %2020 = vmatpush.msra.mxu2 %v931_v3  ;;  %v883_v18 = vld [vmem:[#allocation2 + $0x1910] sm:$0xff]  ;;  %v180_v3 = vld [vmem:[#allocation2 + $0x318] sm:$0xff] }
  0xb4   :  { %1963 = vmatpush.msrb.mxu1 %v115_v6  ;;  %1999 = vmatpush.msrb.mxu0 %v691_v10  ;;  %v1347_v20 = vld [vmem:[#allocation2 + $0x2790] sm:$0xff]  ;;  %v500_v4 = vld [vmem:[#allocation2 + $0xd18] sm:$0xff] }
  0xb5   :  { %1981 = vmatpush.msra.mxu3 %v403_v5  ;;  %2021 = vmatpush.msra.mxu2 %v915_v8  ;;  %v355_v21 = vld [vmem:[#allocation2 + $0x890] sm:$0xff]  ;;  %v164_v8 = vld [vmem:[#allocation2 + $0x298] sm:$0xff] }
  0xb6   :  { %1964 = vmatpush.msrb.mxu1 %v99_v13  ;;  %2000 = vmatpush.msrb.mxu0 %v675_v15  ;;  %v659_v22 = vld [vmem:[#allocation2 + $0x1210] sm:$0xff]  ;;  %v484_v10 = vld [vmem:[#allocation2 + $0xc98] sm:$0xff] }
  0xb7   :  { %1982 = vmatpush.msra.mxu3 %v387_v11  ;;  %2022 = vmatpush.msra.mxu2 %v899_v14  ;;  %v867_v25 = vld [vmem:[#allocation2 + $0x1890] sm:$0xff]  ;;  %v148_v14 = vld [vmem:[#allocation2 + $0x218] sm:$0xff] }
  0xb8   :  { %1965 = vmatpush.msrb.mxu1 %v83_v17  ;;  %v1331_v26 = vld [vmem:[#allocation2 + $0x2710] sm:$0xff]  ;;  %2001 = vmatpush.msrb.mxu0 %v659_v22  ;;  %v468_v15 = vld [vmem:[#allocation2 + $0xc18] sm:$0xff] }
  0xb9   :  { %1983 = vmatpush.msra.mxu3 %v371_v16  ;;  %2023 = vmatpush.msra.mxu2 %v883_v18  ;;  %v339_v27 = vld [vmem:[#allocation2 + $0x810] sm:$0xff]  ;;  %v132_v18 = vld [vmem:[#allocation2 + $0x198] sm:$0xff] }
  0xba   :  { %2030 = vmatpush.msra.mxu1 %v1347_v20  ;;  %v643_v28 = vld [vmem:[#allocation2 + $0x1190] sm:$0xff]  ;;  %v452_v20 = vld [vmem:[#allocation2 + $0xb98] sm:$0xff] }
  0xbb   :  { %1984 = vmatpush.msra.mxu3 %v355_v21  ;;  %v1603_v29 = vld [vmem:[#allocation2 + $0x2f90] sm:$0xff]  ;;  %2024 = vmatpush.msra.mxu2 %v867_v25  ;;  %v116_v25 = vld [vmem:[#allocation2 + $0x118] sm:$0xff] }
  0xbc   :  { %v851_v30 = vld [vmem:[#allocation2 + $0x1810] sm:$0xff]  ;;  %2031 = vmatpush.msra.mxu1 %v1331_v26  ;;  %2002 = vmatpush.msrb.mxu0 %v643_v28  ;;  %v436_v26 = vld [vmem:[#allocation2 + $0xb18] sm:$0xff] }
  0xbd   :  { %v1315_v31 = vld [vmem:[#allocation2 + $0x2690] sm:$0xff]  ;;  %1985 = vmatpush.msra.mxu3 %v339_v27  ;;  %2025 = vmatpush.msra.mxu2 %v851_v30  ;;  %v836_v27 = vld [vmem:[#allocation2 + $0x1798] sm:$0xff] }
  0xbe   :  { %v627_v32 = vld [vmem:[#allocation2 + $0x1110] sm:$0xff]  ;;  %2032 = vmatpush.msra.mxu1 %v1315_v31  ;;  %1986 = vmatmul.f32.vlgmr.msra.gmra.mxu3 %v4317_v24  ;;  %v420_v30 = vld [vmem:[#allocation2 + $0xa98] sm:$0xff] }
  0xbf   :  { %v1587_v33 = vld [vmem:[#allocation2 + $0x2f10] sm:$0xff]  ;;  %2050 = vmatpush.msrb.mxu3 %v1603_v29  ;;  %2003 = vmatpush.msrb.mxu0 %v627_v32  ;;  %v100_v29 = vld [vmem:[#allocation2 + $0x98] sm:$0xff] }
  0xc0   :  { %v1299_v35 = vld [vmem:[#allocation2 + $0x2610] sm:$0xff]  ;;  %2090 = vmatpush.msrb.mxu2 %v324_v34  ;;  %1966 = vmatmul.f32.vlgmr.msrb.gmra.mxu1 %v4315_v23  ;;  %v548_v23 = vld [vmem:[#allocation2 + $0xe98] sm:$0xff] }
  0xc1   :  { %v611_v36 = vld [vmem:[#allocation2 + $0x1090] sm:$0xff]  ;;  %2051 = vmatpush.msrb.mxu3 %v1587_v33  ;;  %2033 = vmatpush.msra.mxu1 %v1299_v35  ;;  %v820_v31 = vld [vmem:[#allocation2 + $0x1718] sm:$0xff] }
  0xc2   :  { %v1571_v37 = vld [vmem:[#allocation2 + $0x2e90] sm:$0xff]  ;;  %2004 = vmatpush.msrb.mxu0 %v611_v36  ;;  %2091 = vmatpush.msrb.mxu2 %v308_v38  ;;  %v1092_v32 = vld [vmem:[#allocation2 + $0x1f98] sm:$0xff] }
  0xc3   :  { %v1283_v39 = vld [vmem:[#allocation2 + $0x2590] sm:$0xff]  ;;  %2052 = vmatpush.msrb.mxu3 %v1571_v37  ;;  %2026 = vmatmul.f32.vlgmr.msra.gmra.mxu2 %v4313_v19  ;;  %v84_v33 = vld [vmem:[#allocation2 + $0x18] sm:$0xff] }
  0xc4   :  { %v595_v40 = vld [vmem:[#allocation2 + $0x1010] sm:$0xff]  ;;  %2034 = vmatpush.msra.mxu1 %v1283_v39  ;;  %2092 = vmatpush.msrb.mxu2 %v292_v42  ;;  %v404_v34 = vld [vmem:[#allocation2 + $0xa18] sm:$0xff] }
  0xc5   :  { %v1555_v41 = vld [vmem:[#allocation2 + $0x2e10] sm:$0xff]  ;;  %2005 = vmatpush.msrb.mxu0 %v595_v40  ;;  %v804_v35 = vld [vmem:[#allocation2 + $0x1698] sm:$0xff] }
  0xc6   :  { %v1267_v43 = vld [vmem:[#allocation2 + $0x2510] sm:$0xff]  ;;  %2053 = vmatpush.msrb.mxu3 %v1555_v41  ;;  %2093 = vmatpush.msrb.mxu2 %v276_v45  ;;  %v1076_v36 = vld [vmem:[#allocation2 + $0x1f18] sm:$0xff] }
  0xc7   :  { %v1635_v44 = vld [vmem:[#allocation2 + $0x3090] sm:$0xff]  ;;  %2035 = vmatpush.msra.mxu1 %v1267_v43  ;;  %2006 = vmatmul.f32.vlgmr.msrb.gmra.mxu0 %v4310_v9  ;;  %v1348_v37 = vld [vmem:[#allocation2 + $0x2798] sm:$0xff] }
  0xc8   :  { %v1539_v24 = vld [vmem:[#allocation2 + $0x2d90] sm:$0xff]  ;;  %2084 = vmatpush.msra.mxu0 %v1635_v44  ;;  %2094 = vmatpush.msrb.mxu2 %v260_v49  ;;  %v788_v38 = vld [vmem:[#allocation2 + $0x1618] sm:$0xff] }
  0xc9   :  { %v1251_v46 = vld [vmem:[#allocation2 + $0x2490] sm:$0xff]  ;;  %2054 = vmatpush.msrb.mxu3 %v1539_v24  ;;  %v1060_v39 = vld [vmem:[#allocation2 + $0x1e98] sm:$0xff] }
  0xca   :  { %v1619_v47 = vld [vmem:[#allocation2 + $0x3010] sm:$0xff]  ;;  %2036 = vmatpush.msra.mxu1 %v1251_v46  ;;  %2095 = vmatpush.msrb.mxu2 %v244_v52  ;;  %v1332_v40 = vld [vmem:[#allocation2 + $0x2718] sm:$0xff] }
  0xcb   :  { %v1523_v48 = vld [vmem:[#allocation2 + $0x2d10] sm:$0xff]  ;;  %2085 = vmatpush.msra.mxu0 %v1619_v47  ;;  %v372_v41 = vld [vmem:[#allocation2 + $0x918] sm:$0xff] }
  0xcc   :  { %v1235_v51 = vld [vmem:[#allocation2 + $0x2410] sm:$0xff]  ;;  %2055 = vmatpush.msrb.mxu3 %v1523_v48  ;;  %2096 = vmatpush.msrb.mxu2 %v228_v56  ;;  %v772_v42 = vld [vmem:[#allocation2 + $0x1598] sm:$0xff] }
  0xcd   :  { %v1507_v19 = vld [vmem:[#allocation2 + $0x2c90] sm:$0xff]  ;;  %2110 = vmatpush.msrb.mxu0 %v580_v50  ;;  %2037 = vmatpush.msra.mxu1 %v1235_v51  ;;  %v1044_v43 = vld [vmem:[#allocation2 + $0x1e18] sm:$0xff] }
  0xce   :  { %v1219_v54 = vld [vmem:[#allocation2 + $0x2390] sm:$0xff]  ;;  %2056 = vmatpush.msrb.mxu3 %v1507_v19  ;;  %2097 = vmatpush.msrb.mxu2 %v212_v59  ;;  %v1316_v44 = vld [vmem:[#allocation2 + $0x2698] sm:$0xff] }
  0xcf   :  { %v1491_v55 = vld [vmem:[#allocation2 + $0x2c10] sm:$0xff]  ;;  %2111 = vmatpush.msrb.mxu0 %v564_v53  ;;  %2038 = vmatpush.msra.mxu1 %v1219_v54  ;;  %v756_v24 = vld [vmem:[#allocation2 + $0x1518] sm:$0xff] }
  0xd0   :  { %v1203_v57 = vld [vmem:[#allocation2 + $0x2310] sm:$0xff]  ;;  %2057 = vmatpush.msrb.mxu3 %v1491_v55  ;;  %2098 = vmatpush.msrb.mxu2 %v196_v62  ;;  %v1028_v45 = vld [vmem:[#allocation2 + $0x1d98] sm:$0xff] }
  0xd1   :  { %v1475_v58 = vld [vmem:[#allocation2 + $0x2b90] sm:$0xff]  ;;  %2112 = vmatpush.msrb.mxu0 %v548_v23  ;;  %2039 = vmatpush.msra.mxu1 %v1203_v57  ;;  %v1300_v46 = vld [vmem:[#allocation2 + $0x2618] sm:$0xff] }
  0xd2   :  { %v1187_v61 = vld [vmem:[#allocation2 + $0x2290] sm:$0xff]  ;;  %2058 = vmatpush.msrb.mxu3 %v1475_v58  ;;  %2099 = vmatpush.msrb.mxu2 %v180_v3  ;;  %v340_v47 = vld [vmem:[#allocation2 + $0x818] sm:$0xff] }
  0xd3   :  { %v1459_v9 = vld [vmem:[#allocation2 + $0x2b10] sm:$0xff]  ;;  %2113 = vmatpush.msrb.mxu0 %v532_v60  ;;  %2040 = vmatpush.msra.mxu1 %v1187_v61  ;;  %v740_v48 = vld [vmem:[#allocation2 + $0x1498] sm:$0xff] }
  0xd4   :  { %v1171_v0 = vld [vmem:[#allocation2 + $0x2210] sm:$0xff]  ;;  %2059 = vmatpush.msrb.mxu3 %v1459_v9  ;;  %2100 = vmatpush.msrb.mxu2 %v164_v8  ;;  %v1012_v49 = vld [vmem:[#allocation2 + $0x1d18] sm:$0xff] }
  0xd5   :  { %v1443_v1 = vld [vmem:[#allocation2 + $0x2a90] sm:$0xff]  ;;  %2114 = vmatpush.msrb.mxu0 %v516_v63  ;;  %2041 = vmatpush.msra.mxu1 %v1171_v0  ;;  %v1284_v50 = vld [vmem:[#allocation2 + $0x2598] sm:$0xff] }
  0xd6   :  { %v1155_v5 = vld [vmem:[#allocation2 + $0x2190] sm:$0xff]  ;;  %2060 = vmatpush.msrb.mxu3 %v1443_v1  ;;  %2101 = vmatpush.msrb.mxu2 %v148_v14  ;;  %v1604_v51 = vld [vmem:[#allocation2 + $0x2f98] sm:$0xff] }
  0xd7   :  { %v1427_v6 = vld [vmem:[#allocation2 + $0x2a10] sm:$0xff]  ;;  %2115 = vmatpush.msrb.mxu0 %v500_v4  ;;  %2042 = vmatpush.msra.mxu1 %v1155_v5  ;;  %v724_v19 = vld [vmem:[#allocation2 + $0x1418] sm:$0xff] }
  0xd8   :  { %v1139_v11 = vld [vmem:[#allocation2 + $0x2110] sm:$0xff]  ;;  %2061 = vmatpush.msrb.mxu3 %v1427_v6  ;;  %2102 = vmatpush.msrb.mxu2 %v132_v18  ;;  %v996_v52 = vld [vmem:[#allocation2 + $0x1c98] sm:$0xff] }
  0xd9   :  { %v1411_v13 = vld [vmem:[#allocation2 + $0x2990] sm:$0xff]  ;;  %2116 = vmatpush.msrb.mxu0 %v484_v10  ;;  %2043 = vmatpush.msra.mxu1 %v1139_v11  ;;  %v1268_v53 = vld [vmem:[#allocation2 + $0x2518] sm:$0xff] }
  0xda   :  { %v1123_v16 = vld [vmem:[#allocation2 + $0x2090] sm:$0xff]  ;;  %2062 = vmatpush.msrb.mxu3 %v1411_v13  ;;  %2103 = vmatpush.msrb.mxu2 %v116_v25  ;;  %v1588_v54 = vld [vmem:[#allocation2 + $0x2f18] sm:$0xff] }
  0xdb   :  { %v1395_v17 = vld [vmem:[#allocation2 + $0x2910] sm:$0xff]  ;;  %2117 = vmatpush.msrb.mxu0 %v468_v15  ;;  %2044 = vmatpush.msra.mxu1 %v1123_v16  ;;  %v708_v55 = vld [vmem:[#allocation2 + $0x1398] sm:$0xff] }
  0xdc   :  { %v1107_v21 = vld [vmem:[#allocation2 + $0x2010] sm:$0xff]  ;;  %2063 = vmatpush.msrb.mxu3 %v1395_v17  ;;  %2104 = vmatpush.msrb.mxu2 %v100_v29  ;;  %v980_v56 = vld [vmem:[#allocation2 + $0x1c18] sm:$0xff] }
  0xdd   :  { %v1379_v22 = vld [vmem:[#allocation2 + $0x2890] sm:$0xff]  ;;  %2118 = vmatpush.msrb.mxu0 %v452_v20  ;;  %2045 = vmatpush.msra.mxu1 %v1107_v21  ;;  %v1252_v23 = vld [vmem:[#allocation2 + $0x2498] sm:$0xff] }
  0xde   :  { %v1363_v28 = vld [vmem:[#allocation2 + $0x2810] sm:$0xff]  ;;  %2046 = vmatmul.f32.vlgmr.msra.gmra.mxu1 %v4327_v7  ;;  %2064 = vmatpush.msrb.mxu3 %v1379_v22  ;;  %v388_v7 = vld [vmem:[#allocation2 + $0x998] sm:$0xff] }
  0xdf   :  { %2119 = vmatpush.msrb.mxu0 %v436_v26  ;;  %2130 = vmatpush.msrb.mxu1 %v836_v27  ;;  %v1572_v57 = vld [vmem:[#allocation2 + $0x2e98] sm:$0xff] }
  0xe0   :  { %2065 = vmatpush.msrb.mxu3 %v1363_v28  ;;  %2105 = vmatpush.msrb.mxu2 %v84_v33  ;;  %v964_v58 = vld [vmem:[#allocation2 + $0x1b98] sm:$0xff]  ;;  %v325_v33 = vld [vmem:[#allocation2 + $0x7a0] sm:$0xff] }
  0xe1   :  { %2120 = vmatpush.msrb.mxu0 %v420_v30  ;;  %2131 = vmatpush.msrb.mxu1 %v820_v31  ;;  %v1236_v59 = vld [vmem:[#allocation2 + $0x2418] sm:$0xff] }
  0xe2   :  { %2066 = vmatmul.f32.vlgmr.msrb.gmra.mxu3 %v4331_v12  ;;  %2170 = vmatpush.msra.mxu2 %v1348_v37  ;;  %v356_v12 = vld [vmem:[#allocation2 + $0x898] sm:$0xff]  ;;  %v309_v37 = vld [vmem:[#allocation2 + $0x720] sm:$0xff] }
  0xe3   :  { %2150 = vmatpush.msra.mxu3 %v1092_v32  ;;  %2121 = vmatpush.msrb.mxu0 %v404_v34  ;;  %v1556_v60 = vld [vmem:[#allocation2 + $0x2e18] sm:$0xff]  ;;  %v581_v34 = vld [vmem:[#allocation2 + $0xfa0] sm:$0xff] }
  0xe4   :  { %2132 = vmatpush.msrb.mxu1 %v804_v35  ;;  %2171 = vmatpush.msra.mxu2 %v1332_v40  ;;  %v676_v61 = vld [vmem:[#allocation2 + $0x1298] sm:$0xff] }
  0xe5   :  { %2151 = vmatpush.msra.mxu3 %v1076_v36  ;;  %2122 = vmatpush.msrb.mxu0 %v388_v7  ;;  %v948_v9 = vld [vmem:[#allocation2 + $0x1b18] sm:$0xff]  ;;  %v4354_v7 = vld.sshfl [vmem:[#allocation1 + $0x10] sm:$0xff pattern:$0x73625140] }
  0xe6   :  { %2133 = vmatpush.msrb.mxu1 %v788_v38  ;;  %2172 = vmatpush.msra.mxu2 %v1316_v44  ;;  %v1220_v62 = vld [vmem:[#allocation2 + $0x2398] sm:$0xff]  ;;  %v565_v38 = vld [vmem:[#allocation2 + $0xf20] sm:$0xff]  ;;  %v4357_v44 = vld.sshfl [vmem:[#allocation1 + $0x18] sm:$0xff pattern:$0x73625140] }
  0xe7   :  { %2152 = vmatpush.msra.mxu3 %v1060_v39  ;;  %2123 = vmatpush.msrb.mxu0 %v372_v41  ;;  %v1540_v63 = vld [vmem:[#allocation2 + $0x2d98] sm:$0xff]  ;;  %v837_v39 = vld [vmem:[#allocation2 + $0x17a0] sm:$0xff] }
  0xe8   :  { %2134 = vmatpush.msrb.mxu1 %v772_v42  ;;  %4099 = vmatmul.msk.f32.vlgmr.msra.gmra.mxu0 %vm1667_vm0, %v4325_v2  ;;  %v692_v2 = vld [vmem:[#allocation2 + $0x1318] sm:$0xff]  ;;  %v293_v41 = vld [vmem:[#allocation2 + $0x6a0] sm:$0xff] }
  0xe9   :  { %2153 = vmatpush.msra.mxu3 %v1044_v43  ;;  %2124 = vmatpush.msrb.mxu0 %v356_v12  ;;  %v660_v0 = vld [vmem:[#allocation2 + $0x1218] sm:$0xff]  ;;  %v549_v42 = vld [vmem:[#allocation2 + $0xea0] sm:$0xff] }
  0xea   :  { %2135 = vmatpush.msrb.mxu1 %v756_v24  ;;  %2173 = vmatpush.msra.mxu2 %v1300_v46  ;;  %v932_v1 = vld [vmem:[#allocation2 + $0x1a98] sm:$0xff]  ;;  %v821_v43 = vld [vmem:[#allocation2 + $0x1720] sm:$0xff] }
  0xeb   :  { %2154 = vmatpush.msra.mxu3 %v1028_v45  ;;  %2125 = vmatpush.msrb.mxu0 %v340_v47  ;;  %v1204_v3 = vld [vmem:[#allocation2 + $0x2318] sm:$0xff]  ;;  %v277_v24 = vld [vmem:[#allocation2 + $0x620] sm:$0xff] }
  0xec   :  { %2136 = vmatpush.msrb.mxu1 %v740_v48  ;;  %2174 = vmatpush.msra.mxu2 %v1284_v50  ;;  %v1524_v4 = vld [vmem:[#allocation2 + $0x2d18] sm:$0xff]  ;;  %v533_v45 = vld [vmem:[#allocation2 + $0xe20] sm:$0xff] }
  0xed   :  { %2155 = vmatpush.msra.mxu3 %v1012_v49  ;;  %2190 = vmatpush.msra.mxu0 %v1604_v51  ;;  %v644_v5 = vld [vmem:[#allocation2 + $0x1198] sm:$0xff]  ;;  %v4360_v46 = vld.sshfl [vmem:[#allocation1 + $0x8] sm:$0xff pattern:$0x73625140] }
  0xee   :  { %2137 = vmatpush.msrb.mxu1 %v724_v19  ;;  %2175 = vmatpush.msra.mxu2 %v1268_v53  ;;  %v916_v6 = vld [vmem:[#allocation2 + $0x1a18] sm:$0xff]  ;;  %v805_v47 = vld [vmem:[#allocation2 + $0x16a0] sm:$0xff] }
  0xef   :  { %2156 = vmatpush.msra.mxu3 %v996_v52  ;;  %2191 = vmatpush.msra.mxu0 %v1588_v54  ;;  %v1188_v8 = vld [vmem:[#allocation2 + $0x2298] sm:$0xff]  ;;  %v261_v50 = vld [vmem:[#allocation2 + $0x5a0] sm:$0xff] }
  0xf0   :  { %2138 = vmatpush.msrb.mxu1 %v708_v55  ;;  %2176 = vmatpush.msra.mxu2 %v1252_v23  ;;  %v1508_v10 = vld [vmem:[#allocation2 + $0x2c98] sm:$0xff]  ;;  %v517_v51 = vld [vmem:[#allocation2 + $0xda0] sm:$0xff] }
  0xf1   :  { %2157 = vmatpush.msra.mxu3 %v980_v56  ;;  %2192 = vmatpush.msra.mxu0 %v1572_v57  ;;  %v628_v11 = vld [vmem:[#allocation2 + $0x1118] sm:$0xff]  ;;  %v789_v19 = vld [vmem:[#allocation2 + $0x1620] sm:$0xff] }
  0xf2   :  { %2139 = vmatpush.msrb.mxu1 %v692_v2  ;;  %2177 = vmatpush.msra.mxu2 %v1236_v59  ;;  %v900_v13 = vld [vmem:[#allocation2 + $0x1998] sm:$0xff]  ;;  %v245_v53 = vld [vmem:[#allocation2 + $0x520] sm:$0xff] }
  0xf3   :  { %2158 = vmatpush.msra.mxu3 %v964_v58  ;;  %2193 = vmatpush.msra.mxu0 %v1556_v60  ;;  %v1172_v14 = vld [vmem:[#allocation2 + $0x2218] sm:$0xff]  ;;  %v501_v54 = vld [vmem:[#allocation2 + $0xd20] sm:$0xff] }
  0xf4   :  { %2140 = vmatpush.msrb.mxu1 %v676_v61  ;;  %2178 = vmatpush.msra.mxu2 %v1220_v62  ;;  %v1492_v15 = vld [vmem:[#allocation2 + $0x2c18] sm:$0xff]  ;;  %v773_v55 = vld [vmem:[#allocation2 + $0x15a0] sm:$0xff] }
  0xf5   :  { %2159 = vmatpush.msra.mxu3 %v948_v9  ;;  %2194 = vmatpush.msra.mxu0 %v1540_v63  ;;  %v612_v16 = vld [vmem:[#allocation2 + $0x1098] sm:$0xff]  ;;  %v1093_v56 = vld [vmem:[#allocation2 + $0x1fa0] sm:$0xff] }
  0xf6   :  { %2141 = vmatpush.msrb.mxu1 %v660_v0  ;;  %2179 = vmatpush.msra.mxu2 %v1204_v3  ;;  %v884_v17 = vld [vmem:[#allocation2 + $0x1918] sm:$0xff]  ;;  %v229_v23 = vld [vmem:[#allocation2 + $0x4a0] sm:$0xff] }
  0xf7   :  { %2160 = vmatpush.msra.mxu3 %v932_v1  ;;  %2195 = vmatpush.msra.mxu0 %v1524_v4  ;;  %v1156_v18 = vld [vmem:[#allocation2 + $0x2198] sm:$0xff]  ;;  %v485_v57 = vld [vmem:[#allocation2 + $0xca0] sm:$0xff]  ;;  %v4369_v4 = vld.sshfl [vmem:[#allocation1 + $0x30] sm:$0xff pattern:$0x73625140] }
  0xf8   :  { %2142 = vmatpush.msrb.mxu1 %v644_v5  ;;  %2180 = vmatpush.msra.mxu2 %v1188_v8  ;;  %v1476_v20 = vld [vmem:[#allocation2 + $0x2b98] sm:$0xff]  ;;  %v757_v2 = vld [vmem:[#allocation2 + $0x1520] sm:$0xff] }
  0xf9   :  { %2161 = vmatpush.msra.mxu3 %v916_v6  ;;  %2196 = vmatpush.msra.mxu0 %v1508_v10  ;;  %v596_v21 = vld [vmem:[#allocation2 + $0x1018] sm:$0xff]  ;;  %v1077_v58 = vld [vmem:[#allocation2 + $0x1f20] sm:$0xff] }
  0xfa   :  { %2143 = vmatpush.msrb.mxu1 %v628_v11  ;;  %2181 = vmatpush.msra.mxu2 %v1172_v14  ;;  %v868_v22 = vld [vmem:[#allocation2 + $0x1898] sm:$0xff]  ;;  %v213_v59 = vld [vmem:[#allocation2 + $0x420] sm:$0xff] }
  0xfb   :  { %2162 = vmatpush.msra.mxu3 %v900_v13  ;;  %2197 = vmatpush.msra.mxu0 %v1492_v15  ;;  %v1140_v25 = vld [vmem:[#allocation2 + $0x2118] sm:$0xff]  ;;  %v469_v60 = vld [vmem:[#allocation2 + $0xc20] sm:$0xff] }
  0xfc   :  { %2144 = vmatpush.msrb.mxu1 %v612_v16  ;;  %2182 = vmatpush.msra.mxu2 %v1156_v18  ;;  %v1460_v26 = vld [vmem:[#allocation2 + $0x2b18] sm:$0xff]  ;;  %v741_v61 = vld [vmem:[#allocation2 + $0x14a0] sm:$0xff] }
  0xfd   :  { %2163 = vmatpush.msra.mxu3 %v884_v17  ;;  %2198 = vmatpush.msra.mxu0 %v1476_v20  ;;  %v1636_v27 = vld [vmem:[#allocation2 + $0x3098] sm:$0xff]  ;;  %v1061_v9 = vld [vmem:[#allocation2 + $0x1ea0] sm:$0xff] }
  0xfe   :  { %2145 = vmatpush.msrb.mxu1 %v596_v21  ;;  %v4351_v28 = vld.sshfl [vmem:[#allocation1] sm:$0xff pattern:$0x73625140]  ;;  %2183 = vmatpush.msra.mxu2 %v1140_v25  ;;  %v4366_v62 = vld.sshfl [vmem:[#allocation1 + $0x28] sm:$0xff pattern:$0x73625140] }
  0xff   :  { %2106 = vmatmul.f32.vlgmr.msrb.gmra.mxu2 %v4351_v28  ;;  %v852_v29 = vld [vmem:[#allocation2 + $0x1818] sm:$0xff]  ;;  %2164 = vmatpush.msra.mxu3 %v868_v22  ;;  %v197_v63 = vld [vmem:[#allocation2 + $0x3a0] sm:$0xff] }
 0x100   :  { %v1124_v30 = vld [vmem:[#allocation2 + $0x2098] sm:$0xff]  ;;  %2199 = vmatpush.msra.mxu0 %v1460_v26  ;;  %2224 = vmatpush.msra.mxu1 %v1636_v27  ;;  %v453_v0 = vld [vmem:[#allocation2 + $0xba0] sm:$0xff] }
 0x101   :  { %v1444_v31 = vld [vmem:[#allocation2 + $0x2a98] sm:$0xff]  ;;  %2165 = vmatpush.msra.mxu3 %v852_v29  ;;  %2184 = vmatpush.msra.mxu2 %v1124_v30  ;;  %v725_v1 = vld [vmem:[#allocation2 + $0x1420] sm:$0xff] }
 0x102   :  { %v1620_v32 = vld [vmem:[#allocation2 + $0x3018] sm:$0xff]  ;;  %2200 = vmatpush.msra.mxu0 %v1444_v31  ;;  %2146 = vmatmul.f32.vlgmr.msrb.gmra.mxu1 %v4354_v7  ;;  %v1045_v3 = vld [vmem:[#allocation2 + $0x1e20] sm:$0xff] }
 0x103   :  { %v1108_v35 = vld [vmem:[#allocation2 + $0x2018] sm:$0xff]  ;;  %2225 = vmatpush.msra.mxu1 %v1620_v32  ;;  %2230 = vmatpush.msrb.mxu3 %v325_v33  ;;  %v181_v5 = vld [vmem:[#allocation2 + $0x320] sm:$0xff] }
 0x104   :  { %v1428_v36 = vld [vmem:[#allocation2 + $0x2a18] sm:$0xff]  ;;  %2185 = vmatpush.msra.mxu2 %v1108_v35  ;;  %2166 = vmatmul.f32.vlgmr.msra.gmra.mxu3 %v4357_v44  ;;  %v437_v6 = vld [vmem:[#allocation2 + $0xb20] sm:$0xff] }
 0x105   :  { %2250 = vmatpush.msrb.mxu1 %v581_v34  ;;  %v1412_v40 = vld [vmem:[#allocation2 + $0x2998] sm:$0xff]  ;;  %2201 = vmatpush.msra.mxu0 %v1428_v36  ;;  %v709_v8 = vld [vmem:[#allocation2 + $0x13a0] sm:$0xff] }
 0x106   :  { %2231 = vmatpush.msrb.mxu3 %v309_v37  ;;  %2270 = vmatpush.msrb.mxu2 %v837_v39  ;;  %v1396_v12 = vld [vmem:[#allocation2 + $0x2918] sm:$0xff]  ;;  %v1029_v10 = vld [vmem:[#allocation2 + $0x1da0] sm:$0xff] }
 0x107   :  { %2251 = vmatpush.msrb.mxu1 %v565_v38  ;;  %2202 = vmatpush.msra.mxu0 %v1412_v40  ;;  %v1380_v48 = vld [vmem:[#allocation2 + $0x2898] sm:$0xff]  ;;  %v165_v11 = vld [vmem:[#allocation2 + $0x2a0] sm:$0xff] }
 0x108   :  { %2232 = vmatpush.msrb.mxu3 %v293_v41  ;;  %2271 = vmatpush.msrb.mxu2 %v821_v43  ;;  %v4363_v49 = vld.sshfl [vmem:[#allocation1 + $0x20] sm:$0xff pattern:$0x73625140]  ;;  %v421_v13 = vld [vmem:[#allocation2 + $0xaa0] sm:$0xff] }
 0x109   :  { %2252 = vmatpush.msrb.mxu1 %v549_v42  ;;  %2126 = vmatmul.f32.vlgmr.msrb.gmra.mxu0 %v4360_v46  ;;  %v1364_v52 = vld [vmem:[#allocation2 + $0x2818] sm:$0xff]  ;;  %v693_v14 = vld [vmem:[#allocation2 + $0x1320] sm:$0xff] }
 0x10a   :  { %2186 = vmatmul.f32.vlgmr.msra.gmra.mxu2 %v4363_v49  ;;  %2203 = vmatpush.msra.mxu0 %v1396_v12  ;;  %v1013_v15 = vld [vmem:[#allocation2 + $0x1d20] sm:$0xff] }
 0x10b   :  { %2233 = vmatpush.msrb.mxu3 %v277_v24  ;;  %2253 = vmatpush.msrb.mxu1 %v533_v45  ;;  %v149_v16 = vld [vmem:[#allocation2 + $0x220] sm:$0xff] }
 0x10c   :  { %2272 = vmatpush.msrb.mxu2 %v805_v47  ;;  %2204 = vmatpush.msra.mxu0 %v1380_v48  ;;  %v405_v17 = vld [vmem:[#allocation2 + $0xa20] sm:$0xff] }
 0x10d   :  { %2234 = vmatpush.msrb.mxu3 %v261_v50  ;;  %2254 = vmatpush.msrb.mxu1 %v517_v51  ;;  %v677_v18 = vld [vmem:[#allocation2 + $0x12a0] sm:$0xff] }
 0x10e   :  { %2273 = vmatpush.msrb.mxu2 %v789_v19  ;;  %2205 = vmatpush.msra.mxu0 %v1364_v52  ;;  %v997_v20 = vld [vmem:[#allocation2 + $0x1ca0] sm:$0xff]  ;;  %v582_v52 = vld [vmem:[#allocation2 + $0xfa8] sm:$0xff] }
 0x10f   :  { %2235 = vmatpush.msrb.mxu3 %v245_v53  ;;  %2255 = vmatpush.msrb.mxu1 %v501_v54  ;;  %v133_v21 = vld [vmem:[#allocation2 + $0x1a0] sm:$0xff] }
 0x110   :  { %2274 = vmatpush.msrb.mxu2 %v773_v55  ;;  %2290 = vmatpush.msrb.mxu0 %v1093_v56  ;;  %v389_v22 = vld [vmem:[#allocation2 + $0x9a0] sm:$0xff]  ;;  %v566_v56 = vld [vmem:[#allocation2 + $0xf28] sm:$0xff] }
 0x111   :  { %2236 = vmatpush.msrb.mxu3 %v229_v23  ;;  %2256 = vmatpush.msrb.mxu1 %v485_v57  ;;  %v661_v25 = vld [vmem:[#allocation2 + $0x1220] sm:$0xff] }
 0x112   :  { %2275 = vmatpush.msrb.mxu2 %v757_v2  ;;  %2291 = vmatpush.msrb.mxu0 %v1077_v58  ;;  %v981_v26 = vld [vmem:[#allocation2 + $0x1c20] sm:$0xff]  ;;  %v550_v58 = vld [vmem:[#allocation2 + $0xea8] sm:$0xff] }
 0x113   :  { %2206 = vmatmul.f32.vlgmr.msra.gmra.mxu0 %v4366_v62  ;;  %2237 = vmatpush.msrb.mxu3 %v213_v59  ;;  %v117_v27 = vld [vmem:[#allocation2 + $0x120] sm:$0xff] }
 0x114   :  { %2257 = vmatpush.msrb.mxu1 %v469_v60  ;;  %2276 = vmatpush.msrb.mxu2 %v741_v61  ;;  %v373_v29 = vld [vmem:[#allocation2 + $0x920] sm:$0xff]  ;;  %v326_v61 = vld [vmem:[#allocation2 + $0x7a8] sm:$0xff] }
 0x115   :  { %2292 = vmatpush.msrb.mxu0 %v1061_v9  ;;  %4100 = vmatmul.msk.f32.vlgmr.msra.gmra.mxu1 %vm1667_vm0, %v4369_v4  ;;  %v645_v30 = vld [vmem:[#allocation2 + $0x11a0] sm:$0xff]  ;;  %v534_v9 = vld [vmem:[#allocation2 + $0xe28] sm:$0xff] }
 0x116   :  { %2238 = vmatpush.msrb.mxu3 %v197_v63  ;;  %2258 = vmatpush.msrb.mxu1 %v453_v0  ;;  %v965_v31 = vld [vmem:[#allocation2 + $0x1ba0] sm:$0xff] }
 0x117   :  { %2277 = vmatpush.msrb.mxu2 %v725_v1  ;;  %2293 = vmatpush.msrb.mxu0 %v1045_v3  ;;  %v101_v32 = vld [vmem:[#allocation2 + $0xa0] sm:$0xff]  ;;  %v310_v1 = vld [vmem:[#allocation2 + $0x728] sm:$0xff] }
 0x118   :  { %2239 = vmatpush.msrb.mxu3 %v181_v5  ;;  %2259 = vmatpush.msrb.mxu1 %v437_v6  ;;  %v357_v33 = vld [vmem:[#allocation2 + $0x8a0] sm:$0xff]  ;;  %v518_v3 = vld [vmem:[#allocation2 + $0xda8] sm:$0xff] }
 0x119   :  { %2278 = vmatpush.msrb.mxu2 %v709_v8  ;;  %2294 = vmatpush.msrb.mxu0 %v1029_v10  ;;  %v629_v34 = vld [vmem:[#allocation2 + $0x1120] sm:$0xff]  ;;  %v294_v8 = vld [vmem:[#allocation2 + $0x6a8] sm:$0xff] }
 0x11a   :  { %2240 = vmatpush.msrb.mxu3 %v165_v11  ;;  %2260 = vmatpush.msrb.mxu1 %v421_v13  ;;  %v949_v35 = vld [vmem:[#allocation2 + $0x1b20] sm:$0xff]  ;;  %v502_v10 = vld [vmem:[#allocation2 + $0xd28] sm:$0xff] }
 0x11b   :  { %2279 = vmatpush.msrb.mxu2 %v693_v14  ;;  %2295 = vmatpush.msrb.mxu0 %v1013_v15  ;;  %v85_v36 = vld [vmem:[#allocation2 + $0x20] sm:$0xff]  ;;  %v278_v14 = vld [vmem:[#allocation2 + $0x628] sm:$0xff] }
 0x11c   :  { %2241 = vmatpush.msrb.mxu3 %v149_v16  ;;  %2261 = vmatpush.msrb.mxu1 %v405_v17  ;;  %v341_v37 = vld [vmem:[#allocation2 + $0x820] sm:$0xff]  ;;  %v486_v15 = vld [vmem:[#allocation2 + $0xca8] sm:$0xff] }
 0x11d   :  { %2280 = vmatpush.msrb.mxu2 %v677_v18  ;;  %2296 = vmatpush.msrb.mxu0 %v997_v20  ;;  %v613_v38 = vld [vmem:[#allocation2 + $0x10a0] sm:$0xff]  ;;  %v262_v18 = vld [vmem:[#allocation2 + $0x5a8] sm:$0xff] }
 0x11e   :  { %2242 = vmatpush.msrb.mxu3 %v133_v21  ;;  %2262 = vmatpush.msrb.mxu1 %v389_v22  ;;  %v933_v39 = vld [vmem:[#allocation2 + $0x1aa0] sm:$0xff]  ;;  %v470_v20 = vld [vmem:[#allocation2 + $0xc28] sm:$0xff] }
 0x11f   :  { %2281 = vmatpush.msrb.mxu2 %v661_v25  ;;  %2297 = vmatpush.msrb.mxu0 %v981_v26  ;;  %v1349_v40 = vld [vmem:[#allocation2 + $0x27a0] sm:$0xff]  ;;  %v246_v25 = vld [vmem:[#allocation2 + $0x528] sm:$0xff] }
 0x120   :  { %2243 = vmatpush.msrb.mxu3 %v117_v27  ;;  %2263 = vmatpush.msrb.mxu1 %v373_v29  ;;  %v1605_v41 = vld [vmem:[#allocation2 + $0x2fa0] sm:$0xff]  ;;  %v454_v26 = vld [vmem:[#allocation2 + $0xba8] sm:$0xff] }
 0x121   :  { %2282 = vmatpush.msrb.mxu2 %v645_v30  ;;  %2298 = vmatpush.msrb.mxu0 %v965_v31  ;;  %v597_v42 = vld [vmem:[#allocation2 + $0x1020] sm:$0xff]  ;;  %v230_v30 = vld [vmem:[#allocation2 + $0x4a8] sm:$0xff] }
 0x122   :  { %2244 = vmatpush.msrb.mxu3 %v101_v32  ;;  %2264 = vmatpush.msrb.mxu1 %v357_v33  ;;  %v917_v43 = vld [vmem:[#allocation2 + $0x1a20] sm:$0xff]  ;;  %v438_v31 = vld [vmem:[#allocation2 + $0xb28] sm:$0xff] }
 0x123   :  { %2283 = vmatpush.msrb.mxu2 %v629_v34  ;;  %2299 = vmatpush.msrb.mxu0 %v949_v35  ;;  %v1333_v12 = vld [vmem:[#allocation2 + $0x2720] sm:$0xff]  ;;  %v214_v34 = vld [vmem:[#allocation2 + $0x428] sm:$0xff] }
 0x124   :  { %2245 = vmatpush.msrb.mxu3 %v85_v36  ;;  %2265 = vmatpush.msrb.mxu1 %v341_v37  ;;  %v1589_v24 = vld [vmem:[#allocation2 + $0x2f20] sm:$0xff]  ;;  %v422_v35 = vld [vmem:[#allocation2 + $0xaa8] sm:$0xff] }
 0x125   :  { %2284 = vmatpush.msrb.mxu2 %v613_v38  ;;  %2300 = vmatpush.msrb.mxu0 %v933_v39  ;;  %v1637_v45 = vld [vmem:[#allocation2 + $0x30a0] sm:$0xff]  ;;  %v198_v38 = vld [vmem:[#allocation2 + $0x3a8] sm:$0xff] }
 0x126   :  { %2310 = vmatpush.msra.mxu3 %v1349_v40  ;;  %2330 = vmatpush.msra.mxu1 %v1605_v41  ;;  %v901_v47 = vld [vmem:[#allocation2 + $0x19a0] sm:$0xff]  ;;  %v406_v39 = vld [vmem:[#allocation2 + $0xa28] sm:$0xff] }
 0x127   :  { %2285 = vmatpush.msrb.mxu2 %v597_v42  ;;  %2301 = vmatpush.msrb.mxu0 %v917_v43  ;;  %v1317_v48 = vld [vmem:[#allocation2 + $0x26a0] sm:$0xff]  ;;  %v182_v42 = vld [vmem:[#allocation2 + $0x328] sm:$0xff] }
 0x128   :  { %2311 = vmatpush.msra.mxu3 %v1333_v12  ;;  %2331 = vmatpush.msra.mxu1 %v1589_v24  ;;  %v1573_v50 = vld [vmem:[#allocation2 + $0x2ea0] sm:$0xff]  ;;  %v390_v43 = vld [vmem:[#allocation2 + $0x9a8] sm:$0xff] }
 0x129   :  { %v1621_v51 = vld [vmem:[#allocation2 + $0x3020] sm:$0xff]  ;;  %2364 = vmatpush.msra.mxu2 %v1637_v45  ;;  %2246 = vmatmul.f32.vlgmr.msrb.gmra.mxu3 %v4351_v28  ;;  %v166_v45 = vld [vmem:[#allocation2 + $0x2a8] sm:$0xff] }
 0x12a   :  { %v885_v19 = vld [vmem:[#allocation2 + $0x1920] sm:$0xff]  ;;  %2302 = vmatpush.msrb.mxu0 %v901_v47  ;;  %2312 = vmatpush.msra.mxu3 %v1317_v48  ;;  %v374_v47 = vld [vmem:[#allocation2 + $0x928] sm:$0xff] }
 0x12b   :  { %v1301_v53 = vld [vmem:[#allocation2 + $0x2620] sm:$0xff]  ;;  %2332 = vmatpush.msra.mxu1 %v1573_v50  ;;  %2365 = vmatpush.msra.mxu2 %v1621_v51  ;;  %v838_v48 = vld [vmem:[#allocation2 + $0x17a8] sm:$0xff] }
 0x12c   :  { %v1557_v54 = vld [vmem:[#allocation2 + $0x2e20] sm:$0xff]  ;;  %2286 = vmatmul.f32.vlgmr.msrb.gmra.mxu2 %v4354_v7  ;;  %2303 = vmatpush.msrb.mxu0 %v885_v19  ;;  %v1094_v50 = vld [vmem:[#allocation2 + $0x1fa8] sm:$0xff] }
 0x12d   :  { %v869_v55 = vld [vmem:[#allocation2 + $0x18a0] sm:$0xff]  ;;  %2390 = vmatpush.msrb.mxu2 %v582_v52  ;;  %2313 = vmatpush.msra.mxu3 %v1301_v53  ;;  %v150_v51 = vld [vmem:[#allocation2 + $0x228] sm:$0xff] }
 0x12e   :  { %v1285_v23 = vld [vmem:[#allocation2 + $0x25a0] sm:$0xff]  ;;  %2333 = vmatpush.msra.mxu1 %v1557_v54  ;;  %2304 = vmatpush.msrb.mxu0 %v869_v55  ;;  %v358_v19 = vld [vmem:[#allocation2 + $0x8a8] sm:$0xff] }
 0x12f   :  { %v1541_v57 = vld [vmem:[#allocation2 + $0x2da0] sm:$0xff]  ;;  %2391 = vmatpush.msrb.mxu2 %v566_v56  ;;  %2314 = vmatpush.msra.mxu3 %v1285_v23  ;;  %v822_v52 = vld [vmem:[#allocation2 + $0x1728] sm:$0xff] }
 0x130   :  { %v853_v2 = vld [vmem:[#allocation2 + $0x1820] sm:$0xff]  ;;  %2334 = vmatpush.msra.mxu1 %v1541_v57  ;;  %v1078_v53 = vld [vmem:[#allocation2 + $0x1f28] sm:$0xff] }
 0x131   :  { %v1269_v59 = vld [vmem:[#allocation2 + $0x2520] sm:$0xff]  ;;  %2305 = vmatpush.msrb.mxu0 %v853_v2  ;;  %2266 = vmatmul.f32.vlgmr.msrb.gmra.mxu1 %v4360_v46  ;;  %v134_v54 = vld [vmem:[#allocation2 + $0x1a8] sm:$0xff] }
 0x132   :  { %v1525_v60 = vld [vmem:[#allocation2 + $0x2d20] sm:$0xff]  ;;  %2392 = vmatpush.msrb.mxu2 %v550_v58  ;;  %2315 = vmatpush.msra.mxu3 %v1269_v59  ;;  %v342_v55 = vld [vmem:[#allocation2 + $0x828] sm:$0xff] }
 0x133   :  { %v1253_v63 = vld [vmem:[#allocation2 + $0x24a0] sm:$0xff]  ;;  %2335 = vmatpush.msra.mxu1 %v1525_v60  ;;  %2370 = vmatpush.msra.mxu0 %v326_v61  ;;  %v806_v56 = vld [vmem:[#allocation2 + $0x16a8] sm:$0xff] }
 0x134   :  { %v1509_v0 = vld [vmem:[#allocation2 + $0x2ca0] sm:$0xff]  ;;  %2393 = vmatpush.msrb.mxu2 %v534_v9  ;;  %2316 = vmatpush.msra.mxu3 %v1253_v63  ;;  %v1062_v23 = vld [vmem:[#allocation2 + $0x1ea8] sm:$0xff] }
 0x135   :  { %v1237_v5 = vld [vmem:[#allocation2 + $0x2420] sm:$0xff]  ;;  %2336 = vmatpush.msra.mxu1 %v1509_v0  ;;  %2371 = vmatpush.msra.mxu0 %v310_v1  ;;  %v118_v57 = vld [vmem:[#allocation2 + $0x128] sm:$0xff] }
 0x136   :  { %v1493_v6 = vld [vmem:[#allocation2 + $0x2c20] sm:$0xff]  ;;  %2394 = vmatpush.msrb.mxu2 %v518_v3  ;;  %2306 = vmatmul.f32.vlgmr.msrb.gmra.mxu0 %v4357_v44  ;;  %v1606_v2 = vld [vmem:[#allocation2 + $0x2fa8] sm:$0xff] }
 0x137   :  { %v1221_v11 = vld [vmem:[#allocation2 + $0x23a0] sm:$0xff]  ;;  %2317 = vmatpush.msra.mxu3 %v1237_v5  ;;  %2337 = vmatpush.msra.mxu1 %v1493_v6  ;;  %v790_v58 = vld [vmem:[#allocation2 + $0x1628] sm:$0xff] }
 0x138   :  { %v1477_v13 = vld [vmem:[#allocation2 + $0x2ba0] sm:$0xff]  ;;  %2372 = vmatpush.msra.mxu0 %v294_v8  ;;  %2395 = vmatpush.msrb.mxu2 %v502_v10  ;;  %v1046_v59 = vld [vmem:[#allocation2 + $0x1e28] sm:$0xff] }
 0x139   :  { %v1205_v16 = vld [vmem:[#allocation2 + $0x2320] sm:$0xff]  ;;  %2318 = vmatpush.msra.mxu3 %v1221_v11  ;;  %2338 = vmatpush.msra.mxu1 %v1477_v13  ;;  %v102_v60 = vld [vmem:[#allocation2 + $0xa8] sm:$0xff] }
 0x13a   :  { %v1461_v17 = vld [vmem:[#allocation2 + $0x2b20] sm:$0xff]  ;;  %2373 = vmatpush.msra.mxu0 %v278_v14  ;;  %2396 = vmatpush.msrb.mxu2 %v486_v15  ;;  %v1590_v61 = vld [vmem:[#allocation2 + $0x2f28] sm:$0xff] }
 0x13b   :  { %v1189_v21 = vld [vmem:[#allocation2 + $0x22a0] sm:$0xff]  ;;  %2319 = vmatpush.msra.mxu3 %v1205_v16  ;;  %2339 = vmatpush.msra.mxu1 %v1461_v17  ;;  %v774_v9 = vld [vmem:[#allocation2 + $0x15a8] sm:$0xff]  ;;  %v4381_v17 = vpop.f32.mrf.mxu3 }
 0x13c   :  { %v1445_v22 = vld [vmem:[#allocation2 + $0x2aa0] sm:$0xff]  ;;  %2374 = vmatpush.msra.mxu0 %v262_v18  ;;  %2397 = vmatpush.msrb.mxu2 %v470_v20  ;;  %v1030_v63 = vld [vmem:[#allocation2 + $0x1da8] sm:$0xff] }
 0x13d   :  { %v1173_v27 = vld [vmem:[#allocation2 + $0x2220] sm:$0xff]  ;;  %2320 = vmatpush.msra.mxu3 %v1189_v21  ;;  %2340 = vmatpush.msra.mxu1 %v1445_v22  ;;  %v86_v0 = vld [vmem:[#allocation2 + $0x28] sm:$0xff] }
 0x13e   :  { %v1429_v29 = vld [vmem:[#allocation2 + $0x2a20] sm:$0xff]  ;;  %2375 = vmatpush.msra.mxu0 %v246_v25  ;;  %2398 = vmatpush.msrb.mxu2 %v454_v26  ;;  %v1574_v1 = vld [vmem:[#allocation2 + $0x2ea8] sm:$0xff] }
 0x13f   :  { %v1157_v32 = vld [vmem:[#allocation2 + $0x21a0] sm:$0xff]  ;;  %2321 = vmatpush.msra.mxu3 %v1173_v27  ;;  %2341 = vmatpush.msra.mxu1 %v1429_v29  ;;  %v758_v3 = vld [vmem:[#allocation2 + $0x1528] sm:$0xff]  ;;  %v4383_v27 = vpop.f32.mrf.mxu2 }
 0x140   :  { %v1413_v33 = vld [vmem:[#allocation2 + $0x29a0] sm:$0xff]  ;;  %2376 = vmatpush.msra.mxu0 %v230_v30  ;;  %2399 = vmatpush.msrb.mxu2 %v438_v31  ;;  %v1014_v5 = vld [vmem:[#allocation2 + $0x1d28] sm:$0xff] }
 0x141   :  { %v1141_v36 = vld [vmem:[#allocation2 + $0x2120] sm:$0xff]  ;;  %2322 = vmatpush.msra.mxu3 %v1157_v32  ;;  %2342 = vmatpush.msra.mxu1 %v1413_v33  ;;  %v1350_v6 = vld [vmem:[#allocation2 + $0x27a8] sm:$0xff] }
 0x142   :  { %v1397_v37 = vld [vmem:[#allocation2 + $0x2920] sm:$0xff]  ;;  %2377 = vmatpush.msra.mxu0 %v214_v34  ;;  %2400 = vmatpush.msrb.mxu2 %v422_v35  ;;  %v1558_v8 = vld [vmem:[#allocation2 + $0x2e28] sm:$0xff] }
 0x143   :  { %v1125_v40 = vld [vmem:[#allocation2 + $0x20a0] sm:$0xff]  ;;  %2323 = vmatpush.msra.mxu3 %v1141_v36  ;;  %2343 = vmatpush.msra.mxu1 %v1397_v37  ;;  %v742_v10 = vld [vmem:[#allocation2 + $0x14a8] sm:$0xff]  ;;  %v4385_v37 = vpop.f32.mrf.mxu0 }
 0x144   :  { %v1381_v41 = vld [vmem:[#allocation2 + $0x28a0] sm:$0xff]  ;;  %2378 = vmatpush.msra.mxu0 %v198_v38  ;;  %2401 = vmatpush.msrb.mxu2 %v406_v39  ;;  %v998_v11 = vld [vmem:[#allocation2 + $0x1ca8] sm:$0xff] }
 0x145   :  { %v1109_v12 = vld [vmem:[#allocation2 + $0x2020] sm:$0xff]  ;;  %2324 = vmatpush.msra.mxu3 %v1125_v40  ;;  %2344 = vmatpush.msra.mxu1 %v1381_v41  ;;  %v1334_v13 = vld [vmem:[#allocation2 + $0x2728] sm:$0xff]  ;;  %v4387_v40 = vpop.f32.mrf.mxu1  ;;  %v4389_v41 = vpop.f32.mrf.mxu3 }
 0x146   :  { %v1365_v24 = vld [vmem:[#allocation2 + $0x2820] sm:$0xff]  ;;  %2379 = vmatpush.msra.mxu0 %v182_v42  ;;  %2402 = vmatpush.msrb.mxu2 %v390_v43  ;;  %v1542_v14 = vld [vmem:[#allocation2 + $0x2da8] sm:$0xff] }
 0x147   :  { %2325 = vmatpush.msra.mxu3 %v1109_v12  ;;  %2345 = vmatpush.msra.mxu1 %v1365_v24  ;;  %v726_v15 = vld [vmem:[#allocation2 + $0x1428] sm:$0xff] }
 0x148   :  { %2380 = vmatpush.msra.mxu0 %v166_v45  ;;  %2326 = vmatmul.f32.vlgmr.msra.gmra.mxu3 %v4363_v49  ;;  %v982_v16 = vld [vmem:[#allocation2 + $0x1c28] sm:$0xff] }
 0x149   :  { %2403 = vmatpush.msrb.mxu2 %v374_v47  ;;  %2410 = vmatpush.msrb.mxu3 %v838_v48  ;;  %v1318_v18 = vld [vmem:[#allocation2 + $0x26a8] sm:$0xff]  ;;  %v4391_v48 = vpop.f32.mrf.mxu2 }
 0x14a   :  { %2430 = vmatpush.msrb.mxu1 %v1094_v50  ;;  %2381 = vmatpush.msra.mxu0 %v150_v51  ;;  %v1526_v20 = vld [vmem:[#allocation2 + $0x2d28] sm:$0xff] }
 0x14b   :  { %2404 = vmatpush.msrb.mxu2 %v358_v19  ;;  %2411 = vmatpush.msrb.mxu3 %v822_v52  ;;  %v710_v21 = vld [vmem:[#allocation2 + $0x13a8] sm:$0xff] }
 0x14c   :  { %2431 = vmatpush.msrb.mxu1 %v1078_v53  ;;  %2382 = vmatpush.msra.mxu0 %v134_v54  ;;  %v966_v22 = vld [vmem:[#allocation2 + $0x1ba8] sm:$0xff] }
 0x14d   :  { %4101 = vmatmul.msk.f32.vlgmr.msra.gmra.mxu2 %vm1667_vm0, %v4369_v4  ;;  %2412 = vmatpush.msrb.mxu3 %v806_v56  ;;  %v1302_v25 = vld [vmem:[#allocation2 + $0x2628] sm:$0xff] }
 0x14e   :  { %2405 = vmatpush.msrb.mxu2 %v342_v55  ;;  %2432 = vmatpush.msrb.mxu1 %v1062_v23  ;;  %v1510_v26 = vld [vmem:[#allocation2 + $0x2ca8] sm:$0xff] }
 0x14f   :  { %2383 = vmatpush.msra.mxu0 %v118_v57  ;;  %2413 = vmatpush.msrb.mxu3 %v790_v58  ;;  %v694_v29 = vld [vmem:[#allocation2 + $0x1328] sm:$0xff]  ;;  %v4393_v57 = vpop.f32.mrf.mxu0 }
 0x150   :  { %2470 = vmatpush.msra.mxu2 %v1606_v2  ;;  %2433 = vmatpush.msrb.mxu1 %v1046_v59  ;;  %v950_v30 = vld [vmem:[#allocation2 + $0x1b28] sm:$0xff]  ;;  %v4395_v2 = vpop.f32.mrf.mxu1 }
 0x151   :  { %2384 = vmatpush.msra.mxu0 %v102_v60  ;;  %2346 = vmatmul.f32.vlgmr.msra.gmra.mxu1 %v4366_v62  ;;  %v1286_v31 = vld [vmem:[#allocation2 + $0x25a8] sm:$0xff] }
 0x152   :  { %2471 = vmatpush.msra.mxu2 %v1590_v61  ;;  %2414 = vmatpush.msrb.mxu3 %v774_v9  ;;  %v1494_v32 = vld [vmem:[#allocation2 + $0x2c28] sm:$0xff]  ;;  %v4398_v61 = vpop.f32.mrf.mxu3 }
 0x153   :  { %2434 = vmatpush.msrb.mxu1 %v1030_v63  ;;  %2385 = vmatpush.msra.mxu0 %v86_v0  ;;  %v678_v33 = vld [vmem:[#allocation2 + $0x12a8] sm:$0xff]  ;;  %v327_v63 = vld [vmem:[#allocation2 + $0x7b0] sm:$0xff]  ;;  %v4400_v0 = vpop.f32.mrf.mxu2 }
 0x154   :  { %2472 = vmatpush.msra.mxu2 %v1574_v1  ;;  %2415 = vmatpush.msrb.mxu3 %v758_v3  ;;  %v934_v34 = vld [vmem:[#allocation2 + $0x1aa8] sm:$0xff] }
 0x155   :  { %2435 = vmatpush.msrb.mxu1 %v1014_v5  ;;  %2450 = vmatpush.msrb.mxu0 %v1350_v6  ;;  %v1270_v35 = vld [vmem:[#allocation2 + $0x2528] sm:$0xff] }
 0x156   :  { %2473 = vmatpush.msra.mxu2 %v1558_v8  ;;  %2416 = vmatpush.msrb.mxu3 %v742_v10  ;;  %v1478_v36 = vld [vmem:[#allocation2 + $0x2ba8] sm:$0xff]  ;;  %v583_v8 = vld [vmem:[#allocation2 + $0xfb0] sm:$0xff] }
 0x157   :  { %2436 = vmatpush.msrb.mxu1 %v998_v11  ;;  %2451 = vmatpush.msrb.mxu0 %v1334_v13  ;;  %v662_v38 = vld [vmem:[#allocation2 + $0x1228] sm:$0xff]  ;;  %v295_v11 = vld [vmem:[#allocation2 + $0x6b0] sm:$0xff] }
 0x158   :  { %2474 = vmatpush.msra.mxu2 %v1542_v14  ;;  %2417 = vmatpush.msrb.mxu3 %v726_v15  ;;  %v918_v39 = vld [vmem:[#allocation2 + $0x1a28] sm:$0xff]  ;;  %v4404_v14 = vpop.f32.mrf.mxu0  ;;  %v4406_v15 = vpop.f32.mrf.mxu1 }
 0x159   :  { %2437 = vmatpush.msrb.mxu1 %v982_v16  ;;  %2452 = vmatpush.msrb.mxu0 %v1318_v18  ;;  %v1254_v42 = vld [vmem:[#allocation2 + $0x24a8] sm:$0xff]  ;;  %v1095_v16 = vld [vmem:[#allocation2 + $0x1fb0] sm:$0xff] }
 0x15a   :  { %2475 = vmatpush.msra.mxu2 %v1526_v20  ;;  %2418 = vmatpush.msrb.mxu3 %v710_v21  ;;  %v1462_v43 = vld [vmem:[#allocation2 + $0x2b28] sm:$0xff]  ;;  %v279_v18 = vld [vmem:[#allocation2 + $0x630] sm:$0xff] }
 0x15b   :  { %2438 = vmatpush.msrb.mxu1 %v966_v22  ;;  %2453 = vmatpush.msrb.mxu0 %v1302_v25  ;;  %v646_v12 = vld [vmem:[#allocation2 + $0x11a8] sm:$0xff]  ;;  %v551_v21 = vld [vmem:[#allocation2 + $0xeb0] sm:$0xff]  ;;  %v4408_v22 = vpop.f32.mrf.mxu3 }
 0x15c   :  { %2476 = vmatpush.msra.mxu2 %v1510_v26  ;;  %2419 = vmatpush.msrb.mxu3 %v694_v29  ;;  %v902_v24 = vld [vmem:[#allocation2 + $0x19a8] sm:$0xff]  ;;  %v263_v25 = vld [vmem:[#allocation2 + $0x5b0] sm:$0xff]  ;;  %v4411_v26 = vpop.f32.mrf.mxu2 }
 0x15d   :  { %2439 = vmatpush.msrb.mxu1 %v950_v30  ;;  %2454 = vmatpush.msrb.mxu0 %v1286_v31  ;;  %v1238_v45 = vld [vmem:[#allocation2 + $0x2428] sm:$0xff]  ;;  %v535_v30 = vld [vmem:[#allocation2 + $0xe30] sm:$0xff] }
 0x15e   :  { %2477 = vmatpush.msra.mxu2 %v1494_v32  ;;  %2420 = vmatpush.msrb.mxu3 %v678_v33  ;;  %v1446_v47 = vld [vmem:[#allocation2 + $0x2aa8] sm:$0xff]  ;;  %v1063_v31 = vld [vmem:[#allocation2 + $0x1eb0] sm:$0xff] }
 0x15f   :  { %2440 = vmatpush.msrb.mxu1 %v934_v34  ;;  %2455 = vmatpush.msrb.mxu0 %v1270_v35  ;;  %v630_v50 = vld [vmem:[#allocation2 + $0x1128] sm:$0xff]  ;;  %v247_v32 = vld [vmem:[#allocation2 + $0x530] sm:$0xff] }
 0x160   :  { %2478 = vmatpush.msra.mxu2 %v1478_v36  ;;  %2421 = vmatpush.msrb.mxu3 %v662_v38  ;;  %v886_v51 = vld [vmem:[#allocation2 + $0x1928] sm:$0xff]  ;;  %v839_v33 = vld [vmem:[#allocation2 + $0x17b0] sm:$0xff]  ;;  %v4416_v34 = vpop.f32.mrf.mxu1 }
 0x161   :  { %2441 = vmatpush.msrb.mxu1 %v918_v39  ;;  %2456 = vmatpush.msrb.mxu0 %v1254_v42  ;;  %v1222_v19 = vld [vmem:[#allocation2 + $0x23a8] sm:$0xff]  ;;  %v519_v35 = vld [vmem:[#allocation2 + $0xdb0] sm:$0xff] }
 0x162   :  { %2479 = vmatpush.msra.mxu2 %v1462_v43  ;;  %2422 = vmatpush.msrb.mxu3 %v646_v12  ;;  %v1430_v52 = vld [vmem:[#allocation2 + $0x2a28] sm:$0xff]  ;;  %v1047_v36 = vld [vmem:[#allocation2 + $0x1e30] sm:$0xff] }
 0x163   :  { %2442 = vmatpush.msrb.mxu1 %v902_v24  ;;  %2457 = vmatpush.msrb.mxu0 %v1238_v45  ;;  %v614_v53 = vld [vmem:[#allocation2 + $0x10a8] sm:$0xff]  ;;  %v231_v38 = vld [vmem:[#allocation2 + $0x4b0] sm:$0xff]  ;;  %v4421_v12 = vpop.f32.mrf.mxu3 }
 0x164   :  { %2480 = vmatpush.msra.mxu2 %v1446_v47  ;;  %v870_v54 = vld [vmem:[#allocation2 + $0x18a8] sm:$0xff]  ;;  %2423 = vmatpush.msrb.mxu3 %v630_v50  ;;  %v503_v39 = vld [vmem:[#allocation2 + $0xd30] sm:$0xff]  ;;  %v4423_v47 = vpop.f32.mrf.mxu2 }
 0x165   :  { %2443 = vmatpush.msrb.mxu1 %v886_v51  ;;  %v1206_v55 = vld [vmem:[#allocation2 + $0x2328] sm:$0xff]  ;;  %2458 = vmatpush.msrb.mxu0 %v1222_v19  ;;  %v215_v42 = vld [vmem:[#allocation2 + $0x430] sm:$0xff] }
 0x166   :  { %2481 = vmatpush.msra.mxu2 %v1430_v52  ;;  %v1414_v56 = vld [vmem:[#allocation2 + $0x29a8] sm:$0xff]  ;;  %2424 = vmatpush.msrb.mxu3 %v614_v53  ;;  %v807_v43 = vld [vmem:[#allocation2 + $0x16b0] sm:$0xff] }
 0x167   :  { %v598_v23 = vld [vmem:[#allocation2 + $0x1028] sm:$0xff]  ;;  %2444 = vmatpush.msrb.mxu1 %v870_v54  ;;  %2459 = vmatpush.msrb.mxu0 %v1206_v55  ;;  %v487_v24 = vld [vmem:[#allocation2 + $0xcb0] sm:$0xff] }
 0x168   :  { %v854_v58 = vld [vmem:[#allocation2 + $0x1828] sm:$0xff]  ;;  %2406 = vmatmul.f32.vlgmr.msrb.gmra.mxu2 %v4360_v46  ;;  %2425 = vmatpush.msrb.mxu3 %v598_v23  ;;  %v311_v46 = vld [vmem:[#allocation2 + $0x730] sm:$0xff]  ;;  %v4425_v54 = vpop.f32.mrf.mxu1 }
 0x169   :  { %v1190_v59 = vld [vmem:[#allocation2 + $0x22a8] sm:$0xff]  ;;  %2482 = vmatpush.msra.mxu2 %v1414_v56  ;;  %2445 = vmatpush.msrb.mxu1 %v854_v58  ;;  %v1015_v45 = vld [vmem:[#allocation2 + $0x1d30] sm:$0xff] }
 0x16a   :  { %v1398_v60 = vld [vmem:[#allocation2 + $0x2928] sm:$0xff]  ;;  %2460 = vmatpush.msrb.mxu0 %v1190_v59  ;;  %2426 = vmatmul.f32.vlgmr.msrb.gmra.mxu3 %v4354_v7  ;;  %v567_v7 = vld [vmem:[#allocation2 + $0xf30] sm:$0xff] }
 0x16b   :  { %v1638_v9 = vld [vmem:[#allocation2 + $0x30a8] sm:$0xff]  ;;  %2483 = vmatpush.msra.mxu2 %v1398_v60  ;;  %2510 = vmatpush.msra.mxu1 %v327_v63  ;;  %v791_v50 = vld [vmem:[#allocation2 + $0x1630] sm:$0xff] }
 0x16c   :  { %v1174_v1 = vld [vmem:[#allocation2 + $0x2228] sm:$0xff]  ;;  %2504 = vmatpush.msra.mxu3 %v1638_v9  ;;  %2386 = vmatmul.f32.vlgmr.msra.gmra.mxu0 %v4351_v28  ;;  %v1079_v28 = vld [vmem:[#allocation2 + $0x1f30] sm:$0xff] }
 0x16d   :  { %v1382_v3 = vld [vmem:[#allocation2 + $0x28a8] sm:$0xff]  ;;  %2461 = vmatpush.msrb.mxu0 %v1174_v1  ;;  %2511 = vmatpush.msra.mxu1 %v311_v46  ;;  %v471_v51 = vld [vmem:[#allocation2 + $0xc30] sm:$0xff] }
 0x16e   :  { %v1622_v5 = vld [vmem:[#allocation2 + $0x3028] sm:$0xff]  ;;  %2484 = vmatpush.msra.mxu2 %v1382_v3  ;;  %2446 = vmatmul.f32.vlgmr.msrb.gmra.mxu1 %v4357_v44  ;;  %v823_v44 = vld [vmem:[#allocation2 + $0x1730] sm:$0xff]  ;;  %v4429_v3 = vpop.f32.mrf.mxu3 }
 0x16f   :  { %v1158_v6 = vld [vmem:[#allocation2 + $0x21a8] sm:$0xff]  ;;  %2505 = vmatpush.msra.mxu3 %v1622_v5  ;;  %2512 = vmatpush.msra.mxu1 %v295_v11  ;;  %v999_v19 = vld [vmem:[#allocation2 + $0x1cb0] sm:$0xff] }
 0x170   :  { %v1366_v10 = vld [vmem:[#allocation2 + $0x2828] sm:$0xff]  ;;  %2462 = vmatpush.msrb.mxu0 %v1158_v6  ;;  %v183_v52 = vld [vmem:[#allocation2 + $0x330] sm:$0xff] }
 0x171   :  { %v1142_v13 = vld [vmem:[#allocation2 + $0x2128] sm:$0xff]  ;;  %2530 = vmatpush.msrb.mxu3 %v583_v8  ;;  %2485 = vmatpush.msra.mxu2 %v1366_v10  ;;  %v775_v53 = vld [vmem:[#allocation2 + $0x15b0] sm:$0xff] }
 0x172   :  { %2463 = vmatpush.msrb.mxu0 %v1142_v13  ;;  %v1126_v20 = vld [vmem:[#allocation2 + $0x20a8] sm:$0xff]  ;;  %2486 = vmatmul.f32.vlgmr.msra.gmra.mxu2 %v4366_v62  ;;  %v4418_v62 = vpop.f32.mrf.mxu0  ;;  %v455_v56 = vld [vmem:[#allocation2 + $0xbb0] sm:$0xff] }
 0x173   :  { %2531 = vmatpush.msrb.mxu3 %v567_v7  ;;  %2570 = vmatpush.msrb.mxu2 %v1095_v16  ;;  %v1110_v29 = vld [vmem:[#allocation2 + $0x2028] sm:$0xff]  ;;  %v983_v23 = vld [vmem:[#allocation2 + $0x1c30] sm:$0xff] }
 0x174   :  { %2513 = vmatpush.msra.mxu1 %v279_v18  ;;  %2464 = vmatpush.msrb.mxu0 %v1126_v20  ;;  %v167_v58 = vld [vmem:[#allocation2 + $0x2b0] sm:$0xff] }
 0x175   :  { %2532 = vmatpush.msrb.mxu3 %v551_v21  ;;  %2571 = vmatpush.msrb.mxu2 %v1079_v28  ;;  %v759_v59 = vld [vmem:[#allocation2 + $0x1530] sm:$0xff] }
 0x176   :  { %4102 = vmatmul.msk.f32.vlgmr.msra.gmra.mxu3 %vm1667_vm0, %v4369_v4  ;;  %2514 = vmatpush.msra.mxu1 %v263_v25  ;;  %v1031_v4 = vld [vmem:[#allocation2 + $0x1db0] sm:$0xff] }
 0x177   :  { %2465 = vmatpush.msrb.mxu0 %v1110_v29  ;;  %2533 = vmatpush.msrb.mxu3 %v535_v30  ;;  %v439_v60 = vld [vmem:[#allocation2 + $0xb30] sm:$0xff] }
 0x178   :  { %2572 = vmatpush.msrb.mxu2 %v1063_v31  ;;  %2466 = vmatmul.f32.vlgmr.msrb.gmra.mxu0 %v4363_v49  ;;  %v199_v49 = vld [vmem:[#allocation2 + $0x3b0] sm:$0xff] }
 0x179   :  { %2515 = vmatpush.msra.mxu1 %v247_v32  ;;  %2550 = vmatpush.msra.mxu0 %v839_v33  ;;  %v967_v9 = vld [vmem:[#allocation2 + $0x1bb0] sm:$0xff] }
 0x17a   :  { %2534 = vmatpush.msrb.mxu3 %v519_v35  ;;  %2573 = vmatpush.msrb.mxu2 %v1047_v36  ;;  %v4427_v55 = vpop.f32.mrf.mxu0  ;;  %v151_v63 = vld [vmem:[#allocation2 + $0x230] sm:$0xff] }
 0x17b   :  { %2516 = vmatpush.msra.mxu1 %v231_v38  ;;  %2551 = vmatpush.msra.mxu0 %v823_v44  ;;  %v743_v1 = vld [vmem:[#allocation2 + $0x14b0] sm:$0xff] }
 0x17c   :  { %2535 = vmatpush.msrb.mxu3 %v503_v39  ;;  %2574 = vmatpush.msrb.mxu2 %v1031_v4  ;;  %v423_v5 = vld [vmem:[#allocation2 + $0xab0] sm:$0xff] }
 0x17d   :  { %2517 = vmatpush.msra.mxu1 %v215_v42  ;;  %2552 = vmatpush.msra.mxu0 %v807_v43  ;;  %v951_v46 = vld [vmem:[#allocation2 + $0x1b30] sm:$0xff] }
 0x17e   :  { %2536 = vmatpush.msrb.mxu3 %v487_v24  ;;  %2575 = vmatpush.msrb.mxu2 %v1015_v45  ;;  %v135_v6 = vld [vmem:[#allocation2 + $0x1b0] sm:$0xff] }
 0x17f   :  { %2518 = vmatpush.msra.mxu1 %v199_v49  ;;  %2553 = vmatpush.msra.mxu0 %v791_v50  ;;  %v727_v8 = vld [vmem:[#allocation2 + $0x1430] sm:$0xff]  ;;  %v2147_v28 = vpop.f32.mrf.mxu1 }
 0x180   :  { %2537 = vmatpush.msrb.mxu3 %v471_v51  ;;  %2576 = vmatpush.msrb.mxu2 %v999_v19  ;;  %v407_v11 = vld [vmem:[#allocation2 + $0xa30] sm:$0xff] }
 0x181   :  { %2519 = vmatpush.msra.mxu1 %v183_v52  ;;  %2554 = vmatpush.msra.mxu0 %v775_v53  ;;  %v935_v13 = vld [vmem:[#allocation2 + $0x1ab0] sm:$0xff] }
 0x182   :  { %2538 = vmatpush.msrb.mxu3 %v455_v56  ;;  %2577 = vmatpush.msrb.mxu2 %v983_v23  ;;  %v2107_v10 = vpop.f32.mrf.mxu2  ;;  %v119_v7 = vld [vmem:[#allocation2 + $0x130] sm:$0xff] }
 0x183   :  { %2520 = vmatpush.msra.mxu1 %v167_v58  ;;  %2555 = vmatpush.msra.mxu0 %v759_v59  ;;  %v711_v16 = vld [vmem:[#allocation2 + $0x13b0] sm:$0xff] }
 0x184   :  { %2539 = vmatpush.msrb.mxu3 %v439_v60  ;;  %2578 = vmatpush.msrb.mxu2 %v967_v9  ;;  %v391_v18 = vld [vmem:[#allocation2 + $0x9b0] sm:$0xff]  ;;  %v328_v60 = vld [vmem:[#allocation2 + $0x7b8] sm:$0xff] }
 0x185   :  { %2521 = vmatpush.msra.mxu1 %v151_v63  ;;  %2556 = vmatpush.msra.mxu0 %v743_v1  ;;  %v919_v20 = vld [vmem:[#allocation2 + $0x1a30] sm:$0xff]  ;;  %v4431_v1 = vld.sshfl [vmem:[#allocation1 + $0x8] sm:$0xff pattern:$0x73625140] }
 0x186   :  { %2540 = vmatpush.msrb.mxu3 %v423_v5  ;;  %2579 = vmatpush.msrb.mxu2 %v951_v46  ;;  %v2127_v21 = vpop.f32.mrf.mxu0  ;;  %v103_v25 = vld [vmem:[#allocation2 + $0xb0] sm:$0xff] }
 0x187   :  { %2522 = vmatpush.msra.mxu1 %v135_v6  ;;  %2557 = vmatpush.msra.mxu0 %v727_v8  ;;  %v695_v29 = vld [vmem:[#allocation2 + $0x1330] sm:$0xff]  ;;  %v2128_v30 = vadd.f32 %v2127_v21, %v2107_v10  ;;  %v2167_v39 = vpop.f32.mrf.mxu3  ;;  %v312_v8 = vld [vmem:[#allocation2 + $0x738] sm:$0xff] }
 0x188   :  { %2541 = vmatpush.msrb.mxu3 %v407_v11  ;;  %2580 = vmatpush.msrb.mxu2 %v935_v13  ;;  %v375_v31 = vld [vmem:[#allocation2 + $0x930] sm:$0xff] }
 0x189   :  { %2523 = vmatpush.msra.mxu1 %v119_v7  ;;  %2558 = vmatpush.msra.mxu0 %v711_v16  ;;  %v903_v32 = vld [vmem:[#allocation2 + $0x19b0] sm:$0xff]  ;;  %v2148_v36 = vadd.f32 %v2147_v28, %v2128_v30  ;;  %v296_v16 = vld [vmem:[#allocation2 + $0x6b8] sm:$0xff] }
 0x18a   :  { %2542 = vmatpush.msrb.mxu3 %v391_v18  ;;  %2581 = vmatpush.msrb.mxu2 %v919_v20  ;;  %v87_v33 = vld [vmem:[#allocation2 + $0x30] sm:$0xff] }
 0x18b   :  { %v679_v35 = vld [vmem:[#allocation2 + $0x12b0] sm:$0xff]  ;;  %2524 = vmatpush.msra.mxu1 %v103_v25  ;;  %2559 = vmatpush.msra.mxu0 %v695_v29  ;;  %v2168_v43 = vadd.f32 %v2167_v39, %v2148_v36  ;;  %v280_v25 = vld [vmem:[#allocation2 + $0x638] sm:$0xff]  ;;  %v4442_v39 = vld.sshfl [vmem:[#allocation1 + $0x10] sm:$0xff pattern:$0x73625140] }
 0x18c   :  { %v359_v38 = vld [vmem:[#allocation2 + $0x8b0] sm:$0xff]  ;;  %2543 = vmatpush.msrb.mxu3 %v375_v31  ;;  %2582 = vmatpush.msrb.mxu2 %v903_v32  ;;  %v4439_v32 = vld.sshfl [vmem:[#allocation1] sm:$0xff pattern:$0x73625140] }
 0x18d   :  { %v887_v44 = vld [vmem:[#allocation2 + $0x1930] sm:$0xff]  ;;  %2525 = vmatpush.msra.mxu1 %v87_v33  ;;  %2560 = vmatpush.msra.mxu0 %v679_v35  ;;  %v2187_v51 = vpop.f32.mrf.mxu2  ;;  %v264_v33 = vld [vmem:[#allocation2 + $0x5b8] sm:$0xff] }
 0x18e   :  { %v1351_v4 = vld [vmem:[#allocation2 + $0x27b0] sm:$0xff]  ;;  %2544 = vmatpush.msrb.mxu3 %v359_v38  ;;  %2583 = vmatpush.msrb.mxu2 %v887_v44  ;;  %v2188_v53 = vadd.f32 %v2187_v51, %v2168_v43  ;;  %v584_v35 = vld [vmem:[#allocation2 + $0xfb8] sm:$0xff] }
 0x18f   :  { %v663_v42 = vld [vmem:[#allocation2 + $0x1230] sm:$0xff]  ;;  %2590 = vmatpush.msrb.mxu1 %v1351_v4  ;;  %v248_v44 = vld [vmem:[#allocation2 + $0x538] sm:$0xff] }
 0x190   :  { %v343_v24 = vld [vmem:[#allocation2 + $0x830] sm:$0xff]  ;;  %2561 = vmatpush.msra.mxu0 %v663_v42  ;;  %v2207_v59 = vpop.f32.mrf.mxu0  ;;  %2526 = vmatmul.f32.vlgmr.msra.gmra.mxu1 %v4439_v32  ;;  %v568_v4 = vld [vmem:[#allocation2 + $0xf38] sm:$0xff] }
 0x191   :  { %v871_v45 = vld [vmem:[#allocation2 + $0x18b0] sm:$0xff]  ;;  %2545 = vmatpush.msrb.mxu3 %v343_v24  ;;  %v2208_v63 = vadd.f32 %v2207_v59, %v2188_v53  ;;  %v232_v24 = vld [vmem:[#allocation2 + $0x4b8] sm:$0xff] }
 0x192   :  { %v1335_v49 = vld [vmem:[#allocation2 + $0x2730] sm:$0xff]  ;;  %2584 = vmatpush.msrb.mxu2 %v871_v45  ;;  %2546 = vmatmul.f32.vlgmr.msrb.gmra.mxu3 %v4431_v1  ;;  %v2227_v6 = vpop.f32.mrf.mxu1  ;;  %v552_v45 = vld [vmem:[#allocation2 + $0xeb8] sm:$0xff] }
 0x193   :  { %v647_v50 = vld [vmem:[#allocation2 + $0x11b0] sm:$0xff]  ;;  %2591 = vmatpush.msrb.mxu1 %v1335_v49  ;;  %v4434_v11 = vadd.f32 %v2227_v6, %v2208_v63  ;;  %v216_v51 = vld [vmem:[#allocation2 + $0x438] sm:$0xff] }
 0x194   :  { %v1607_v19 = vld [vmem:[#allocation2 + $0x2fb0] sm:$0xff]  ;;  %2562 = vmatpush.msra.mxu0 %v647_v50  ;;  %v488_v6 = vld [vmem:[#allocation2 + $0xcb8] sm:$0xff] }
 0x195   :  { %v855_v52 = vld [vmem:[#allocation2 + $0x1830] sm:$0xff]  ;;  %2610 = vmatpush.msra.mxu3 %v1607_v19  ;;  %v536_v19 = vld [vmem:[#allocation2 + $0xe38] sm:$0xff] }
 0x196   :  { %v1319_v56 = vld [vmem:[#allocation2 + $0x26b0] sm:$0xff]  ;;  %2585 = vmatpush.msrb.mxu2 %v855_v52 }
 0x197   :  { %v631_v23 = vld [vmem:[#allocation2 + $0x1130] sm:$0xff]  ;;  %2592 = vmatpush.msrb.mxu1 %v1319_v56  ;;  %v200_v56 = vld [vmem:[#allocation2 + $0x3b8] sm:$0xff] }
 0x198   :  { %v1591_v58 = vld [vmem:[#allocation2 + $0x2f30] sm:$0xff]  ;;  %2563 = vmatpush.msra.mxu0 %v631_v23  ;;  %2650 = vmatpush.msra.mxu2 %v328_v60  ;;  %v520_v23 = vld [vmem:[#allocation2 + $0xdb8] sm:$0xff] }
 0x199   :  { %v1303_v9 = vld [vmem:[#allocation2 + $0x2630] sm:$0xff]  ;;  %2611 = vmatpush.msra.mxu3 %v1591_v58  ;;  %v184_v60 = vld [vmem:[#allocation2 + $0x338] sm:$0xff] }
 0x19a   :  { %v615_v5 = vld [vmem:[#allocation2 + $0x10b0] sm:$0xff]  ;;  %2593 = vmatpush.msrb.mxu1 %v1303_v9  ;;  %2651 = vmatpush.msra.mxu2 %v312_v8  ;;  %v504_v9 = vld [vmem:[#allocation2 + $0xd38] sm:$0xff] }
 0x19b   :  { %v1575_v46 = vld [vmem:[#allocation2 + $0x2eb0] sm:$0xff]  ;;  %2564 = vmatpush.msra.mxu0 %v615_v5 }
 0x19c   :  { %v1287_v10 = vld [vmem:[#allocation2 + $0x25b0] sm:$0xff]  ;;  %2612 = vmatpush.msra.mxu3 %v1575_v46  ;;  %2652 = vmatpush.msra.mxu2 %v296_v16  ;;  %v168_v46 = vld [vmem:[#allocation2 + $0x2b8] sm:$0xff] }
 0x19d   :  { %v599_v13 = vld [vmem:[#allocation2 + $0x1030] sm:$0xff]  ;;  %2594 = vmatpush.msrb.mxu1 %v1287_v10 }
 0x19e   :  { %v1559_v7 = vld [vmem:[#allocation2 + $0x2e30] sm:$0xff]  ;;  %2565 = vmatpush.msra.mxu0 %v599_v13  ;;  %2653 = vmatpush.msra.mxu2 %v280_v25  ;;  %v152_v13 = vld [vmem:[#allocation2 + $0x238] sm:$0xff] }
 0x19f   :  { %v1271_v18 = vld [vmem:[#allocation2 + $0x2530] sm:$0xff]  ;;  %2613 = vmatpush.msra.mxu3 %v1559_v7  ;;  %2566 = vmatmul.f32.vlgmr.msra.gmra.mxu0 %v4442_v39  ;;  %v472_v7 = vld [vmem:[#allocation2 + $0xc38] sm:$0xff] }
 0x1a0   :  { %v1639_v20 = vld [vmem:[#allocation2 + $0x30b0] sm:$0xff]  ;;  %2595 = vmatpush.msrb.mxu1 %v1271_v18  ;;  %2654 = vmatpush.msra.mxu2 %v264_v33  ;;  %v440_v33 = vld [vmem:[#allocation2 + $0xb38] sm:$0xff] }
 0x1a1   :  { %v4436_v21 = vld.sshfl [vmem:[#allocation1 + $0x18] sm:$0xff pattern:$0x73625140]  ;;  %2644 = vmatpush.msrb.mxu0 %v1639_v20  ;;  %v136_v20 = vld [vmem:[#allocation2 + $0x1b8] sm:$0xff] }
 0x1a2   :  { %2586 = vmatmul.f32.vlgmr.msrb.gmra.mxu2 %v4436_v21  ;;  %v1543_v28 = vld [vmem:[#allocation2 + $0x2db0] sm:$0xff] }
 0x1a3   :  { %v1255_v29 = vld [vmem:[#allocation2 + $0x24b0] sm:$0xff]  ;;  %2614 = vmatpush.msra.mxu3 %v1543_v28  ;;  %2655 = vmatpush.msra.mxu2 %v248_v44  ;;  %v456_v28 = vld [vmem:[#allocation2 + $0xbb8] sm:$0xff] }
 0x1a4   :  { %v1623_v30 = vld [vmem:[#allocation2 + $0x3030] sm:$0xff]  ;;  %2596 = vmatpush.msrb.mxu1 %v1255_v29  ;;  %v4445_v44 = vld.sshfl [vmem:[#allocation1 + $0x20] sm:$0xff pattern:$0x73625140] }
 0x1a5   :  { %v1527_v31 = vld [vmem:[#allocation2 + $0x2d30] sm:$0xff]  ;;  %2645 = vmatpush.msrb.mxu0 %v1623_v30  ;;  %2656 = vmatpush.msra.mxu2 %v232_v24 }
 0x1a6   :  { %v1239_v36 = vld [vmem:[#allocation2 + $0x2430] sm:$0xff]  ;;  %2615 = vmatpush.msra.mxu3 %v1527_v31  ;;  %v120_v31 = vld [vmem:[#allocation2 + $0x138] sm:$0xff] }
 0x1a7   :  { %v1511_v38 = vld [vmem:[#allocation2 + $0x2cb0] sm:$0xff]  ;;  %2670 = vmatpush.msra.mxu0 %v584_v35  ;;  %2597 = vmatpush.msrb.mxu1 %v1239_v36  ;;  %v840_v35 = vld [vmem:[#allocation2 + $0x17b8] sm:$0xff] }
 0x1a8   :  { %v1223_v42 = vld [vmem:[#allocation2 + $0x23b0] sm:$0xff]  ;;  %2616 = vmatpush.msra.mxu3 %v1511_v38  ;;  %2657 = vmatpush.msra.mxu2 %v216_v51 }
 0x1a9   :  { %v1495_v43 = vld [vmem:[#allocation2 + $0x2c30] sm:$0xff]  ;;  %2671 = vmatpush.msra.mxu0 %v568_v4  ;;  %2598 = vmatpush.msrb.mxu1 %v1223_v42  ;;  %v104_v4 = vld [vmem:[#allocation2 + $0xb8] sm:$0xff] }
 0x1aa   :  { %v1207_v49 = vld [vmem:[#allocation2 + $0x2330] sm:$0xff]  ;;  %2617 = vmatpush.msra.mxu3 %v1495_v43  ;;  %2658 = vmatpush.msra.mxu2 %v200_v56  ;;  %v424_v42 = vld [vmem:[#allocation2 + $0xab8] sm:$0xff] }
 0x1ab   :  { %v1479_v50 = vld [vmem:[#allocation2 + $0x2bb0] sm:$0xff]  ;;  %2672 = vmatpush.msra.mxu0 %v552_v45  ;;  %2599 = vmatpush.msrb.mxu1 %v1207_v49  ;;  %v824_v45 = vld [vmem:[#allocation2 + $0x1738] sm:$0xff] }
 0x1ac   :  { %v1191_v52 = vld [vmem:[#allocation2 + $0x22b0] sm:$0xff]  ;;  %2618 = vmatpush.msra.mxu3 %v1479_v50  ;;  %2659 = vmatpush.msra.mxu2 %v184_v60  ;;  %v2247_v30 = vpop.f32.mrf.mxu3  ;;  %v1096_v49 = vld [vmem:[#allocation2 + $0x1fb8] sm:$0xff] }
 0x1ad   :  { %v1463_v53 = vld [vmem:[#allocation2 + $0x2b30] sm:$0xff]  ;;  %2673 = vmatpush.msra.mxu0 %v536_v19  ;;  %2600 = vmatpush.msrb.mxu1 %v1191_v52  ;;  %v88_v50 = vld [vmem:[#allocation2 + $0x38] sm:$0xff] }
 0x1ae   :  { %v1175_v58 = vld [vmem:[#allocation2 + $0x2230] sm:$0xff]  ;;  %2619 = vmatpush.msra.mxu3 %v1463_v53  ;;  %2660 = vmatpush.msra.mxu2 %v168_v46  ;;  %v2267_v38 = vpop.f32.mrf.mxu1  ;;  %v408_v19 = vld [vmem:[#allocation2 + $0xa38] sm:$0xff]  ;;  %v4448_v53 = vld.sshfl [vmem:[#allocation1 + $0x28] sm:$0xff pattern:$0x73625140] }
 0x1af   :  { %v1447_v59 = vld [vmem:[#allocation2 + $0x2ab0] sm:$0xff]  ;;  %2674 = vmatpush.msra.mxu0 %v520_v23  ;;  %2601 = vmatpush.msrb.mxu1 %v1175_v58  ;;  %v2268_v43 = vadd.f32 %v2267_v38, %v2247_v30  ;;  %v2287_v24 = vpop.f32.mrf.mxu2  ;;  %v808_v52 = vld [vmem:[#allocation2 + $0x16b8] sm:$0xff] }
 0x1b0   :  { %v1159_v63 = vld [vmem:[#allocation2 + $0x21b0] sm:$0xff]  ;;  %2620 = vmatpush.msra.mxu3 %v1447_v59  ;;  %2661 = vmatpush.msra.mxu2 %v152_v13  ;;  %v1080_v56 = vld [vmem:[#allocation2 + $0x1f38] sm:$0xff] }
 0x1b1   :  { %v1431_v5 = vld [vmem:[#allocation2 + $0x2a30] sm:$0xff]  ;;  %2675 = vmatpush.msra.mxu0 %v504_v9  ;;  %2602 = vmatpush.msrb.mxu1 %v1159_v63  ;;  %v2288_v51 = vadd.f32 %v2287_v24, %v2268_v43  ;;  %v1352_v23 = vld [vmem:[#allocation2 + $0x27b8] sm:$0xff] }
 0x1b2   :  { %v1143_v8 = vld [vmem:[#allocation2 + $0x2130] sm:$0xff]  ;;  %2621 = vmatpush.msra.mxu3 %v1431_v5  ;;  %2662 = vmatpush.msra.mxu2 %v136_v20  ;;  %v392_v59 = vld [vmem:[#allocation2 + $0x9b8] sm:$0xff] }
 0x1b3   :  { %v1415_v10 = vld [vmem:[#allocation2 + $0x29b0] sm:$0xff]  ;;  %2676 = vmatpush.msra.mxu0 %v488_v6  ;;  %2603 = vmatpush.msrb.mxu1 %v1143_v8  ;;  %v2307_v58 = vpop.f32.mrf.mxu0  ;;  %v792_v60 = vld [vmem:[#allocation2 + $0x1638] sm:$0xff] }
 0x1b4   :  { %v1127_v16 = vld [vmem:[#allocation2 + $0x20b0] sm:$0xff]  ;;  %2622 = vmatpush.msra.mxu3 %v1415_v10  ;;  %2663 = vmatpush.msra.mxu2 %v120_v31  ;;  %v4451_v9 = vadd.f32 %v2307_v58, %v2288_v51  ;;  %v1064_v63 = vld [vmem:[#allocation2 + $0x1eb8] sm:$0xff] }
 0x1b5   :  { %v1399_v18 = vld [vmem:[#allocation2 + $0x2930] sm:$0xff]  ;;  %2677 = vmatpush.msra.mxu0 %v472_v7  ;;  %2604 = vmatpush.msrb.mxu1 %v1127_v16  ;;  %v1336_v5 = vld [vmem:[#allocation2 + $0x2738] sm:$0xff] }
 0x1b6   :  { %v1111_v25 = vld [vmem:[#allocation2 + $0x2030] sm:$0xff]  ;;  %2623 = vmatpush.msra.mxu3 %v1399_v18  ;;  %2664 = vmatpush.msra.mxu2 %v104_v4  ;;  %v376_v46 = vld [vmem:[#allocation2 + $0x938] sm:$0xff] }
 0x1b7   :  { %v1383_v29 = vld [vmem:[#allocation2 + $0x28b0] sm:$0xff]  ;;  %2678 = vmatpush.msra.mxu0 %v456_v28  ;;  %2605 = vmatpush.msrb.mxu1 %v1111_v25  ;;  %v776_v6 = vld [vmem:[#allocation2 + $0x15b8] sm:$0xff] }
 0x1b8   :  { %v1367_v36 = vld [vmem:[#allocation2 + $0x2830] sm:$0xff]  ;;  %2606 = vmatmul.f32.vlgmr.msrb.gmra.mxu1 %v4445_v44  ;;  %2624 = vmatpush.msra.mxu3 %v1383_v29  ;;  %v1048_v8 = vld [vmem:[#allocation2 + $0x1e38] sm:$0xff]  ;;  %v4453_v29 = vld.sshfl [vmem:[#allocation1 + $0x30] sm:$0xff pattern:$0x73625140] }
 0x1b9   :  { %2679 = vmatpush.msra.mxu0 %v440_v33  ;;  %2690 = vmatpush.msra.mxu1 %v840_v35  ;;  %v1320_v10 = vld [vmem:[#allocation2 + $0x26b8] sm:$0xff] }
 0x1ba   :  { %2625 = vmatpush.msra.mxu3 %v1367_v36  ;;  %2665 = vmatpush.msra.mxu2 %v88_v50  ;;  %v360_v13 = vld [vmem:[#allocation2 + $0x8b8] sm:$0xff] }
 0x1bb   :  { %2680 = vmatpush.msra.mxu0 %v424_v42  ;;  %2691 = vmatpush.msra.mxu1 %v824_v45  ;;  %v760_v7 = vld [vmem:[#allocation2 + $0x1538] sm:$0xff] }
 0x1bc   :  { %2626 = vmatmul.f32.vlgmr.msra.gmra.mxu3 %v4448_v53  ;;  %2730 = vmatpush.msrb.mxu2 %v1352_v23  ;;  %v1032_v16 = vld [vmem:[#allocation2 + $0x1db8] sm:$0xff] }
 0x1bd   :  { %2710 = vmatpush.msrb.mxu3 %v1096_v49  ;;  %2681 = vmatpush.msra.mxu0 %v408_v19  ;;  %v1304_v18 = vld [vmem:[#allocation2 + $0x2638] sm:$0xff] }
 0x1be   :  { %2692 = vmatpush.msra.mxu1 %v808_v52  ;;  %2731 = vmatpush.msrb.mxu2 %v1336_v5  ;;  %v344_v20 = vld [vmem:[#allocation2 + $0x838] sm:$0xff] }
 0x1bf   :  { %2711 = vmatpush.msrb.mxu3 %v1080_v56  ;;  %2682 = vmatpush.msra.mxu0 %v392_v59  ;;  %v744_v28 = vld [vmem:[#allocation2 + $0x14b8] sm:$0xff] }
 0x1c0   :  { %2693 = vmatpush.msra.mxu1 %v792_v60  ;;  %2732 = vmatpush.msrb.mxu2 %v1320_v10  ;;  %v1016_v25 = vld [vmem:[#allocation2 + $0x1d38] sm:$0xff] }
 0x1c1   :  { %2712 = vmatpush.msrb.mxu3 %v1064_v63  ;;  %2683 = vmatpush.msra.mxu0 %v376_v46  ;;  %v1288_v30 = vld [vmem:[#allocation2 + $0x25b8] sm:$0xff] }
 0x1c2   :  { %2694 = vmatpush.msra.mxu1 %v776_v6  ;;  %4103 = vmatmul.msk.f32.vlgmr.msrb.gmra.mxu0 %vm1667_vm0, %v4453_v29  ;;  %v1608_v31 = vld [vmem:[#allocation2 + $0x2fb8] sm:$0xff] }
 0x1c3   :  { %2713 = vmatpush.msrb.mxu3 %v1048_v8  ;;  %2684 = vmatpush.msra.mxu0 %v360_v13  ;;  %v728_v33 = vld [vmem:[#allocation2 + $0x1438] sm:$0xff] }
 0x1c4   :  { %2695 = vmatpush.msra.mxu1 %v760_v7  ;;  %2733 = vmatpush.msrb.mxu2 %v1304_v18  ;;  %v1000_v35 = vld [vmem:[#allocation2 + $0x1cb8] sm:$0xff] }
 0x1c5   :  { %2714 = vmatpush.msrb.mxu3 %v1032_v16  ;;  %2685 = vmatpush.msra.mxu0 %v344_v20  ;;  %v1272_v36 = vld [vmem:[#allocation2 + $0x2538] sm:$0xff] }
 0x1c6   :  { %2696 = vmatpush.msra.mxu1 %v744_v28  ;;  %v1592_v38 = vld [vmem:[#allocation2 + $0x2f38] sm:$0xff]  ;;  %2734 = vmatpush.msrb.mxu2 %v1288_v30 }
 0x1c7   :  { %2715 = vmatpush.msrb.mxu3 %v1016_v25  ;;  %2750 = vmatpush.msrb.mxu0 %v1608_v31  ;;  %v712_v4 = vld [vmem:[#allocation2 + $0x13b8] sm:$0xff] }
 0x1c8   :  { %v984_v42 = vld [vmem:[#allocation2 + $0x1c38] sm:$0xff]  ;;  %2697 = vmatpush.msra.mxu1 %v728_v33  ;;  %2735 = vmatpush.msrb.mxu2 %v1272_v36 }
 0x1c9   :  { %2716 = vmatpush.msrb.mxu3 %v1000_v35  ;;  %v1256_v43 = vld [vmem:[#allocation2 + $0x24b8] sm:$0xff]  ;;  %2751 = vmatpush.msrb.mxu0 %v1592_v38 }
 0x1ca   :  { %v1576_v24 = vld [vmem:[#allocation2 + $0x2eb8] sm:$0xff]  ;;  %2698 = vmatpush.msra.mxu1 %v712_v4  ;;  %2736 = vmatpush.msrb.mxu2 %v1256_v43 }
 0x1cb   :  { %v696_v45 = vld [vmem:[#allocation2 + $0x1338] sm:$0xff]  ;;  %2717 = vmatpush.msrb.mxu3 %v984_v42  ;;  %2752 = vmatpush.msrb.mxu0 %v1576_v24  ;;  %v2327_v20 = vpop.f32.mrf.mxu3 }
 0x1cc   :  { %v968_v49 = vld [vmem:[#allocation2 + $0x1bb8] sm:$0xff]  ;;  %2699 = vmatpush.msra.mxu1 %v696_v45  ;;  %v2328_v30 = vadd.f32 %v2327_v20, %v4451_v9  ;;  %2666 = vmatmul.f32.vlgmr.msra.gmra.mxu2 %v4439_v32  ;;  %v521_v20 = vld [vmem:[#allocation2 + $0xdc0] sm:$0xff] }
 0x1cd   :  { %v1240_v50 = vld [vmem:[#allocation2 + $0x2438] sm:$0xff]  ;;  %2718 = vmatpush.msrb.mxu3 %v968_v49  ;;  %2686 = vmatmul.f32.vlgmr.msra.gmra.mxu0 %v4431_v1 }
 0x1ce   :  { %v1560_v51 = vld [vmem:[#allocation2 + $0x2e38] sm:$0xff]  ;;  %2737 = vmatpush.msrb.mxu2 %v1240_v50  ;;  %v2347_v38 = vpop.f32.mrf.mxu1 }
 0x1cf   :  { %v680_v19 = vld [vmem:[#allocation2 + $0x12b8] sm:$0xff]  ;;  %2753 = vmatpush.msrb.mxu0 %v1560_v51  ;;  %v2348_v43 = vadd.f32 %v2347_v38, %v2328_v30  ;;  %v249_v30 = vld [vmem:[#allocation2 + $0x540] sm:$0xff] }
 0x1d0   :  { %v952_v52 = vld [vmem:[#allocation2 + $0x1b38] sm:$0xff]  ;;  %2700 = vmatpush.msra.mxu1 %v680_v19  ;;  %v2367_v24 = vpop.f32.mrf.mxu2  ;;  %v329_v19 = vld [vmem:[#allocation2 + $0x7c0] sm:$0xff] }
 0x1d1   :  { %v1224_v56 = vld [vmem:[#allocation2 + $0x23b8] sm:$0xff]  ;;  %2719 = vmatpush.msrb.mxu3 %v952_v52  ;;  %v4459_v51 = vadd.f32 %v2367_v24, %v2348_v43  ;;  %v585_v52 = vld [vmem:[#allocation2 + $0xfc0] sm:$0xff] }
 0x1d2   :  { %v1544_v23 = vld [vmem:[#allocation2 + $0x2db8] sm:$0xff]  ;;  %2738 = vmatpush.msrb.mxu2 %v1224_v56  ;;  %v489_v38 = vld [vmem:[#allocation2 + $0xcc0] sm:$0xff] }
 0x1d3   :  { %v664_v58 = vld [vmem:[#allocation2 + $0x1238] sm:$0xff]  ;;  %2754 = vmatpush.msrb.mxu0 %v1544_v23  ;;  %v217_v43 = vld [vmem:[#allocation2 + $0x440] sm:$0xff] }
 0x1d4   :  { %v936_v59 = vld [vmem:[#allocation2 + $0x1ab8] sm:$0xff]  ;;  %2701 = vmatpush.msra.mxu1 %v664_v58  ;;  %v313_v58 = vld [vmem:[#allocation2 + $0x740] sm:$0xff] }
 0x1d5   :  { %v1208_v60 = vld [vmem:[#allocation2 + $0x2338] sm:$0xff]  ;;  %2720 = vmatpush.msrb.mxu3 %v936_v59  ;;  %v569_v59 = vld [vmem:[#allocation2 + $0xf40] sm:$0xff] }
 0x1d6   :  { %v1528_v63 = vld [vmem:[#allocation2 + $0x2d38] sm:$0xff]  ;;  %2739 = vmatpush.msrb.mxu2 %v1208_v60  ;;  %v841_v60 = vld [vmem:[#allocation2 + $0x17c0] sm:$0xff] }
 0x1d7   :  { %v648_v5 = vld [vmem:[#allocation2 + $0x11b8] sm:$0xff]  ;;  %2755 = vmatpush.msrb.mxu0 %v1528_v63  ;;  %v473_v24 = vld [vmem:[#allocation2 + $0xc40] sm:$0xff] }
 0x1d8   :  { %v920_v46 = vld [vmem:[#allocation2 + $0x1a38] sm:$0xff]  ;;  %2702 = vmatpush.msra.mxu1 %v648_v5  ;;  %v297_v5 = vld [vmem:[#allocation2 + $0x6c0] sm:$0xff] }
 0x1d9   :  { %v1192_v6 = vld [vmem:[#allocation2 + $0x22b8] sm:$0xff]  ;;  %2721 = vmatpush.msrb.mxu3 %v920_v46  ;;  %v553_v46 = vld [vmem:[#allocation2 + $0xec0] sm:$0xff] }
 0x1da   :  { %v1512_v8 = vld [vmem:[#allocation2 + $0x2cb8] sm:$0xff]  ;;  %2740 = vmatpush.msrb.mxu2 %v1192_v6  ;;  %v825_v6 = vld [vmem:[#allocation2 + $0x1740] sm:$0xff] }
 0x1db   :  { %v632_v10 = vld [vmem:[#allocation2 + $0x1138] sm:$0xff]  ;;  %2756 = vmatpush.msrb.mxu0 %v1512_v8 }
 0x1dc   :  { %v904_v13 = vld [vmem:[#allocation2 + $0x19b8] sm:$0xff]  ;;  %2703 = vmatpush.msra.mxu1 %v632_v10  ;;  %v281_v10 = vld [vmem:[#allocation2 + $0x640] sm:$0xff] }
 0x1dd   :  { %v1176_v7 = vld [vmem:[#allocation2 + $0x2238] sm:$0xff]  ;;  %2722 = vmatpush.msrb.mxu3 %v904_v13  ;;  %v537_v13 = vld [vmem:[#allocation2 + $0xe40] sm:$0xff] }
 0x1de   :  { %v1496_v16 = vld [vmem:[#allocation2 + $0x2c38] sm:$0xff]  ;;  %2741 = vmatpush.msrb.mxu2 %v1176_v7  ;;  %v809_v7 = vld [vmem:[#allocation2 + $0x16c0] sm:$0xff] }
 0x1df   :  { %v616_v18 = vld [vmem:[#allocation2 + $0x10b8] sm:$0xff]  ;;  %2757 = vmatpush.msrb.mxu0 %v1496_v16 }
 0x1e0   :  { %v888_v28 = vld [vmem:[#allocation2 + $0x1938] sm:$0xff]  ;;  %2704 = vmatpush.msra.mxu1 %v616_v18  ;;  %v265_v18 = vld [vmem:[#allocation2 + $0x5c0] sm:$0xff] }
 0x1e1   :  { %v1160_v25 = vld [vmem:[#allocation2 + $0x21b8] sm:$0xff]  ;;  %2723 = vmatpush.msrb.mxu3 %v888_v28  ;;  %v793_v28 = vld [vmem:[#allocation2 + $0x1640] sm:$0xff] }
 0x1e2   :  { %v1480_v31 = vld [vmem:[#allocation2 + $0x2bb8] sm:$0xff]  ;;  %2742 = vmatpush.msrb.mxu2 %v1160_v25 }
 0x1e3   :  { %v600_v33 = vld [vmem:[#allocation2 + $0x1038] sm:$0xff]  ;;  %2758 = vmatpush.msrb.mxu0 %v1480_v31  ;;  %v505_v31 = vld [vmem:[#allocation2 + $0xd40] sm:$0xff] }
 0x1e4   :  { %v872_v35 = vld [vmem:[#allocation2 + $0x18b8] sm:$0xff]  ;;  %2705 = vmatpush.msra.mxu1 %v600_v33  ;;  %v777_v33 = vld [vmem:[#allocation2 + $0x15c0] sm:$0xff] }
 0x1e5   :  { %v1144_v36 = vld [vmem:[#allocation2 + $0x2138] sm:$0xff]  ;;  %2724 = vmatpush.msrb.mxu3 %v872_v35  ;;  %2706 = vmatmul.f32.vlgmr.msra.gmra.mxu1 %v4442_v39  ;;  %v1097_v35 = vld [vmem:[#allocation2 + $0x1fc0] sm:$0xff] }
 0x1e6   :  { %v1464_v4 = vld [vmem:[#allocation2 + $0x2b38] sm:$0xff]  ;;  %2743 = vmatpush.msrb.mxu2 %v1144_v36  ;;  %v233_v36 = vld [vmem:[#allocation2 + $0x4c0] sm:$0xff] }
 0x1e7   :  { %v1640_v42 = vld [vmem:[#allocation2 + $0x30b8] sm:$0xff]  ;;  %2759 = vmatpush.msrb.mxu0 %v1464_v4  ;;  %v761_v4 = vld [vmem:[#allocation2 + $0x1540] sm:$0xff] }
 0x1e8   :  { %v856_v45 = vld [vmem:[#allocation2 + $0x1838] sm:$0xff]  ;;  %2784 = vmatpush.msrb.mxu1 %v1640_v42  ;;  %v1081_v42 = vld [vmem:[#allocation2 + $0x1f40] sm:$0xff] }
 0x1e9   :  { %v1128_v9 = vld [vmem:[#allocation2 + $0x20b8] sm:$0xff]  ;;  %2725 = vmatpush.msrb.mxu3 %v856_v45  ;;  %v745_v45 = vld [vmem:[#allocation2 + $0x14c0] sm:$0xff] }
 0x1ea   :  { %v1448_v49 = vld [vmem:[#allocation2 + $0x2ab8] sm:$0xff]  ;;  %2744 = vmatpush.msrb.mxu2 %v1128_v9  ;;  %2726 = vmatmul.f32.vlgmr.msrb.gmra.mxu3 %v4436_v21  ;;  %v1065_v9 = vld [vmem:[#allocation2 + $0x1ec0] sm:$0xff] }
 0x1eb   :  { %v1624_v50 = vld [vmem:[#allocation2 + $0x3038] sm:$0xff]  ;;  %2760 = vmatpush.msrb.mxu0 %v1448_v49  ;;  %2790 = vmatpush.msra.mxu3 %v329_v19  ;;  %v201_v49 = vld [vmem:[#allocation2 + $0x3c0] sm:$0xff] }
 0x1ec   :  { %2785 = vmatpush.msrb.mxu1 %v1624_v50  ;;  %v1112_v56 = vld [vmem:[#allocation2 + $0x2038] sm:$0xff]  ;;  %v457_v50 = vld [vmem:[#allocation2 + $0xbc0] sm:$0xff] }
 0x1ed   :  { %v1432_v23 = vld [vmem:[#allocation2 + $0x2a38] sm:$0xff]  ;;  %2745 = vmatpush.msrb.mxu2 %v1112_v56  ;;  %2791 = vmatpush.msra.mxu3 %v313_v58  ;;  %v729_v19 = vld [vmem:[#allocation2 + $0x1440] sm:$0xff] }
 0x1ee   :  { %2810 = vmatpush.msra.mxu1 %v585_v52  ;;  %2761 = vmatpush.msrb.mxu0 %v1432_v23  ;;  %v1416_v63 = vld [vmem:[#allocation2 + $0x29b8] sm:$0xff]  ;;  %v1049_v52 = vld [vmem:[#allocation2 + $0x1e40] sm:$0xff] }
 0x1ef   :  { %2746 = vmatmul.f32.vlgmr.msrb.gmra.mxu2 %v4445_v44  ;;  %v1400_v8 = vld [vmem:[#allocation2 + $0x2938] sm:$0xff]  ;;  %2792 = vmatpush.msra.mxu3 %v297_v5  ;;  %v185_v56 = vld [vmem:[#allocation2 + $0x340] sm:$0xff] }
 0x1f0   :  { %2811 = vmatpush.msra.mxu1 %v569_v59  ;;  %2830 = vmatpush.msra.mxu2 %v841_v60  ;;  %v1384_v16 = vld [vmem:[#allocation2 + $0x28b8] sm:$0xff]  ;;  %v441_v23 = vld [vmem:[#allocation2 + $0xb40] sm:$0xff] }
 0x1f1   :  { %2762 = vmatpush.msrb.mxu0 %v1416_v63  ;;  %2793 = vmatpush.msra.mxu3 %v281_v10  ;;  %v1368_v25 = vld [vmem:[#allocation2 + $0x2838] sm:$0xff]  ;;  %v713_v58 = vld [vmem:[#allocation2 + $0x13c0] sm:$0xff] }
 0x1f2   :  { %2812 = vmatpush.msra.mxu1 %v553_v46  ;;  %2831 = vmatpush.msra.mxu2 %v825_v6  ;;  %v1033_v59 = vld [vmem:[#allocation2 + $0x1dc0] sm:$0xff]  ;;  %v2387_v6 = vpop.f32.mrf.mxu0 }
 0x1f3   :  { %2763 = vmatpush.msrb.mxu0 %v1400_v8  ;;  %2794 = vmatpush.msra.mxu3 %v265_v18  ;;  %v169_v60 = vld [vmem:[#allocation2 + $0x2c0] sm:$0xff]  ;;  %v2407_v8 = vpop.f32.mrf.mxu2 }
 0x1f4   :  { %2813 = vmatpush.msra.mxu1 %v537_v13  ;;  %2832 = vmatpush.msra.mxu2 %v809_v7  ;;  %v425_v63 = vld [vmem:[#allocation2 + $0xac0] sm:$0xff]  ;;  %v2408_v7 = vadd.f32 %v2407_v8, %v2387_v6 }
 0x1f5   :  { %2764 = vmatpush.msrb.mxu0 %v1384_v16  ;;  %2795 = vmatpush.msra.mxu3 %v249_v30  ;;  %v697_v5 = vld [vmem:[#allocation2 + $0x1340] sm:$0xff] }
 0x1f6   :  { %2814 = vmatpush.msra.mxu1 %v521_v20  ;;  %2833 = vmatpush.msra.mxu2 %v793_v28  ;;  %v1017_v46 = vld [vmem:[#allocation2 + $0x1d40] sm:$0xff] }
 0x1f7   :  { %2765 = vmatpush.msrb.mxu0 %v1368_v25  ;;  %4104 = vmatmul.msk.f32.vlgmr.msrb.gmra.mxu1 %vm1667_vm0, %v4453_v29  ;;  %v153_v10 = vld [vmem:[#allocation2 + $0x240] sm:$0xff]  ;;  %v2427_v25 = vpop.f32.mrf.mxu3 }
 0x1f8   :  { %2766 = vmatmul.f32.vlgmr.msrb.gmra.mxu0 %v4448_v53  ;;  %2815 = vmatpush.msra.mxu1 %v505_v31  ;;  %v409_v13 = vld [vmem:[#allocation2 + $0xa40] sm:$0xff] }
 0x1f9   :  { %2834 = vmatpush.msra.mxu2 %v777_v33  ;;  %2850 = vmatpush.msra.mxu0 %v1097_v35  ;;  %v681_v16 = vld [vmem:[#allocation2 + $0x12c0] sm:$0xff]  ;;  %v2428_v33 = vadd.f32 %v2427_v25, %v2408_v7 }
 0x1fa   :  { %2796 = vmatpush.msra.mxu3 %v233_v36  ;;  %2816 = vmatpush.msra.mxu1 %v489_v38  ;;  %v1001_v18 = vld [vmem:[#allocation2 + $0x1cc0] sm:$0xff] }
 0x1fb   :  { %2835 = vmatpush.msra.mxu2 %v761_v4  ;;  %2851 = vmatpush.msra.mxu0 %v1081_v42  ;;  %v137_v20 = vld [vmem:[#allocation2 + $0x1c0] sm:$0xff] }
 0x1fc   :  { %2797 = vmatpush.msra.mxu3 %v217_v43  ;;  %2817 = vmatpush.msra.mxu1 %v473_v24  ;;  %v393_v28 = vld [vmem:[#allocation2 + $0x9c0] sm:$0xff]  ;;  %v2447_v24 = vpop.f32.mrf.mxu1 }
 0x1fd   :  { %2836 = vmatpush.msra.mxu2 %v745_v45  ;;  %2852 = vmatpush.msra.mxu0 %v1065_v9  ;;  %v665_v30 = vld [vmem:[#allocation2 + $0x1240] sm:$0xff] }
 0x1fe   :  { %2798 = vmatpush.msra.mxu3 %v201_v49  ;;  %2818 = vmatpush.msra.mxu1 %v457_v50  ;;  %v985_v31 = vld [vmem:[#allocation2 + $0x1c40] sm:$0xff]  ;;  %v2448_v49 = vadd.f32 %v2447_v24, %v2428_v33 }
 0x1ff   :  { %2837 = vmatpush.msra.mxu2 %v729_v19  ;;  %2853 = vmatpush.msra.mxu0 %v1049_v52  ;;  %v121_v35 = vld [vmem:[#allocation2 + $0x140] sm:$0xff]  ;;  %v2507_v7 = vpop.f32.mrf.mxu3 }
 0x200   :  { %2799 = vmatpush.msra.mxu3 %v185_v56  ;;  %2819 = vmatpush.msra.mxu1 %v441_v23  ;;  %v377_v36 = vld [vmem:[#allocation2 + $0x940] sm:$0xff]  ;;  %v2467_v23 = vpop.f32.mrf.mxu0 }
 0x201   :  { %2838 = vmatpush.msra.mxu2 %v713_v58  ;;  %2854 = vmatpush.msra.mxu0 %v1033_v59  ;;  %v649_v38 = vld [vmem:[#allocation2 + $0x11c0] sm:$0xff] }
 0x202   :  { %2800 = vmatpush.msra.mxu3 %v169_v60  ;;  %2820 = vmatpush.msra.mxu1 %v425_v63  ;;  %v969_v4 = vld [vmem:[#allocation2 + $0x1bc0] sm:$0xff]  ;;  %v2468_v60 = vadd.f32 %v2467_v23, %v2448_v49  ;;  %v2487_v63 = vpop.f32.mrf.mxu2  ;;  %v538_v49 = vld [vmem:[#allocation2 + $0xe48] sm:$0xff] }
 0x203   :  { %2839 = vmatpush.msra.mxu2 %v697_v5  ;;  %2855 = vmatpush.msra.mxu0 %v1017_v46  ;;  %v105_v42 = vld [vmem:[#allocation2 + $0xc0] sm:$0xff] }
 0x204   :  { %2801 = vmatpush.msra.mxu3 %v153_v10  ;;  %2821 = vmatpush.msra.mxu1 %v409_v13  ;;  %v361_v43 = vld [vmem:[#allocation2 + $0x8c0] sm:$0xff]  ;;  %v2488_v10 = vadd.f32 %v2487_v63, %v2468_v60  ;;  %v282_v63 = vld [vmem:[#allocation2 + $0x648] sm:$0xff] }
 0x205   :  { %2840 = vmatpush.msra.mxu2 %v681_v16  ;;  %2856 = vmatpush.msra.mxu0 %v1001_v18  ;;  %v633_v45 = vld [vmem:[#allocation2 + $0x1140] sm:$0xff] }
 0x206   :  { %2802 = vmatpush.msra.mxu3 %v137_v20  ;;  %2822 = vmatpush.msra.mxu1 %v393_v28  ;;  %v953_v9 = vld [vmem:[#allocation2 + $0x1b40] sm:$0xff]  ;;  %v4468_v20 = vadd.f32 %v2507_v7, %v2488_v10  ;;  %v474_v10 = vld [vmem:[#allocation2 + $0xc48] sm:$0xff] }
 0x207   :  { %2841 = vmatpush.msra.mxu2 %v665_v30  ;;  %2857 = vmatpush.msra.mxu0 %v985_v31  ;;  %v89_v50 = vld [vmem:[#allocation2 + $0x40] sm:$0xff]  ;;  %v586_v31 = vld [vmem:[#allocation2 + $0xfc8] sm:$0xff] }
 0x208   :  { %2803 = vmatpush.msra.mxu3 %v121_v35  ;;  %2823 = vmatpush.msra.mxu1 %v377_v36  ;;  %v345_v19 = vld [vmem:[#allocation2 + $0x840] sm:$0xff] }
 0x209   :  { %2842 = vmatpush.msra.mxu2 %v649_v38  ;;  %2858 = vmatpush.msra.mxu0 %v969_v4  ;;  %v617_v52 = vld [vmem:[#allocation2 + $0x10c0] sm:$0xff]  ;;  %v570_v38 = vld [vmem:[#allocation2 + $0xf48] sm:$0xff] }
 0x20a   :  { %2804 = vmatpush.msra.mxu3 %v105_v42  ;;  %2824 = vmatpush.msra.mxu1 %v361_v43  ;;  %v937_v56 = vld [vmem:[#allocation2 + $0x1ac0] sm:$0xff] }
 0x20b   :  { %2843 = vmatpush.msra.mxu2 %v633_v45  ;;  %2859 = vmatpush.msra.mxu0 %v953_v9  ;;  %v1353_v58 = vld [vmem:[#allocation2 + $0x27c0] sm:$0xff]  ;;  %v330_v9 = vld [vmem:[#allocation2 + $0x7c8] sm:$0xff] }
 0x20c   :  { %v1609_v59 = vld [vmem:[#allocation2 + $0x2fc0] sm:$0xff]  ;;  %2805 = vmatpush.msra.mxu3 %v89_v50  ;;  %2825 = vmatpush.msra.mxu1 %v345_v19  ;;  %v314_v19 = vld [vmem:[#allocation2 + $0x748] sm:$0xff] }
 0x20d   :  { %v601_v5 = vld [vmem:[#allocation2 + $0x1040] sm:$0xff]  ;;  %2844 = vmatpush.msra.mxu2 %v617_v52  ;;  %2860 = vmatpush.msra.mxu0 %v937_v56  ;;  %v522_v52 = vld [vmem:[#allocation2 + $0xdc8] sm:$0xff] }
 0x20e   :  { %v921_v46 = vld [vmem:[#allocation2 + $0x1a40] sm:$0xff]  ;;  %2870 = vmatpush.msrb.mxu3 %v1353_v58  ;;  %2890 = vmatpush.msrb.mxu1 %v1609_v59  ;;  %v298_v58 = vld [vmem:[#allocation2 + $0x6c8] sm:$0xff] }
 0x20f   :  { %v1337_v6 = vld [vmem:[#allocation2 + $0x2740] sm:$0xff]  ;;  %2845 = vmatpush.msra.mxu2 %v601_v5  ;;  %2861 = vmatpush.msra.mxu0 %v921_v46  ;;  %v506_v59 = vld [vmem:[#allocation2 + $0xd48] sm:$0xff] }
 0x210   :  { %v1593_v8 = vld [vmem:[#allocation2 + $0x2f40] sm:$0xff]  ;;  %2871 = vmatpush.msrb.mxu3 %v1337_v6  ;;  %2846 = vmatmul.f32.vlgmr.msra.gmra.mxu2 %v4442_v39  ;;  %v490_v5 = vld [vmem:[#allocation2 + $0xcc8] sm:$0xff] }
 0x211   :  { %v1641_v13 = vld [vmem:[#allocation2 + $0x30c0] sm:$0xff]  ;;  %2891 = vmatpush.msrb.mxu1 %v1593_v8  ;;  %2806 = vmatmul.f32.vlgmr.msra.gmra.mxu3 %v4439_v32  ;;  %v554_v32 = vld [vmem:[#allocation2 + $0xec8] sm:$0xff] }
 0x212   :  { %v905_v16 = vld [vmem:[#allocation2 + $0x19c0] sm:$0xff]  ;;  %2924 = vmatpush.msrb.mxu2 %v1641_v13  ;;  %2826 = vmatmul.f32.vlgmr.msra.gmra.mxu1 %v4431_v1  ;;  %v266_v8 = vld [vmem:[#allocation2 + $0x5c8] sm:$0xff] }
 0x213   :  { %v1321_v18 = vld [vmem:[#allocation2 + $0x26c0] sm:$0xff]  ;;  %2862 = vmatpush.msra.mxu0 %v905_v16  ;;  %v250_v16 = vld [vmem:[#allocation2 + $0x548] sm:$0xff] }
 0x214   :  { %v1577_v28 = vld [vmem:[#allocation2 + $0x2ec0] sm:$0xff]  ;;  %2872 = vmatpush.msrb.mxu3 %v1321_v18 }
 0x215   :  { %v1625_v25 = vld [vmem:[#allocation2 + $0x3040] sm:$0xff]  ;;  %2892 = vmatpush.msrb.mxu1 %v1577_v28 }
 0x216   :  { %v889_v30 = vld [vmem:[#allocation2 + $0x1940] sm:$0xff]  ;;  %2925 = vmatpush.msrb.mxu2 %v1625_v25  ;;  %v234_v25 = vld [vmem:[#allocation2 + $0x4c8] sm:$0xff] }
 0x217   :  { %v1305_v33 = vld [vmem:[#allocation2 + $0x2640] sm:$0xff]  ;;  %2863 = vmatpush.msra.mxu0 %v889_v30  ;;  %v442_v30 = vld [vmem:[#allocation2 + $0xb48] sm:$0xff] }
 0x218   :  { %v1561_v35 = vld [vmem:[#allocation2 + $0x2e40] sm:$0xff]  ;;  %2950 = vmatpush.msra.mxu2 %v586_v31  ;;  %2873 = vmatpush.msrb.mxu3 %v1305_v33 }
 0x219   :  { %v873_v36 = vld [vmem:[#allocation2 + $0x18c0] sm:$0xff]  ;;  %2893 = vmatpush.msrb.mxu1 %v1561_v35  ;;  %v218_v35 = vld [vmem:[#allocation2 + $0x448] sm:$0xff]  ;;  %4105 = vmatmul.msk.f32.vlgmr.msrb.gmra.mxu2 %vm1667_vm0, %v4453_v29 }
 0x21a   :  { %v1289_v4 = vld [vmem:[#allocation2 + $0x25c0] sm:$0xff]  ;;  %2864 = vmatpush.msra.mxu0 %v873_v36  ;;  %2951 = vmatpush.msra.mxu2 %v570_v38  ;;  %v426_v36 = vld [vmem:[#allocation2 + $0xac8] sm:$0xff] }
 0x21b   :  { %v1545_v42 = vld [vmem:[#allocation2 + $0x2dc0] sm:$0xff]  ;;  %2874 = vmatpush.msrb.mxu3 %v1289_v4  ;;  %v762_v29 = vld [vmem:[#allocation2 + $0x1548] sm:$0xff] }
 0x21c   :  { %v857_v43 = vld [vmem:[#allocation2 + $0x1840] sm:$0xff]  ;;  %2894 = vmatpush.msrb.mxu1 %v1545_v42  ;;  %2952 = vmatpush.msra.mxu2 %v554_v32  ;;  %v202_v42 = vld [vmem:[#allocation2 + $0x3c8] sm:$0xff] }
 0x21d   :  { %v1273_v24 = vld [vmem:[#allocation2 + $0x2540] sm:$0xff]  ;;  %2865 = vmatpush.msra.mxu0 %v857_v43  ;;  %v410_v43 = vld [vmem:[#allocation2 + $0xa48] sm:$0xff] }
 0x21e   :  { %v1529_v45 = vld [vmem:[#allocation2 + $0x2d40] sm:$0xff]  ;;  %2875 = vmatpush.msrb.mxu3 %v1273_v24  ;;  %2953 = vmatpush.msra.mxu2 %v538_v49 }
 0x21f   :  { %v1257_v39 = vld [vmem:[#allocation2 + $0x24c0] sm:$0xff]  ;;  %2895 = vmatpush.msrb.mxu1 %v1529_v45  ;;  %2930 = vmatpush.msrb.mxu0 %v330_v9  ;;  %v186_v45 = vld [vmem:[#allocation2 + $0x348] sm:$0xff] }
 0x220   :  { %v1513_v50 = vld [vmem:[#allocation2 + $0x2cc0] sm:$0xff]  ;;  %2876 = vmatpush.msrb.mxu3 %v1257_v39  ;;  %2954 = vmatpush.msra.mxu2 %v522_v52  ;;  %v394_v9 = vld [vmem:[#allocation2 + $0x9c8] sm:$0xff]  ;;  %v2547_v39 = vpop.f32.mrf.mxu3 }
 0x221   :  { %v1241_v56 = vld [vmem:[#allocation2 + $0x2440] sm:$0xff]  ;;  %2896 = vmatpush.msrb.mxu1 %v1513_v50  ;;  %2931 = vmatpush.msrb.mxu0 %v314_v19  ;;  %v170_v19 = vld [vmem:[#allocation2 + $0x2c8] sm:$0xff] }
 0x222   :  { %v1497_v23 = vld [vmem:[#allocation2 + $0x2c40] sm:$0xff]  ;;  %2866 = vmatmul.f32.vlgmr.msra.gmra.mxu0 %v4436_v21  ;;  %2877 = vmatpush.msrb.mxu3 %v1241_v56  ;;  %v458_v21 = vld [vmem:[#allocation2 + $0xbc8] sm:$0xff]  ;;  %v2527_v56 = vpop.f32.mrf.mxu1 }
 0x223   :  { %v1225_v60 = vld [vmem:[#allocation2 + $0x23c0] sm:$0xff]  ;;  %2897 = vmatpush.msrb.mxu1 %v1497_v23  ;;  %2932 = vmatpush.msrb.mxu0 %v298_v58  ;;  %v378_v52 = vld [vmem:[#allocation2 + $0x948] sm:$0xff] }
 0x224   :  { %v1481_v1 = vld [vmem:[#allocation2 + $0x2bc0] sm:$0xff]  ;;  %2955 = vmatpush.msra.mxu2 %v506_v59  ;;  %2878 = vmatpush.msrb.mxu3 %v1225_v60  ;;  %v842_v23 = vld [vmem:[#allocation2 + $0x17c8] sm:$0xff]  ;;  %v2548_v59 = vadd.f32 %v2547_v39, %v2527_v56  ;;  %v1988_v56 = vadd.f32 %v4421_v12, %v4416_v34 }
 0x225   :  { %v1209_v46 = vld [vmem:[#allocation2 + $0x2340] sm:$0xff]  ;;  %2898 = vmatpush.msrb.mxu1 %v1481_v1  ;;  %2933 = vmatpush.msrb.mxu0 %v282_v63  ;;  %v1098_v58 = vld [vmem:[#allocation2 + $0x1fc8] sm:$0xff] }
 0x226   :  { %v1465_v6 = vld [vmem:[#allocation2 + $0x2b40] sm:$0xff]  ;;  %2956 = vmatpush.msra.mxu2 %v490_v5  ;;  %2879 = vmatpush.msrb.mxu3 %v1209_v46  ;;  %v154_v60 = vld [vmem:[#allocation2 + $0x248] sm:$0xff]  ;;  %v2567_v46 = vpop.f32.mrf.mxu0  ;;  %v2008_v34 = vadd.f32 %v4418_v62, %v1988_v56 }
 0x227   :  { %v1193_v13 = vld [vmem:[#allocation2 + $0x22c0] sm:$0xff]  ;;  %2899 = vmatpush.msrb.mxu1 %v1465_v6  ;;  %2934 = vmatpush.msrb.mxu0 %v266_v8  ;;  %v362_v1 = vld [vmem:[#allocation2 + $0x8c8] sm:$0xff]  ;;  %v2587_v6 = vpop.f32.mrf.mxu2 }
 0x228   :  { %v1449_v7 = vld [vmem:[#allocation2 + $0x2ac0] sm:$0xff]  ;;  %2957 = vmatpush.msra.mxu2 %v474_v10  ;;  %2880 = vmatpush.msrb.mxu3 %v1193_v13  ;;  %v826_v63 = vld [vmem:[#allocation2 + $0x1748] sm:$0xff]  ;;  %v2568_v10 = vadd.f32 %v2567_v46, %v2548_v59 }
 0x229   :  { %v1177_v18 = vld [vmem:[#allocation2 + $0x2240] sm:$0xff]  ;;  %2900 = vmatpush.msrb.mxu1 %v1449_v7  ;;  %2935 = vmatpush.msrb.mxu0 %v250_v16  ;;  %v1082_v5 = vld [vmem:[#allocation2 + $0x1f48] sm:$0xff] }
 0x22a   :  { %v1433_v28 = vld [vmem:[#allocation2 + $0x2a40] sm:$0xff]  ;;  %2958 = vmatpush.msra.mxu2 %v458_v21  ;;  %2881 = vmatpush.msrb.mxu3 %v1177_v18  ;;  %v138_v8 = vld [vmem:[#allocation2 + $0x1c8] sm:$0xff]  ;;  %v4475_v18 = vadd.f32 %v2587_v6, %v2568_v10 }
 0x22b   :  { %v1161_v31 = vld [vmem:[#allocation2 + $0x21c0] sm:$0xff]  ;;  %2901 = vmatpush.msrb.mxu1 %v1433_v28  ;;  %2936 = vmatpush.msrb.mxu0 %v234_v25  ;;  %v346_v13 = vld [vmem:[#allocation2 + $0x848] sm:$0xff] }
 0x22c   :  { %v1417_v33 = vld [vmem:[#allocation2 + $0x29c0] sm:$0xff]  ;;  %2959 = vmatpush.msra.mxu2 %v442_v30  ;;  %2882 = vmatpush.msrb.mxu3 %v1161_v31  ;;  %v810_v7 = vld [vmem:[#allocation2 + $0x16c8] sm:$0xff] }
 0x22d   :  { %v1145_v38 = vld [vmem:[#allocation2 + $0x2140] sm:$0xff]  ;;  %2902 = vmatpush.msrb.mxu1 %v1417_v33  ;;  %2937 = vmatpush.msrb.mxu0 %v218_v35  ;;  %v1066_v16 = vld [vmem:[#allocation2 + $0x1ec8] sm:$0xff] }
 0x22e   :  { %v1401_v4 = vld [vmem:[#allocation2 + $0x2940] sm:$0xff]  ;;  %2960 = vmatpush.msra.mxu2 %v426_v36  ;;  %2883 = vmatpush.msrb.mxu3 %v1145_v38  ;;  %v122_v21 = vld [vmem:[#allocation2 + $0x148] sm:$0xff] }
 0x22f   :  { %v1129_v32 = vld [vmem:[#allocation2 + $0x20c0] sm:$0xff]  ;;  %2903 = vmatpush.msrb.mxu1 %v1401_v4  ;;  %2938 = vmatpush.msrb.mxu0 %v202_v42  ;;  %v794_v28 = vld [vmem:[#allocation2 + $0x1648] sm:$0xff] }
 0x230   :  { %v1385_v24 = vld [vmem:[#allocation2 + $0x28c0] sm:$0xff]  ;;  %2961 = vmatpush.msra.mxu2 %v410_v43  ;;  %2884 = vmatpush.msrb.mxu3 %v1129_v32  ;;  %v1050_v25 = vld [vmem:[#allocation2 + $0x1e48] sm:$0xff] }
 0x231   :  { %v1113_v49 = vld [vmem:[#allocation2 + $0x2040] sm:$0xff]  ;;  %2904 = vmatpush.msrb.mxu1 %v1385_v24  ;;  %2939 = vmatpush.msrb.mxu0 %v186_v45  ;;  %v106_v30 = vld [vmem:[#allocation2 + $0xc8] sm:$0xff] }
 0x232   :  { %v1369_v50 = vld [vmem:[#allocation2 + $0x2840] sm:$0xff]  ;;  %2962 = vmatpush.msra.mxu2 %v394_v9  ;;  %2885 = vmatpush.msrb.mxu3 %v1113_v49  ;;  %v1594_v31 = vld [vmem:[#allocation2 + $0x2f48] sm:$0xff] }
 0x233   :  { %2905 = vmatpush.msrb.mxu1 %v1369_v50  ;;  %2940 = vmatpush.msrb.mxu0 %v170_v19  ;;  %v778_v33 = vld [vmem:[#allocation2 + $0x15c8] sm:$0xff] }
 0x234   :  { %2886 = vmatmul.f32.vlgmr.msrb.gmra.mxu3 %v4445_v44  ;;  %2963 = vmatpush.msra.mxu2 %v378_v52  ;;  %v1610_v44 = vld [vmem:[#allocation2 + $0x2fc8] sm:$0xff] }
 0x235   :  { %2970 = vmatpush.msra.mxu3 %v842_v23  ;;  %2990 = vmatpush.msra.mxu1 %v1098_v58  ;;  %v1034_v35 = vld [vmem:[#allocation2 + $0x1dc8] sm:$0xff] }
 0x236   :  { %2941 = vmatpush.msrb.mxu0 %v154_v60  ;;  %2964 = vmatpush.msra.mxu2 %v362_v1  ;;  %v90_v36 = vld [vmem:[#allocation2 + $0x48] sm:$0xff] }
 0x237   :  { %2971 = vmatpush.msra.mxu3 %v826_v63  ;;  %2991 = vmatpush.msra.mxu1 %v1082_v5  ;;  %v1578_v38 = vld [vmem:[#allocation2 + $0x2ec8] sm:$0xff]  ;;  %v2607_v5 = vpop.f32.mrf.mxu1 }
 0x238   :  { %2942 = vmatpush.msrb.mxu0 %v138_v8  ;;  %2965 = vmatpush.msra.mxu2 %v346_v13  ;;  %v1018_v4 = vld [vmem:[#allocation2 + $0x1d48] sm:$0xff]  ;;  %v2608_v8 = vadd.f32 %v2607_v5, %v4475_v18  ;;  %v2028_v18 = vadd.f32 %v4423_v47, %v2008_v34  ;;  %v283_v34 = vld [vmem:[#allocation2 + $0x650] sm:$0xff] }
 0x239   :  { %2972 = vmatpush.msra.mxu3 %v810_v7  ;;  %2992 = vmatpush.msra.mxu1 %v1066_v16  ;;  %v1354_v42 = vld [vmem:[#allocation2 + $0x27c8] sm:$0xff] }
 0x23a   :  { %2943 = vmatpush.msrb.mxu0 %v122_v21  ;;  %3030 = vmatpush.msrb.mxu2 %v1610_v44  ;;  %v1562_v43 = vld [vmem:[#allocation2 + $0x2e48] sm:$0xff] }
 0x23b   :  { %2973 = vmatpush.msra.mxu3 %v794_v28  ;;  %2993 = vmatpush.msra.mxu1 %v1050_v25  ;;  %v746_v32 = vld [vmem:[#allocation2 + $0x14c8] sm:$0xff] }
 0x23c   :  { %2944 = vmatpush.msrb.mxu0 %v106_v30  ;;  %3031 = vmatpush.msrb.mxu2 %v1594_v31  ;;  %v1002_v24 = vld [vmem:[#allocation2 + $0x1cc8] sm:$0xff] }
 0x23d   :  { %2906 = vmatmul.f32.vlgmr.msrb.gmra.mxu1 %v4448_v53  ;;  %2974 = vmatpush.msra.mxu3 %v778_v33  ;;  %v1338_v45 = vld [vmem:[#allocation2 + $0x2748] sm:$0xff]  ;;  %v2048_v33 = vadd.f32 %v4425_v54, %v2028_v18  ;;  %v251_v18 = vld [vmem:[#allocation2 + $0x550] sm:$0xff] }
 0x23e   :  { %2994 = vmatpush.msra.mxu1 %v1034_v35  ;;  %2945 = vmatpush.msrb.mxu0 %v90_v36  ;;  %v1546_v9 = vld [vmem:[#allocation2 + $0x2dc8] sm:$0xff] }
 0x23f   :  { %3032 = vmatpush.msrb.mxu2 %v1578_v38  ;;  %2975 = vmatpush.msra.mxu3 %v762_v29  ;;  %v730_v49 = vld [vmem:[#allocation2 + $0x1448] sm:$0xff]  ;;  %v2068_v47 = vadd.f32 %v4429_v3, %v2048_v33  ;;  %v235_v33 = vld [vmem:[#allocation2 + $0x4d0] sm:$0xff] }
 0x240   :  { %2995 = vmatpush.msra.mxu1 %v1018_v4  ;;  %3010 = vmatpush.msra.mxu0 %v1354_v42  ;;  %v986_v39 = vld [vmem:[#allocation2 + $0x1c48] sm:$0xff] }
 0x241   :  { %3033 = vmatpush.msrb.mxu2 %v1562_v43  ;;  %2976 = vmatpush.msra.mxu3 %v746_v32  ;;  %v1322_v53 = vld [vmem:[#allocation2 + $0x26c8] sm:$0xff]  ;;  %v2627_v43 = vpop.f32.mrf.mxu3  ;;  %v4488_v3 = vadd.f32 %v4427_v55, %v2068_v47  ;;  %v507_v47 = vld [vmem:[#allocation2 + $0xd50] sm:$0xff] }
 0x242   :  { %2996 = vmatpush.msra.mxu1 %v1002_v24  ;;  %v1530_v50 = vld [vmem:[#allocation2 + $0x2d48] sm:$0xff]  ;;  %3011 = vmatpush.msra.mxu0 %v1338_v45  ;;  %v2628_v54 = vadd.f32 %v2627_v43, %v2608_v8  ;;  %v1099_v8 = vld [vmem:[#allocation2 + $0x1fd0] sm:$0xff] }
 0x243   :  { %3034 = vmatpush.msrb.mxu2 %v1546_v9  ;;  %v714_v19 = vld [vmem:[#allocation2 + $0x13c8] sm:$0xff]  ;;  %2977 = vmatpush.msra.mxu3 %v730_v49  ;;  %v491_v43 = vld [vmem:[#allocation2 + $0xcd0] sm:$0xff] }
 0x244   :  { %v970_v52 = vld [vmem:[#allocation2 + $0x1bc8] sm:$0xff]  ;;  %2997 = vmatpush.msra.mxu1 %v986_v39  ;;  %3012 = vmatpush.msra.mxu0 %v1322_v53  ;;  %v331_v39 = vld [vmem:[#allocation2 + $0x7d0] sm:$0xff]  ;;  %v2647_v53 = vpop.f32.mrf.mxu0 }
 0x245   :  { %v1306_v23 = vld [vmem:[#allocation2 + $0x2648] sm:$0xff]  ;;  %3035 = vmatpush.msrb.mxu2 %v1530_v50  ;;  %2978 = vmatpush.msra.mxu3 %v714_v19  ;;  %v4490_v19 = vadd.f32 %v2647_v53, %v2628_v54  ;;  %v203_v54 = vld [vmem:[#allocation2 + $0x3d0] sm:$0xff] }
 0x246   :  { %v1514_v58 = vld [vmem:[#allocation2 + $0x2cc8] sm:$0xff]  ;;  %2998 = vmatpush.msra.mxu1 %v970_v52  ;;  %3013 = vmatpush.msra.mxu0 %v1306_v23  ;;  %v315_v23 = vld [vmem:[#allocation2 + $0x750] sm:$0xff] }
 0x247   :  { %v698_v59 = vld [vmem:[#allocation2 + $0x1348] sm:$0xff]  ;;  %3036 = vmatpush.msrb.mxu2 %v1514_v58  ;;  %v3912_v58 = vmax.f32 %v4488_v3, %v4490_v19  ;;  %v779_v53 = vld [vmem:[#allocation2 + $0x15d0] sm:$0xff] }
 0x248   :  { %v954_v60 = vld [vmem:[#allocation2 + $0x1b48] sm:$0xff]  ;;  %2979 = vmatpush.msra.mxu3 %v698_v59  ;;  %v4494_v59 = vld.sshfl [vmem:[#allocation1 + $0x8] sm:$0xff pattern:$0x73625140] }
 0x249   :  { %v1290_v1 = vld [vmem:[#allocation2 + $0x25c8] sm:$0xff]  ;;  %2999 = vmatpush.msra.mxu1 %v954_v60  ;;  %2966 = vmatmul.f32.vlgmr.msra.gmra.mxu2 %v4494_v59  ;;  %v587_v60 = vld [vmem:[#allocation2 + $0xfd0] sm:$0xff] }
 0x24a   :  { %v1498_v63 = vld [vmem:[#allocation2 + $0x2c48] sm:$0xff]  ;;  %3014 = vmatpush.msra.mxu0 %v1290_v1 }
 0x24b   :  { %v682_v46 = vld [vmem:[#allocation2 + $0x12c8] sm:$0xff]  ;;  %3037 = vmatpush.msrb.mxu2 %v1498_v63  ;;  %v299_v63 = vld [vmem:[#allocation2 + $0x6d0] sm:$0xff] }
 0x24c   :  { %v938_v6 = vld [vmem:[#allocation2 + $0x1ac8] sm:$0xff]  ;;  %2980 = vmatpush.msra.mxu3 %v682_v46  ;;  %v571_v46 = vld [vmem:[#allocation2 + $0xf50] sm:$0xff] }
 0x24d   :  { %v1274_v12 = vld [vmem:[#allocation2 + $0x2548] sm:$0xff]  ;;  %3000 = vmatpush.msra.mxu1 %v938_v6 }
 0x24e   :  { %v1482_v10 = vld [vmem:[#allocation2 + $0x2bc8] sm:$0xff]  ;;  %3015 = vmatpush.msra.mxu0 %v1274_v12  ;;  %v555_v12 = vld [vmem:[#allocation2 + $0xed0] sm:$0xff] }
 0x24f   :  { %v666_v13 = vld [vmem:[#allocation2 + $0x1248] sm:$0xff]  ;;  %3038 = vmatpush.msrb.mxu2 %v1482_v10  ;;  %v4500_v10 = vld.sshfl [vmem:[#allocation1] sm:$0xff pattern:$0x73625140] }
 0x250   :  { %v922_v7 = vld [vmem:[#allocation2 + $0x1a48] sm:$0xff]  ;;  %2981 = vmatpush.msra.mxu3 %v666_v13  ;;  %2946 = vmatmul.f32.vlgmr.msrb.gmra.mxu0 %v4500_v10 }
 0x251   :  { %v1258_v16 = vld [vmem:[#allocation2 + $0x24c8] sm:$0xff]  ;;  %3001 = vmatpush.msra.mxu1 %v922_v7  ;;  %v1083_v7 = vld [vmem:[#allocation2 + $0x1f50] sm:$0xff] }
 0x252   :  { %v1466_v21 = vld [vmem:[#allocation2 + $0x2b48] sm:$0xff]  ;;  %3016 = vmatpush.msra.mxu0 %v1258_v16  ;;  %v267_v16 = vld [vmem:[#allocation2 + $0x5d0] sm:$0xff] }
 0x253   :  { %v650_v44 = vld [vmem:[#allocation2 + $0x11c8] sm:$0xff]  ;;  %3039 = vmatpush.msrb.mxu2 %v1466_v21 }
 0x254   :  { %v906_v28 = vld [vmem:[#allocation2 + $0x19c8] sm:$0xff]  ;;  %2982 = vmatpush.msra.mxu3 %v650_v44  ;;  %v539_v44 = vld [vmem:[#allocation2 + $0xe50] sm:$0xff] }
 0x255   :  { %v1242_v62 = vld [vmem:[#allocation2 + $0x2448] sm:$0xff]  ;;  %3002 = vmatpush.msra.mxu1 %v906_v28  ;;  %v1067_v28 = vld [vmem:[#allocation2 + $0x1ed0] sm:$0xff] }
 0x256   :  { %v1450_v25 = vld [vmem:[#allocation2 + $0x2ac8] sm:$0xff]  ;;  %3017 = vmatpush.msra.mxu0 %v1242_v62  ;;  %v4503_v62 = vld.sshfl [vmem:[#allocation1 + $0x28] sm:$0xff pattern:$0x73625140] }
 0x257   :  { %v634_v30 = vld [vmem:[#allocation2 + $0x1148] sm:$0xff]  ;;  %3040 = vmatpush.msrb.mxu2 %v1450_v25  ;;  %v843_v25 = vld [vmem:[#allocation2 + $0x17d0] sm:$0xff] }
 0x258   :  { %v890_v31 = vld [vmem:[#allocation2 + $0x1948] sm:$0xff]  ;;  %2983 = vmatpush.msra.mxu3 %v634_v30  ;;  %v1051_v30 = vld [vmem:[#allocation2 + $0x1e50] sm:$0xff] }
 0x259   :  { %v1226_v35 = vld [vmem:[#allocation2 + $0x23c8] sm:$0xff]  ;;  %3003 = vmatpush.msra.mxu1 %v890_v31  ;;  %v523_v31 = vld [vmem:[#allocation2 + $0xdd0] sm:$0xff] }
 0x25a   :  { %v1434_v36 = vld [vmem:[#allocation2 + $0x2a48] sm:$0xff]  ;;  %3018 = vmatpush.msra.mxu0 %v1226_v35  ;;  %v4506_v35 = vld.sshfl [vmem:[#allocation1 + $0x18] sm:$0xff pattern:$0x73625140] }
 0x25b   :  { %v618_v38 = vld [vmem:[#allocation2 + $0x10c8] sm:$0xff]  ;;  %3041 = vmatpush.msrb.mxu2 %v1434_v36  ;;  %v827_v36 = vld [vmem:[#allocation2 + $0x1750] sm:$0xff] }
 0x25c   :  { %v874_v29 = vld [vmem:[#allocation2 + $0x18c8] sm:$0xff]  ;;  %2984 = vmatpush.msra.mxu3 %v618_v38  ;;  %v1035_v38 = vld [vmem:[#allocation2 + $0x1dd0] sm:$0xff] }
 0x25d   :  { %v1210_v4 = vld [vmem:[#allocation2 + $0x2348] sm:$0xff]  ;;  %3004 = vmatpush.msra.mxu1 %v874_v29 }
 0x25e   :  { %v1418_v42 = vld [vmem:[#allocation2 + $0x29c8] sm:$0xff]  ;;  %3019 = vmatpush.msra.mxu0 %v1210_v4  ;;  %v219_v4 = vld [vmem:[#allocation2 + $0x450] sm:$0xff] }
 0x25f   :  { %v602_v32 = vld [vmem:[#allocation2 + $0x1048] sm:$0xff]  ;;  %3042 = vmatpush.msrb.mxu2 %v1418_v42  ;;  %v811_v42 = vld [vmem:[#allocation2 + $0x16d0] sm:$0xff] }
 0x260   :  { %v858_v24 = vld [vmem:[#allocation2 + $0x1848] sm:$0xff]  ;;  %2985 = vmatpush.msra.mxu3 %v602_v32  ;;  %v1019_v32 = vld [vmem:[#allocation2 + $0x1d50] sm:$0xff] }
 0x261   :  { %v1194_v45 = vld [vmem:[#allocation2 + $0x22c8] sm:$0xff]  ;;  %3005 = vmatpush.msra.mxu1 %v858_v24  ;;  %v4513_v24 = vld.sshfl [vmem:[#allocation1 + $0x20] sm:$0xff pattern:$0x73625140] }
 0x262   :  { %v1402_v9 = vld [vmem:[#allocation2 + $0x2948] sm:$0xff]  ;;  %3020 = vmatpush.msra.mxu0 %v1194_v45  ;;  %3006 = vmatmul.f32.vlgmr.msra.gmra.mxu1 %v4506_v35  ;;  %v795_v45 = vld [vmem:[#allocation2 + $0x1650] sm:$0xff] }
 0x263   :  { %v1642_v49 = vld [vmem:[#allocation2 + $0x30c8] sm:$0xff]  ;;  %3043 = vmatpush.msrb.mxu2 %v1402_v9  ;;  %3070 = vmatpush.msrb.mxu1 %v331_v39  ;;  %v475_v9 = vld [vmem:[#allocation2 + $0xc50] sm:$0xff] }
 0x264   :  { %v1178_v50 = vld [vmem:[#allocation2 + $0x2248] sm:$0xff]  ;;  %3064 = vmatpush.msrb.mxu3 %v1642_v49  ;;  %v1003_v49 = vld [vmem:[#allocation2 + $0x1cd0] sm:$0xff] }
 0x265   :  { %v1386_v52 = vld [vmem:[#allocation2 + $0x28c8] sm:$0xff]  ;;  %3021 = vmatpush.msra.mxu0 %v1178_v50  ;;  %3071 = vmatpush.msrb.mxu1 %v315_v23  ;;  %v187_v39 = vld [vmem:[#allocation2 + $0x350] sm:$0xff] }
 0x266   :  { %v1626_v56 = vld [vmem:[#allocation2 + $0x3048] sm:$0xff]  ;;  %3044 = vmatpush.msrb.mxu2 %v1386_v52  ;;  %v459_v50 = vld [vmem:[#allocation2 + $0xbd0] sm:$0xff] }
 0x267   :  { %v1162_v55 = vld [vmem:[#allocation2 + $0x21c8] sm:$0xff]  ;;  %3065 = vmatpush.msrb.mxu3 %v1626_v56  ;;  %3072 = vmatpush.msrb.mxu1 %v299_v63  ;;  %v987_v52 = vld [vmem:[#allocation2 + $0x1c50] sm:$0xff] }
 0x268   :  { %v1370_v1 = vld [vmem:[#allocation2 + $0x2848] sm:$0xff]  ;;  %3022 = vmatpush.msra.mxu0 %v1162_v55  ;;  %v171_v56 = vld [vmem:[#allocation2 + $0x2d0] sm:$0xff]  ;;  %v2667_v55 = vpop.f32.mrf.mxu2 }
 0x269   :  { %v4497_v5 = vld.sshfl [vmem:[#allocation1 + $0x10] sm:$0xff pattern:$0x73625140]  ;;  %3045 = vmatpush.msrb.mxu2 %v1370_v1  ;;  %3073 = vmatpush.msrb.mxu1 %v283_v34  ;;  %v763_v23 = vld [vmem:[#allocation2 + $0x1550] sm:$0xff] }
 0x26a   :  { %2986 = vmatmul.f32.vlgmr.msra.gmra.mxu3 %v4497_v5  ;;  %v1146_v6 = vld [vmem:[#allocation2 + $0x2148] sm:$0xff]  ;;  %3046 = vmatmul.f32.vlgmr.msrb.gmra.mxu2 %v4503_v62  ;;  %v971_v1 = vld [vmem:[#allocation2 + $0x1bd0] sm:$0xff] }
 0x26b   :  { %3090 = vmatpush.msra.mxu3 %v587_v60  ;;  %v1130_v13 = vld [vmem:[#allocation2 + $0x20c8] sm:$0xff]  ;;  %3023 = vmatpush.msra.mxu0 %v1146_v6  ;;  %v443_v60 = vld [vmem:[#allocation2 + $0xb50] sm:$0xff] }
 0x26c   :  { %3130 = vmatpush.msra.mxu2 %v1099_v8  ;;  %v1114_v21 = vld [vmem:[#allocation2 + $0x2048] sm:$0xff]  ;;  %3074 = vmatpush.msrb.mxu1 %v267_v16  ;;  %v155_v63 = vld [vmem:[#allocation2 + $0x250] sm:$0xff] }
 0x26d   :  { %3091 = vmatpush.msra.mxu3 %v571_v46  ;;  %3024 = vmatpush.msra.mxu0 %v1130_v13  ;;  %v4509_v29 = vld.sshfl [vmem:[#allocation1 + $0x30] sm:$0xff pattern:$0x73625140]  ;;  %v747_v46 = vld [vmem:[#allocation2 + $0x14d0] sm:$0xff]  ;;  %v2687_v13 = vpop.f32.mrf.mxu0 }
 0x26e   :  { %3131 = vmatpush.msra.mxu2 %v1083_v7  ;;  %3075 = vmatpush.msrb.mxu1 %v251_v18  ;;  %v427_v6 = vld [vmem:[#allocation2 + $0xad0] sm:$0xff]  ;;  %v2707_v7 = vpop.f32.mrf.mxu1 }
 0x26f   :  { %3092 = vmatpush.msra.mxu3 %v555_v12  ;;  %3025 = vmatpush.msra.mxu0 %v1114_v21  ;;  %v955_v8 = vld [vmem:[#allocation2 + $0x1b50] sm:$0xff] }
 0x270   :  { %3132 = vmatpush.msra.mxu2 %v1067_v28  ;;  %3076 = vmatpush.msrb.mxu1 %v235_v33  ;;  %v139_v34 = vld [vmem:[#allocation2 + $0x1d0] sm:$0xff]  ;;  %v2727_v33 = vpop.f32.mrf.mxu3 }
 0x271   :  { %3093 = vmatpush.msra.mxu3 %v539_v44  ;;  %3110 = vmatpush.msrb.mxu0 %v843_v25  ;;  %v731_v12 = vld [vmem:[#allocation2 + $0x1450] sm:$0xff]  ;;  %v2688_v44 = vadd.f32 %v2687_v13, %v2667_v55  ;;  %v332_v13 = vld [vmem:[#allocation2 + $0x7d8] sm:$0xff] }
 0x272   :  { %4106 = vmatmul.msk.f32.vlgmr.msrb.gmra.mxu3 %vm1667_vm0, %v4509_v29  ;;  %3133 = vmatpush.msra.mxu2 %v1051_v30  ;;  %v411_v16 = vld [vmem:[#allocation2 + $0xa50] sm:$0xff] }
 0x273   :  { %3094 = vmatpush.msra.mxu3 %v523_v31  ;;  %3111 = vmatpush.msrb.mxu0 %v827_v36  ;;  %v939_v21 = vld [vmem:[#allocation2 + $0x1ad0] sm:$0xff]  ;;  %v2708_v31 = vadd.f32 %v2707_v7, %v2688_v44 }
 0x274   :  { %3134 = vmatpush.msra.mxu2 %v1035_v38  ;;  %3026 = vmatmul.f32.vlgmr.msra.gmra.mxu0 %v4513_v24  ;;  %v123_v28 = vld [vmem:[#allocation2 + $0x150] sm:$0xff] }
 0x275   :  { %3095 = vmatpush.msra.mxu3 %v507_v47  ;;  %3077 = vmatpush.msrb.mxu1 %v219_v4  ;;  %v715_v18 = vld [vmem:[#allocation2 + $0x13d0] sm:$0xff] }
 0x276   :  { %3112 = vmatpush.msrb.mxu0 %v811_v42  ;;  %3135 = vmatpush.msra.mxu2 %v1019_v32  ;;  %v395_v25 = vld [vmem:[#allocation2 + $0x9d0] sm:$0xff]  ;;  %v2728_v42 = vadd.f32 %v2727_v33, %v2708_v31  ;;  %v300_v31 = vld [vmem:[#allocation2 + $0x6d8] sm:$0xff] }
 0x277   :  { %3096 = vmatpush.msra.mxu3 %v491_v43  ;;  %3078 = vmatpush.msrb.mxu1 %v203_v54  ;;  %v923_v30 = vld [vmem:[#allocation2 + $0x1a50] sm:$0xff]  ;;  %v2747_v54 = vpop.f32.mrf.mxu2 }
 0x278   :  { %3113 = vmatpush.msrb.mxu0 %v795_v45  ;;  %3136 = vmatpush.msra.mxu2 %v1003_v49  ;;  %v107_v36 = vld [vmem:[#allocation2 + $0xd0] sm:$0xff]  ;;  %v2748_v49 = vadd.f32 %v2747_v54, %v2728_v42  ;;  %v588_v54 = vld [vmem:[#allocation2 + $0xfd8] sm:$0xff] }
 0x279   :  { %3097 = vmatpush.msra.mxu3 %v475_v9  ;;  %3079 = vmatpush.msrb.mxu1 %v187_v39  ;;  %v699_v38 = vld [vmem:[#allocation2 + $0x1350] sm:$0xff] }
 0x27a   :  { %3114 = vmatpush.msrb.mxu0 %v779_v53  ;;  %3137 = vmatpush.msra.mxu2 %v987_v52  ;;  %v379_v47 = vld [vmem:[#allocation2 + $0x950] sm:$0xff] }
 0x27b   :  { %3098 = vmatpush.msra.mxu3 %v459_v50  ;;  %3080 = vmatpush.msrb.mxu1 %v171_v56  ;;  %v907_v4 = vld [vmem:[#allocation2 + $0x19d0] sm:$0xff]  ;;  %v2767_v56 = vpop.f32.mrf.mxu0 }
 0x27c   :  { %3115 = vmatpush.msrb.mxu0 %v763_v23  ;;  %3138 = vmatpush.msra.mxu2 %v971_v1  ;;  %v91_v43 = vld [vmem:[#allocation2 + $0x50] sm:$0xff] }
 0x27d   :  { %3099 = vmatpush.msra.mxu3 %v443_v60  ;;  %3081 = vmatpush.msrb.mxu1 %v155_v63  ;;  %v683_v32 = vld [vmem:[#allocation2 + $0x12d0] sm:$0xff]  ;;  %v2768_v60 = vadd.f32 %v2767_v56, %v2748_v49  ;;  %v252_v49 = vld [vmem:[#allocation2 + $0x558] sm:$0xff] }
 0x27e   :  { %3116 = vmatpush.msrb.mxu0 %v747_v46  ;;  %3139 = vmatpush.msra.mxu2 %v955_v8  ;;  %v363_v45 = vld [vmem:[#allocation2 + $0x8d0] sm:$0xff]  ;;  %v2787_v46 = vpop.f32.mrf.mxu1  ;;  %v556_v56 = vld [vmem:[#allocation2 + $0xed8] sm:$0xff] }
 0x27f   :  { %3100 = vmatpush.msra.mxu3 %v427_v6  ;;  %3082 = vmatpush.msrb.mxu1 %v139_v34  ;;  %v891_v9 = vld [vmem:[#allocation2 + $0x1950] sm:$0xff]  ;;  %v4516_v8 = vadd.f32 %v2787_v46, %v2768_v60  ;;  %v220_v60 = vld [vmem:[#allocation2 + $0x458] sm:$0xff] }
 0x280   :  { %3117 = vmatpush.msrb.mxu0 %v731_v12  ;;  %3140 = vmatpush.msra.mxu2 %v939_v21  ;;  %v1355_v39 = vld [vmem:[#allocation2 + $0x27d0] sm:$0xff] }
 0x281   :  { %3101 = vmatpush.msra.mxu3 %v411_v16  ;;  %3083 = vmatpush.msrb.mxu1 %v123_v28  ;;  %v667_v53 = vld [vmem:[#allocation2 + $0x1250] sm:$0xff]  ;;  %v316_v28 = vld [vmem:[#allocation2 + $0x758] sm:$0xff] }
 0x282   :  { %3118 = vmatpush.msrb.mxu0 %v715_v18  ;;  %3141 = vmatpush.msra.mxu2 %v923_v30  ;;  %v347_v50 = vld [vmem:[#allocation2 + $0x850] sm:$0xff] }
 0x283   :  { %3102 = vmatpush.msra.mxu3 %v395_v25  ;;  %3084 = vmatpush.msrb.mxu1 %v107_v36  ;;  %v875_v52 = vld [vmem:[#allocation2 + $0x18d0] sm:$0xff] }
 0x284   :  { %3119 = vmatpush.msrb.mxu0 %v699_v38  ;;  %3142 = vmatpush.msra.mxu2 %v907_v4  ;;  %v1339_v23 = vld [vmem:[#allocation2 + $0x2750] sm:$0xff] }
 0x285   :  { %3103 = vmatpush.msra.mxu3 %v379_v47  ;;  %3085 = vmatpush.msrb.mxu1 %v91_v43  ;;  %v651_v55 = vld [vmem:[#allocation2 + $0x11d0] sm:$0xff]  ;;  %v284_v47 = vld [vmem:[#allocation2 + $0x658] sm:$0xff] }
 0x286   :  { %3120 = vmatpush.msrb.mxu0 %v683_v32  ;;  %3143 = vmatpush.msra.mxu2 %v891_v9  ;;  %v1611_v1 = vld [vmem:[#allocation2 + $0x2fd0] sm:$0xff]  ;;  %v268_v32 = vld [vmem:[#allocation2 + $0x5d8] sm:$0xff] }
 0x287   :  { %3104 = vmatpush.msra.mxu3 %v363_v45  ;;  %3150 = vmatpush.msra.mxu1 %v1355_v39  ;;  %v859_v63 = vld [vmem:[#allocation2 + $0x1850] sm:$0xff]  ;;  %v572_v39 = vld [vmem:[#allocation2 + $0xf58] sm:$0xff] }
 0x288   :  { %3121 = vmatpush.msrb.mxu0 %v667_v53  ;;  %3144 = vmatpush.msra.mxu2 %v875_v52  ;;  %v1323_v6 = vld [vmem:[#allocation2 + $0x26d0] sm:$0xff]  ;;  %v236_v52 = vld [vmem:[#allocation2 + $0x4d8] sm:$0xff] }
 0x289   :  { %3105 = vmatpush.msra.mxu3 %v347_v50  ;;  %3151 = vmatpush.msra.mxu1 %v1339_v23  ;;  %v635_v34 = vld [vmem:[#allocation2 + $0x1150] sm:$0xff] }
 0x28a   :  { %3122 = vmatpush.msrb.mxu0 %v651_v55  ;;  %v1595_v12 = vld [vmem:[#allocation2 + $0x2f50] sm:$0xff]  ;;  %3145 = vmatpush.msra.mxu2 %v859_v63 }
 0x28b   :  { %3170 = vmatpush.msrb.mxu3 %v1611_v1  ;;  %v1307_v7 = vld [vmem:[#allocation2 + $0x2650] sm:$0xff]  ;;  %3152 = vmatpush.msra.mxu1 %v1323_v6  ;;  %v540_v1 = vld [vmem:[#allocation2 + $0xe58] sm:$0xff] }
 0x28c   :  { %3106 = vmatmul.f32.vlgmr.msra.gmra.mxu3 %v4494_v59  ;;  %v619_v21 = vld [vmem:[#allocation2 + $0x10d0] sm:$0xff]  ;;  %3123 = vmatpush.msrb.mxu0 %v635_v34  ;;  %v204_v6 = vld [vmem:[#allocation2 + $0x3d8] sm:$0xff] }
 0x28d   :  { %v1579_v44 = vld [vmem:[#allocation2 + $0x2ed0] sm:$0xff]  ;;  %3171 = vmatpush.msrb.mxu3 %v1595_v12  ;;  %3210 = vmatpush.msrb.mxu2 %v332_v13  ;;  %v524_v34 = vld [vmem:[#allocation2 + $0xdd8] sm:$0xff] }
 0x28e   :  { %v1291_v18 = vld [vmem:[#allocation2 + $0x25d0] sm:$0xff]  ;;  %3153 = vmatpush.msra.mxu1 %v1307_v7  ;;  %3124 = vmatpush.msrb.mxu0 %v619_v21  ;;  %v188_v7 = vld [vmem:[#allocation2 + $0x358] sm:$0xff] }
 0x28f   :  { %v603_v25 = vld [vmem:[#allocation2 + $0x1050] sm:$0xff]  ;;  %3172 = vmatpush.msrb.mxu3 %v1579_v44  ;;  %3211 = vmatpush.msrb.mxu2 %v316_v28  ;;  %v508_v21 = vld [vmem:[#allocation2 + $0xd58] sm:$0xff] }
 0x290   :  { %v1563_v30 = vld [vmem:[#allocation2 + $0x2e50] sm:$0xff]  ;;  %3154 = vmatpush.msra.mxu1 %v1291_v18  ;;  %3125 = vmatpush.msrb.mxu0 %v603_v25  ;;  %v172_v18 = vld [vmem:[#allocation2 + $0x2d8] sm:$0xff] }
 0x291   :  { %v1275_v33 = vld [vmem:[#allocation2 + $0x2550] sm:$0xff]  ;;  %3146 = vmatmul.f32.vlgmr.msra.gmra.mxu2 %v4506_v35  ;;  %3173 = vmatpush.msrb.mxu3 %v1563_v30  ;;  %v492_v25 = vld [vmem:[#allocation2 + $0xcd8] sm:$0xff] }
 0x292   :  { %v1643_v36 = vld [vmem:[#allocation2 + $0x30d0] sm:$0xff]  ;;  %3212 = vmatpush.msrb.mxu2 %v300_v31  ;;  %3155 = vmatpush.msra.mxu1 %v1275_v33  ;;  %v156_v33 = vld [vmem:[#allocation2 + $0x258] sm:$0xff] }
 0x293   :  { %v1547_v38 = vld [vmem:[#allocation2 + $0x2dd0] sm:$0xff]  ;;  %3204 = vmatpush.msra.mxu0 %v1643_v36  ;;  %3086 = vmatmul.f32.vlgmr.msrb.gmra.mxu1 %v4500_v10  ;;  %v476_v36 = vld [vmem:[#allocation2 + $0xc58] sm:$0xff] }
 0x294   :  { %v1259_v4 = vld [vmem:[#allocation2 + $0x24d0] sm:$0xff]  ;;  %3174 = vmatpush.msrb.mxu3 %v1547_v38  ;;  %3213 = vmatpush.msrb.mxu2 %v284_v47 }
 0x295   :  { %v1627_v42 = vld [vmem:[#allocation2 + $0x3050] sm:$0xff]  ;;  %3156 = vmatpush.msra.mxu1 %v1259_v4  ;;  %3126 = vmatmul.f32.vlgmr.msrb.gmra.mxu0 %v4497_v5  ;;  %v140_v4 = vld [vmem:[#allocation2 + $0x1d8] sm:$0xff] }
 0x296   :  { %v1531_v43 = vld [vmem:[#allocation2 + $0x2d50] sm:$0xff]  ;;  %3205 = vmatpush.msra.mxu0 %v1627_v42  ;;  %3214 = vmatpush.msrb.mxu2 %v268_v32  ;;  %v460_v42 = vld [vmem:[#allocation2 + $0xbd8] sm:$0xff] }
 0x297   :  { %v1243_v45 = vld [vmem:[#allocation2 + $0x2450] sm:$0xff]  ;;  %3175 = vmatpush.msrb.mxu3 %v1531_v43 }
 0x298   :  { %v1515_v9 = vld [vmem:[#allocation2 + $0x2cd0] sm:$0xff]  ;;  %3230 = vmatpush.msrb.mxu0 %v588_v54  ;;  %3157 = vmatpush.msra.mxu1 %v1243_v45  ;;  %v124_v54 = vld [vmem:[#allocation2 + $0x158] sm:$0xff] }
 0x299   :  { %v1227_v53 = vld [vmem:[#allocation2 + $0x23d0] sm:$0xff]  ;;  %3176 = vmatpush.msrb.mxu3 %v1515_v9  ;;  %3215 = vmatpush.msrb.mxu2 %v252_v49  ;;  %v444_v45 = vld [vmem:[#allocation2 + $0xb58] sm:$0xff] }
 0x29a   :  { %v1499_v50 = vld [vmem:[#allocation2 + $0x2c50] sm:$0xff]  ;;  %3231 = vmatpush.msrb.mxu0 %v572_v39  ;;  %3158 = vmatpush.msra.mxu1 %v1227_v53  ;;  %v844_v9 = vld [vmem:[#allocation2 + $0x17d8] sm:$0xff] }
 0x29b   :  { %v1211_v23 = vld [vmem:[#allocation2 + $0x2350] sm:$0xff]  ;;  %3177 = vmatpush.msrb.mxu3 %v1499_v50  ;;  %3216 = vmatpush.msrb.mxu2 %v236_v52  ;;  %v108_v39 = vld [vmem:[#allocation2 + $0xd8] sm:$0xff] }
 0x29c   :  { %v1483_v55 = vld [vmem:[#allocation2 + $0x2bd0] sm:$0xff]  ;;  %3232 = vmatpush.msrb.mxu0 %v556_v56  ;;  %3159 = vmatpush.msra.mxu1 %v1211_v23  ;;  %v428_v53 = vld [vmem:[#allocation2 + $0xad8] sm:$0xff] }
 0x29d   :  { %v1195_v63 = vld [vmem:[#allocation2 + $0x22d0] sm:$0xff]  ;;  %3178 = vmatpush.msrb.mxu3 %v1483_v55  ;;  %3217 = vmatpush.msrb.mxu2 %v220_v60  ;;  %v828_v50 = vld [vmem:[#allocation2 + $0x1758] sm:$0xff] }
 0x29e   :  { %v1467_v46 = vld [vmem:[#allocation2 + $0x2b50] sm:$0xff]  ;;  %3233 = vmatpush.msrb.mxu0 %v540_v1  ;;  %3160 = vmatpush.msra.mxu1 %v1195_v63  ;;  %v1100_v52 = vld [vmem:[#allocation2 + $0x1fd8] sm:$0xff] }
 0x29f   :  { %v1179_v12 = vld [vmem:[#allocation2 + $0x2250] sm:$0xff]  ;;  %3179 = vmatpush.msrb.mxu3 %v1467_v46  ;;  %3218 = vmatpush.msrb.mxu2 %v204_v6  ;;  %v92_v56 = vld [vmem:[#allocation2 + $0x58] sm:$0xff] }
 0x2a0   :  { %v1451_v13 = vld [vmem:[#allocation2 + $0x2ad0] sm:$0xff]  ;;  %3234 = vmatpush.msrb.mxu0 %v524_v34  ;;  %3161 = vmatpush.msra.mxu1 %v1179_v12  ;;  %v412_v23 = vld [vmem:[#allocation2 + $0xa58] sm:$0xff] }
 0x2a1   :  { %v1163_v44 = vld [vmem:[#allocation2 + $0x21d0] sm:$0xff]  ;;  %3180 = vmatpush.msrb.mxu3 %v1451_v13  ;;  %3219 = vmatpush.msrb.mxu2 %v188_v7  ;;  %v812_v55 = vld [vmem:[#allocation2 + $0x16d8] sm:$0xff] }
 0x2a2   :  { %v1435_v28 = vld [vmem:[#allocation2 + $0x2a50] sm:$0xff]  ;;  %3235 = vmatpush.msrb.mxu0 %v508_v21  ;;  %3162 = vmatpush.msra.mxu1 %v1163_v44  ;;  %v1084_v60 = vld [vmem:[#allocation2 + $0x1f58] sm:$0xff] }
 0x2a3   :  { %v1147_v30 = vld [vmem:[#allocation2 + $0x2150] sm:$0xff]  ;;  %3181 = vmatpush.msrb.mxu3 %v1435_v28  ;;  %3220 = vmatpush.msrb.mxu2 %v172_v18  ;;  %v1356_v1 = vld [vmem:[#allocation2 + $0x27d8] sm:$0xff] }
 0x2a4   :  { %v1419_v31 = vld [vmem:[#allocation2 + $0x29d0] sm:$0xff]  ;;  %3236 = vmatpush.msrb.mxu0 %v492_v25  ;;  %3163 = vmatpush.msra.mxu1 %v1147_v30  ;;  %v396_v63 = vld [vmem:[#allocation2 + $0x9d8] sm:$0xff] }
 0x2a5   :  { %v1131_v38 = vld [vmem:[#allocation2 + $0x20d0] sm:$0xff]  ;;  %3182 = vmatpush.msrb.mxu3 %v1419_v31  ;;  %3221 = vmatpush.msrb.mxu2 %v156_v33  ;;  %v796_v46 = vld [vmem:[#allocation2 + $0x1658] sm:$0xff] }
 0x2a6   :  { %v1403_v47 = vld [vmem:[#allocation2 + $0x2950] sm:$0xff]  ;;  %3237 = vmatpush.msrb.mxu0 %v476_v36  ;;  %3164 = vmatpush.msra.mxu1 %v1131_v38  ;;  %v1068_v6 = vld [vmem:[#allocation2 + $0x1ed8] sm:$0xff] }
 0x2a7   :  { %v1115_v43 = vld [vmem:[#allocation2 + $0x2050] sm:$0xff]  ;;  %3183 = vmatpush.msrb.mxu3 %v1403_v47  ;;  %3222 = vmatpush.msrb.mxu2 %v140_v4  ;;  %v1340_v34 = vld [vmem:[#allocation2 + $0x2758] sm:$0xff] }
 0x2a8   :  { %v1387_v32 = vld [vmem:[#allocation2 + $0x28d0] sm:$0xff]  ;;  %3238 = vmatpush.msrb.mxu0 %v460_v42  ;;  %3165 = vmatpush.msra.mxu1 %v1115_v43  ;;  %v380_v12 = vld [vmem:[#allocation2 + $0x958] sm:$0xff] }
 0x2a9   :  { %v1371_v49 = vld [vmem:[#allocation2 + $0x2850] sm:$0xff]  ;;  %3166 = vmatmul.f32.vlgmr.msra.gmra.mxu1 %v4513_v24  ;;  %3184 = vmatpush.msrb.mxu3 %v1387_v32  ;;  %v780_v13 = vld [vmem:[#allocation2 + $0x15d8] sm:$0xff] }
 0x2aa   :  { %3223 = vmatpush.msrb.mxu2 %v124_v54  ;;  %3239 = vmatpush.msrb.mxu0 %v444_v45  ;;  %v1052_v7 = vld [vmem:[#allocation2 + $0x1e58] sm:$0xff] }
 0x2ab   :  { %3250 = vmatpush.msrb.mxu1 %v844_v9  ;;  %3185 = vmatpush.msrb.mxu3 %v1371_v49  ;;  %v1324_v21 = vld [vmem:[#allocation2 + $0x26d8] sm:$0xff] }
 0x2ac   :  { %3224 = vmatpush.msrb.mxu2 %v108_v39  ;;  %3240 = vmatpush.msrb.mxu0 %v428_v53  ;;  %v364_v44 = vld [vmem:[#allocation2 + $0x8d8] sm:$0xff] }
 0x2ad   :  { %3251 = vmatpush.msrb.mxu1 %v828_v50  ;;  %3186 = vmatmul.f32.vlgmr.msrb.gmra.mxu3 %v4503_v62  ;;  %v764_v28 = vld [vmem:[#allocation2 + $0x1558] sm:$0xff] }
 0x2ae   :  { %3270 = vmatpush.msra.mxu3 %v1100_v52  ;;  %3225 = vmatpush.msrb.mxu2 %v92_v56  ;;  %v1036_v18 = vld [vmem:[#allocation2 + $0x1dd8] sm:$0xff] }
 0x2af   :  { %3241 = vmatpush.msrb.mxu0 %v412_v23  ;;  %3252 = vmatpush.msrb.mxu1 %v812_v55  ;;  %v1308_v25 = vld [vmem:[#allocation2 + $0x2658] sm:$0xff] }
 0x2b0   :  { %3271 = vmatpush.msra.mxu3 %v1084_v60  ;;  %3290 = vmatpush.msra.mxu2 %v1356_v1  ;;  %v348_v30 = vld [vmem:[#allocation2 + $0x858] sm:$0xff] }
 0x2b1   :  { %3242 = vmatpush.msrb.mxu0 %v396_v63  ;;  %3253 = vmatpush.msrb.mxu1 %v796_v46  ;;  %v748_v31 = vld [vmem:[#allocation2 + $0x14d8] sm:$0xff] }
 0x2b2   :  { %3272 = vmatpush.msra.mxu3 %v1068_v6  ;;  %3291 = vmatpush.msra.mxu2 %v1340_v34  ;;  %v1020_v33 = vld [vmem:[#allocation2 + $0x1d58] sm:$0xff] }
 0x2b3   :  { %3243 = vmatpush.msrb.mxu0 %v380_v12  ;;  %3254 = vmatpush.msrb.mxu1 %v780_v13  ;;  %v1292_v36 = vld [vmem:[#allocation2 + $0x25d8] sm:$0xff] }
 0x2b4   :  { %3273 = vmatpush.msra.mxu3 %v1052_v7  ;;  %3292 = vmatpush.msra.mxu2 %v1324_v21  ;;  %v1612_v38 = vld [vmem:[#allocation2 + $0x2fd8] sm:$0xff] }
 0x2b5   :  { %3244 = vmatpush.msrb.mxu0 %v364_v44  ;;  %3255 = vmatpush.msrb.mxu1 %v764_v28  ;;  %v732_v47 = vld [vmem:[#allocation2 + $0x1458] sm:$0xff] }
 0x2b6   :  { %4107 = vmatmul.msk.f32.vlgmr.msra.gmra.mxu0 %vm1667_vm0, %v4509_v29  ;;  %3274 = vmatpush.msra.mxu3 %v1036_v18  ;;  %v1004_v4 = vld [vmem:[#allocation2 + $0x1cd8] sm:$0xff] }
 0x2b7   :  { %3293 = vmatpush.msra.mxu2 %v1308_v25  ;;  %3245 = vmatpush.msrb.mxu0 %v348_v30  ;;  %v1276_v42 = vld [vmem:[#allocation2 + $0x2558] sm:$0xff] }
 0x2b8   :  { %3256 = vmatpush.msrb.mxu1 %v748_v31  ;;  %3275 = vmatpush.msra.mxu3 %v1020_v33  ;;  %v1596_v43 = vld [vmem:[#allocation2 + $0x2f58] sm:$0xff] }
 0x2b9   :  { %3294 = vmatpush.msra.mxu2 %v1292_v36  ;;  %3310 = vmatpush.msra.mxu0 %v1612_v38  ;;  %v716_v32 = vld [vmem:[#allocation2 + $0x13d8] sm:$0xff] }
 0x2ba   :  { %v988_v54 = vld [vmem:[#allocation2 + $0x1c58] sm:$0xff]  ;;  %3257 = vmatpush.msrb.mxu1 %v732_v47  ;;  %3276 = vmatpush.msra.mxu3 %v1004_v4 }
 0x2bb   :  { %v1260_v45 = vld [vmem:[#allocation2 + $0x24d8] sm:$0xff]  ;;  %3295 = vmatpush.msra.mxu2 %v1276_v42  ;;  %3311 = vmatpush.msra.mxu0 %v1596_v43 }
 0x2bc   :  { %v1580_v9 = vld [vmem:[#allocation2 + $0x2ed8] sm:$0xff]  ;;  %3258 = vmatpush.msrb.mxu1 %v716_v32  ;;  %3277 = vmatpush.msra.mxu3 %v988_v54 }
 0x2bd   :  { %v700_v49 = vld [vmem:[#allocation2 + $0x1358] sm:$0xff]  ;;  %3296 = vmatpush.msra.mxu2 %v1260_v45  ;;  %3312 = vmatpush.msra.mxu0 %v1580_v9  ;;  %v333_v45 = vld [vmem:[#allocation2 + $0x7e0] sm:$0xff] }
 0x2be   :  { %v972_v39 = vld [vmem:[#allocation2 + $0x1bd8] sm:$0xff]  ;;  %3259 = vmatpush.msrb.mxu1 %v700_v49  ;;  %3226 = vmatmul.f32.vlgmr.msrb.gmra.mxu2 %v4500_v10  ;;  %v589_v9 = vld [vmem:[#allocation2 + $0xfe0] sm:$0xff] }
 0x2bf   :  { %v1244_v53 = vld [vmem:[#allocation2 + $0x2458] sm:$0xff]  ;;  %3278 = vmatpush.msra.mxu3 %v972_v39  ;;  %v573_v10 = vld [vmem:[#allocation2 + $0xf60] sm:$0xff]  ;;  %3246 = vmatmul.f32.vlgmr.msrb.gmra.mxu0 %v4494_v59 }
 0x2c0   :  { %v1564_v50 = vld [vmem:[#allocation2 + $0x2e58] sm:$0xff]  ;;  %3297 = vmatpush.msra.mxu2 %v1244_v53  ;;  %v317_v53 = vld [vmem:[#allocation2 + $0x760] sm:$0xff] }
 0x2c1   :  { %v684_v52 = vld [vmem:[#allocation2 + $0x12d8] sm:$0xff]  ;;  %3313 = vmatpush.msra.mxu0 %v1564_v50  ;;  %v845_v50 = vld [vmem:[#allocation2 + $0x17e0] sm:$0xff] }
 0x2c2   :  { %v956_v56 = vld [vmem:[#allocation2 + $0x1b58] sm:$0xff]  ;;  %3260 = vmatpush.msrb.mxu1 %v684_v52  ;;  %v237_v59 = vld [vmem:[#allocation2 + $0x4e0] sm:$0xff] }
 0x2c3   :  { %v1228_v23 = vld [vmem:[#allocation2 + $0x23d8] sm:$0xff]  ;;  %3279 = vmatpush.msra.mxu3 %v956_v56  ;;  %v301_v56 = vld [vmem:[#allocation2 + $0x6e0] sm:$0xff] }
 0x2c4   :  { %v1548_v55 = vld [vmem:[#allocation2 + $0x2dd8] sm:$0xff]  ;;  %3298 = vmatpush.msra.mxu2 %v1228_v23  ;;  %v557_v23 = vld [vmem:[#allocation2 + $0xee0] sm:$0xff] }
 0x2c5   :  { %v668_v60 = vld [vmem:[#allocation2 + $0x1258] sm:$0xff]  ;;  %3314 = vmatpush.msra.mxu0 %v1548_v55  ;;  %v829_v55 = vld [vmem:[#allocation2 + $0x1760] sm:$0xff] }
 0x2c6   :  { %v940_v1 = vld [vmem:[#allocation2 + $0x1ad8] sm:$0xff]  ;;  %3261 = vmatpush.msrb.mxu1 %v668_v60 }
 0x2c7   :  { %v1212_v63 = vld [vmem:[#allocation2 + $0x2358] sm:$0xff]  ;;  %3280 = vmatpush.msra.mxu3 %v940_v1  ;;  %v541_v1 = vld [vmem:[#allocation2 + $0xe60] sm:$0xff] }
 0x2c8   :  { %v1532_v46 = vld [vmem:[#allocation2 + $0x2d58] sm:$0xff]  ;;  %3299 = vmatpush.msra.mxu2 %v1212_v63  ;;  %v813_v63 = vld [vmem:[#allocation2 + $0x16e0] sm:$0xff] }
 0x2c9   :  { %v652_v6 = vld [vmem:[#allocation2 + $0x11d8] sm:$0xff]  ;;  %3315 = vmatpush.msra.mxu0 %v1532_v46 }
 0x2ca   :  { %v924_v34 = vld [vmem:[#allocation2 + $0x1a58] sm:$0xff]  ;;  %3262 = vmatpush.msrb.mxu1 %v652_v6  ;;  %v269_v6 = vld [vmem:[#allocation2 + $0x5e0] sm:$0xff] }
 0x2cb   :  { %v1196_v12 = vld [vmem:[#allocation2 + $0x22d8] sm:$0xff]  ;;  %3281 = vmatpush.msra.mxu3 %v924_v34  ;;  %v525_v34 = vld [vmem:[#allocation2 + $0xde0] sm:$0xff] }
 0x2cc   :  { %v1516_v13 = vld [vmem:[#allocation2 + $0x2cd8] sm:$0xff]  ;;  %3300 = vmatpush.msra.mxu2 %v1196_v12  ;;  %v797_v12 = vld [vmem:[#allocation2 + $0x1660] sm:$0xff] }
 0x2cd   :  { %v636_v7 = vld [vmem:[#allocation2 + $0x1158] sm:$0xff]  ;;  %3316 = vmatpush.msra.mxu0 %v1516_v13  ;;  %v253_v13 = vld [vmem:[#allocation2 + $0x560] sm:$0xff] }
 0x2ce   :  { %v908_v21 = vld [vmem:[#allocation2 + $0x19d8] sm:$0xff]  ;;  %3263 = vmatpush.msrb.mxu1 %v636_v7  ;;  %v509_v7 = vld [vmem:[#allocation2 + $0xd60] sm:$0xff] }
 0x2cf   :  { %v1180_v44 = vld [vmem:[#allocation2 + $0x2258] sm:$0xff]  ;;  %3282 = vmatpush.msra.mxu3 %v908_v21  ;;  %v781_v21 = vld [vmem:[#allocation2 + $0x15e0] sm:$0xff] }
 0x2d0   :  { %v1500_v28 = vld [vmem:[#allocation2 + $0x2c58] sm:$0xff]  ;;  %3301 = vmatpush.msra.mxu2 %v1180_v44  ;;  %v1101_v44 = vld [vmem:[#allocation2 + $0x1fe0] sm:$0xff] }
 0x2d1   :  { %v620_v18 = vld [vmem:[#allocation2 + $0x10d8] sm:$0xff]  ;;  %3317 = vmatpush.msra.mxu0 %v1500_v28  ;;  %v493_v28 = vld [vmem:[#allocation2 + $0xce0] sm:$0xff] }
 0x2d2   :  { %v892_v25 = vld [vmem:[#allocation2 + $0x1958] sm:$0xff]  ;;  %3264 = vmatpush.msrb.mxu1 %v620_v18  ;;  %v1085_v18 = vld [vmem:[#allocation2 + $0x1f60] sm:$0xff] }
 0x2d3   :  { %v1164_v30 = vld [vmem:[#allocation2 + $0x21d8] sm:$0xff]  ;;  %3283 = vmatpush.msra.mxu3 %v892_v25  ;;  %v221_v25 = vld [vmem:[#allocation2 + $0x460] sm:$0xff] }
 0x2d4   :  { %v1484_v31 = vld [vmem:[#allocation2 + $0x2bd8] sm:$0xff]  ;;  %3302 = vmatpush.msra.mxu2 %v1164_v30  ;;  %v477_v30 = vld [vmem:[#allocation2 + $0xc60] sm:$0xff] }
 0x2d5   :  { %v604_v33 = vld [vmem:[#allocation2 + $0x1058] sm:$0xff]  ;;  %3318 = vmatpush.msra.mxu0 %v1484_v31  ;;  %v749_v31 = vld [vmem:[#allocation2 + $0x14e0] sm:$0xff] }
 0x2d6   :  { %v876_v36 = vld [vmem:[#allocation2 + $0x18d8] sm:$0xff]  ;;  %3265 = vmatpush.msrb.mxu1 %v604_v33  ;;  %v1069_v33 = vld [vmem:[#allocation2 + $0x1ee0] sm:$0xff] }
 0x2d7   :  { %v1148_v38 = vld [vmem:[#allocation2 + $0x2158] sm:$0xff]  ;;  %3284 = vmatpush.msra.mxu3 %v876_v36  ;;  %3266 = vmatmul.f32.vlgmr.msrb.gmra.mxu1 %v4497_v5  ;;  %v285_v5 = vld [vmem:[#allocation2 + $0x660] sm:$0xff] }
 0x2d8   :  { %v1468_v47 = vld [vmem:[#allocation2 + $0x2b58] sm:$0xff]  ;;  %3303 = vmatpush.msra.mxu2 %v1148_v38  ;;  %v205_v36 = vld [vmem:[#allocation2 + $0x3e0] sm:$0xff] }
 0x2d9   :  { %v1644_v4 = vld [vmem:[#allocation2 + $0x30d8] sm:$0xff]  ;;  %3319 = vmatpush.msra.mxu0 %v1468_v47  ;;  %v461_v38 = vld [vmem:[#allocation2 + $0xbe0] sm:$0xff] }
 0x2da   :  { %v860_v42 = vld [vmem:[#allocation2 + $0x1858] sm:$0xff]  ;;  %3344 = vmatpush.msra.mxu1 %v1644_v4  ;;  %v733_v47 = vld [vmem:[#allocation2 + $0x1460] sm:$0xff] }
 0x2db   :  { %v1132_v43 = vld [vmem:[#allocation2 + $0x20d8] sm:$0xff]  ;;  %3285 = vmatpush.msra.mxu3 %v860_v42  ;;  %v1053_v4 = vld [vmem:[#allocation2 + $0x1e60] sm:$0xff] }
 0x2dc   :  { %v1452_v32 = vld [vmem:[#allocation2 + $0x2ad8] sm:$0xff]  ;;  %3304 = vmatpush.msra.mxu2 %v1132_v43  ;;  %3286 = vmatmul.f32.vlgmr.msra.gmra.mxu3 %v4506_v35  ;;  %v189_v42 = vld [vmem:[#allocation2 + $0x360] sm:$0xff] }
 0x2dd   :  { %v1628_v54 = vld [vmem:[#allocation2 + $0x3058] sm:$0xff]  ;;  %3320 = vmatpush.msra.mxu0 %v1452_v32  ;;  %3350 = vmatpush.msrb.mxu3 %v333_v45  ;;  %v445_v43 = vld [vmem:[#allocation2 + $0xb60] sm:$0xff] }
 0x2de   :  { %v1116_v49 = vld [vmem:[#allocation2 + $0x2058] sm:$0xff]  ;;  %3345 = vmatpush.msra.mxu1 %v1628_v54  ;;  %v717_v32 = vld [vmem:[#allocation2 + $0x13e0] sm:$0xff] }
 0x2df   :  { %v1436_v39 = vld [vmem:[#allocation2 + $0x2a58] sm:$0xff]  ;;  %3305 = vmatpush.msra.mxu2 %v1116_v49  ;;  %3351 = vmatpush.msrb.mxu3 %v317_v53  ;;  %v1037_v54 = vld [vmem:[#allocation2 + $0x1de0] sm:$0xff] }
 0x2e0   :  { %3370 = vmatpush.msrb.mxu1 %v589_v9  ;;  %v1420_v52 = vld [vmem:[#allocation2 + $0x29d8] sm:$0xff]  ;;  %3321 = vmatpush.msra.mxu0 %v1436_v39  ;;  %v429_v45 = vld [vmem:[#allocation2 + $0xae0] sm:$0xff] }
 0x2e1   :  { %3390 = vmatpush.msrb.mxu2 %v845_v50  ;;  %v1404_v60 = vld [vmem:[#allocation2 + $0x2958] sm:$0xff]  ;;  %3352 = vmatpush.msrb.mxu3 %v301_v56  ;;  %v701_v9 = vld [vmem:[#allocation2 + $0x1360] sm:$0xff] }
 0x2e2   :  { %3371 = vmatpush.msrb.mxu1 %v573_v10  ;;  %3322 = vmatpush.msra.mxu0 %v1420_v52  ;;  %v1388_v46 = vld [vmem:[#allocation2 + $0x28d8] sm:$0xff]  ;;  %v1021_v49 = vld [vmem:[#allocation2 + $0x1d60] sm:$0xff] }
 0x2e3   :  { %3391 = vmatpush.msrb.mxu2 %v829_v55  ;;  %3353 = vmatpush.msrb.mxu3 %v285_v5  ;;  %v1372_v35 = vld [vmem:[#allocation2 + $0x2858] sm:$0xff]  ;;  %v157_v39 = vld [vmem:[#allocation2 + $0x260] sm:$0xff] }
 0x2e4   :  { %3372 = vmatpush.msrb.mxu1 %v557_v23  ;;  %3306 = vmatmul.f32.vlgmr.msra.gmra.mxu2 %v4513_v24  ;;  %v765_v24 = vld [vmem:[#allocation2 + $0x1560] sm:$0xff] }
 0x2e5   :  { %3323 = vmatpush.msra.mxu0 %v1404_v60  ;;  %3392 = vmatpush.msrb.mxu2 %v813_v63  ;;  %v413_v53 = vld [vmem:[#allocation2 + $0xa60] sm:$0xff] }
 0x2e6   :  { %3373 = vmatpush.msrb.mxu1 %v541_v1  ;;  %3354 = vmatpush.msrb.mxu3 %v269_v6  ;;  %v1005_v10 = vld [vmem:[#allocation2 + $0x1ce0] sm:$0xff] }
 0x2e7   :  { %3324 = vmatpush.msra.mxu0 %v1388_v46  ;;  %3393 = vmatpush.msrb.mxu2 %v797_v12  ;;  %v141_v50 = vld [vmem:[#allocation2 + $0x1e0] sm:$0xff]  ;;  %v4536_v12 = vpop.f32.mrf.mxu3 }
 0x2e8   :  { %3374 = vmatpush.msrb.mxu1 %v525_v34  ;;  %3355 = vmatpush.msrb.mxu3 %v253_v13  ;;  %v397_v52 = vld [vmem:[#allocation2 + $0x9e0] sm:$0xff] }
 0x2e9   :  { %3325 = vmatpush.msra.mxu0 %v1372_v35  ;;  %3394 = vmatpush.msrb.mxu2 %v781_v21  ;;  %v669_v56 = vld [vmem:[#allocation2 + $0x1260] sm:$0xff] }
 0x2ea   :  { %3375 = vmatpush.msrb.mxu1 %v509_v7  ;;  %3356 = vmatpush.msrb.mxu3 %v237_v59  ;;  %v989_v23 = vld [vmem:[#allocation2 + $0x1c60] sm:$0xff] }
 0x2eb   :  { %3410 = vmatpush.msrb.mxu0 %v1101_v44  ;;  %3395 = vmatpush.msrb.mxu2 %v765_v24  ;;  %v125_v55 = vld [vmem:[#allocation2 + $0x160] sm:$0xff] }
 0x2ec   :  { %3376 = vmatpush.msrb.mxu1 %v493_v28  ;;  %3326 = vmatmul.f32.vlgmr.msra.gmra.mxu0 %v4503_v62  ;;  %v173_v62 = vld [vmem:[#allocation2 + $0x2e0] sm:$0xff] }
 0x2ed   :  { %3411 = vmatpush.msrb.mxu0 %v1085_v18  ;;  %3357 = vmatpush.msrb.mxu3 %v221_v25  ;;  %v381_v60 = vld [vmem:[#allocation2 + $0x960] sm:$0xff] }
 0x2ee   :  { %3377 = vmatpush.msrb.mxu1 %v477_v30  ;;  %3396 = vmatpush.msrb.mxu2 %v749_v31  ;;  %v653_v5 = vld [vmem:[#allocation2 + $0x11e0] sm:$0xff]  ;;  %v4538_v30 = vpop.f32.mrf.mxu2 }
 0x2ef   :  { %3412 = vmatpush.msrb.mxu0 %v1069_v33  ;;  %4108 = vmatmul.msk.f32.vlgmr.msra.gmra.mxu1 %vm1667_vm0, %v4509_v29  ;;  %v685_v29 = vld [vmem:[#allocation2 + $0x12e0] sm:$0xff] }
 0x2f0   :  { %3358 = vmatpush.msrb.mxu3 %v205_v36  ;;  %3378 = vmatpush.msrb.mxu1 %v461_v38  ;;  %v973_v1 = vld [vmem:[#allocation2 + $0x1be0] sm:$0xff] }
 0x2f1   :  { %3397 = vmatpush.msrb.mxu2 %v733_v47  ;;  %3413 = vmatpush.msrb.mxu0 %v1053_v4  ;;  %v109_v63 = vld [vmem:[#allocation2 + $0xe0] sm:$0xff]  ;;  %v4540_v4 = vpop.f32.mrf.mxu3 }
 0x2f2   :  { %3359 = vmatpush.msrb.mxu3 %v189_v42  ;;  %3379 = vmatpush.msrb.mxu1 %v445_v43  ;;  %v365_v46 = vld [vmem:[#allocation2 + $0x8e0] sm:$0xff]  ;;  %v4542_v42 = vld.sshfl [vmem:[#allocation1] sm:$0xff pattern:$0x73625140] }
 0x2f3   :  { %3398 = vmatpush.msrb.mxu2 %v717_v32  ;;  %3414 = vmatpush.msrb.mxu0 %v1037_v54  ;;  %v637_v6 = vld [vmem:[#allocation2 + $0x1160] sm:$0xff]  ;;  %v590_v32 = vld [vmem:[#allocation2 + $0xfe8] sm:$0xff] }
 0x2f4   :  { %3360 = vmatpush.msrb.mxu3 %v173_v62  ;;  %3380 = vmatpush.msrb.mxu1 %v429_v45  ;;  %v957_v34 = vld [vmem:[#allocation2 + $0x1b60] sm:$0xff] }
 0x2f5   :  { %3399 = vmatpush.msrb.mxu2 %v701_v9  ;;  %3415 = vmatpush.msrb.mxu0 %v1021_v49  ;;  %v93_v35 = vld [vmem:[#allocation2 + $0x60] sm:$0xff]  ;;  %v4545_v9 = vld.sshfl [vmem:[#allocation1 + $0x10] sm:$0xff pattern:$0x73625140] }
 0x2f6   :  { %3361 = vmatpush.msrb.mxu3 %v157_v39  ;;  %3381 = vmatpush.msrb.mxu1 %v413_v53  ;;  %v349_v13 = vld [vmem:[#allocation2 + $0x860] sm:$0xff]  ;;  %v574_v49 = vld [vmem:[#allocation2 + $0xf68] sm:$0xff]  ;;  %v4548_v53 = vpop.f32.mrf.mxu1 }
 0x2f7   :  { %3400 = vmatpush.msrb.mxu2 %v685_v29  ;;  %3416 = vmatpush.msrb.mxu0 %v1005_v10  ;;  %v621_v7 = vld [vmem:[#allocation2 + $0x10e0] sm:$0xff] }
 0x2f8   :  { %3362 = vmatpush.msrb.mxu3 %v141_v50  ;;  %3382 = vmatpush.msrb.mxu1 %v397_v52  ;;  %v941_v21 = vld [vmem:[#allocation2 + $0x1ae0] sm:$0xff]  ;;  %v4550_v50 = vpop.f32.mrf.mxu0  ;;  %v4552_v52 = vpop.f32.mrf.mxu2 }
 0x2f9   :  { %3401 = vmatpush.msrb.mxu2 %v669_v56  ;;  %3417 = vmatpush.msrb.mxu0 %v989_v23  ;;  %v1357_v44 = vld [vmem:[#allocation2 + $0x27e0] sm:$0xff]  ;;  %v558_v56 = vld [vmem:[#allocation2 + $0xee8] sm:$0xff] }
 0x2fa   :  { %3363 = vmatpush.msrb.mxu3 %v125_v55  ;;  %3383 = vmatpush.msrb.mxu1 %v381_v60  ;;  %v1613_v59 = vld [vmem:[#allocation2 + $0x2fe0] sm:$0xff]  ;;  %v334_v60 = vld [vmem:[#allocation2 + $0x7e8] sm:$0xff] }
 0x2fb   :  { %3402 = vmatpush.msrb.mxu2 %v653_v5  ;;  %3418 = vmatpush.msrb.mxu0 %v973_v1  ;;  %v605_v28 = vld [vmem:[#allocation2 + $0x1060] sm:$0xff]  ;;  %v542_v5 = vld [vmem:[#allocation2 + $0xe68] sm:$0xff]  ;;  %v4554_v1 = vpop.f32.mrf.mxu3 }
 0x2fc   :  { %3364 = vmatpush.msrb.mxu3 %v109_v63  ;;  %3384 = vmatpush.msrb.mxu1 %v365_v46  ;;  %v925_v24 = vld [vmem:[#allocation2 + $0x1a60] sm:$0xff] }
 0x2fd   :  { %3403 = vmatpush.msrb.mxu2 %v637_v6  ;;  %3419 = vmatpush.msrb.mxu0 %v957_v34  ;;  %v1341_v18 = vld [vmem:[#allocation2 + $0x2760] sm:$0xff]  ;;  %v318_v34 = vld [vmem:[#allocation2 + $0x768] sm:$0xff] }
 0x2fe   :  { %3365 = vmatpush.msrb.mxu3 %v93_v35  ;;  %3385 = vmatpush.msrb.mxu1 %v349_v13  ;;  %v1597_v25 = vld [vmem:[#allocation2 + $0x2f60] sm:$0xff]  ;;  %v526_v35 = vld [vmem:[#allocation2 + $0xde8] sm:$0xff] }
 0x2ff   :  { %3404 = vmatpush.msrb.mxu2 %v621_v7  ;;  %3420 = vmatpush.msrb.mxu0 %v941_v21  ;;  %v1645_v31 = vld [vmem:[#allocation2 + $0x30e0] sm:$0xff]  ;;  %v302_v21 = vld [vmem:[#allocation2 + $0x6e8] sm:$0xff] }
 0x300   :  { %3430 = vmatpush.msra.mxu3 %v1357_v44  ;;  %3450 = vmatpush.msra.mxu1 %v1613_v59  ;;  %v909_v33 = vld [vmem:[#allocation2 + $0x19e0] sm:$0xff]  ;;  %v4559_v44 = vpop.f32.mrf.mxu1  ;;  %v510_v59 = vld [vmem:[#allocation2 + $0xd68] sm:$0xff] }
 0x301   :  { %3405 = vmatpush.msrb.mxu2 %v605_v28  ;;  %3421 = vmatpush.msrb.mxu0 %v925_v24  ;;  %v1325_v36 = vld [vmem:[#allocation2 + $0x26e0] sm:$0xff]  ;;  %v4561_v24 = vpop.f32.mrf.mxu0 }
 0x302   :  { %3431 = vmatpush.msra.mxu3 %v1341_v18  ;;  %3451 = vmatpush.msra.mxu1 %v1597_v25  ;;  %v1581_v38 = vld [vmem:[#allocation2 + $0x2ee0] sm:$0xff]  ;;  %v4563_v18 = vpop.f32.mrf.mxu2  ;;  %v4565_v25 = vld.sshfl [vmem:[#allocation1 + $0x18] sm:$0xff pattern:$0x73625140] }
 0x303   :  { %v1629_v47 = vld [vmem:[#allocation2 + $0x3060] sm:$0xff]  ;;  %3484 = vmatpush.msra.mxu2 %v1645_v31  ;;  %3366 = vmatmul.f32.vlgmr.msrb.gmra.mxu3 %v4542_v42 }
 0x304   :  { %v893_v43 = vld [vmem:[#allocation2 + $0x1960] sm:$0xff]  ;;  %3422 = vmatpush.msrb.mxu0 %v909_v33  ;;  %3432 = vmatpush.msra.mxu3 %v1325_v36  ;;  %v286_v33 = vld [vmem:[#allocation2 + $0x668] sm:$0xff] }
 0x305   :  { %v1309_v54 = vld [vmem:[#allocation2 + $0x2660] sm:$0xff]  ;;  %3452 = vmatpush.msra.mxu1 %v1581_v38  ;;  %3485 = vmatpush.msra.mxu2 %v1629_v47  ;;  %v494_v36 = vld [vmem:[#allocation2 + $0xce8] sm:$0xff] }
 0x306   :  { %v1565_v62 = vld [vmem:[#allocation2 + $0x2e60] sm:$0xff]  ;;  %3406 = vmatmul.f32.vlgmr.msrb.gmra.mxu2 %v4545_v9  ;;  %3423 = vmatpush.msrb.mxu0 %v893_v43  ;;  %v270_v43 = vld [vmem:[#allocation2 + $0x5e8] sm:$0xff] }
 0x307   :  { %v877_v45 = vld [vmem:[#allocation2 + $0x18e0] sm:$0xff]  ;;  %3510 = vmatpush.msrb.mxu2 %v590_v32  ;;  %3433 = vmatpush.msra.mxu3 %v1309_v54  ;;  %v478_v32 = vld [vmem:[#allocation2 + $0xc68] sm:$0xff] }
 0x308   :  { %v1293_v39 = vld [vmem:[#allocation2 + $0x25e0] sm:$0xff]  ;;  %3453 = vmatpush.msra.mxu1 %v1565_v62  ;;  %3424 = vmatpush.msrb.mxu0 %v877_v45  ;;  %v254_v45 = vld [vmem:[#allocation2 + $0x568] sm:$0xff] }
 0x309   :  { %v1549_v29 = vld [vmem:[#allocation2 + $0x2de0] sm:$0xff]  ;;  %3511 = vmatpush.msrb.mxu2 %v574_v49  ;;  %3434 = vmatpush.msra.mxu3 %v1293_v39  ;;  %v4568_v49 = vpop.f32.mrf.mxu3  ;;  %v462_v39 = vld [vmem:[#allocation2 + $0xbe8] sm:$0xff] }
 0x30a   :  { %v861_v10 = vld [vmem:[#allocation2 + $0x1860] sm:$0xff]  ;;  %3454 = vmatpush.msra.mxu1 %v1549_v29 }
 0x30b   :  { %v1277_v23 = vld [vmem:[#allocation2 + $0x2560] sm:$0xff]  ;;  %3425 = vmatpush.msrb.mxu0 %v861_v10  ;;  %3512 = vmatpush.msrb.mxu2 %v558_v56  ;;  %v238_v56 = vld [vmem:[#allocation2 + $0x4e8] sm:$0xff] }
 0x30c   :  { %v1533_v55 = vld [vmem:[#allocation2 + $0x2d60] sm:$0xff]  ;;  %3435 = vmatpush.msra.mxu3 %v1277_v23  ;;  %3426 = vmatmul.f32.vlgmr.msrb.gmra.mxu0 %v4565_v25  ;;  %v4570_v23 = vpop.f32.mrf.mxu1 }
 0x30d   :  { %v4556_v63 = vld.sshfl [vmem:[#allocation1 + $0x8] sm:$0xff pattern:$0x73625140]  ;;  %3455 = vmatpush.msra.mxu1 %v1533_v55  ;;  %3490 = vmatpush.msra.mxu0 %v334_v60  ;;  %v446_v55 = vld [vmem:[#allocation2 + $0xb68] sm:$0xff] }
 0x30e   :  { %3386 = vmatmul.f32.vlgmr.msrb.gmra.mxu1 %v4556_v63  ;;  %v1261_v46 = vld [vmem:[#allocation2 + $0x24e0] sm:$0xff]  ;;  %3513 = vmatpush.msrb.mxu2 %v542_v5 }
 0x30f   :  { %v1517_v6 = vld [vmem:[#allocation2 + $0x2ce0] sm:$0xff]  ;;  %3436 = vmatpush.msra.mxu3 %v1261_v46  ;;  %3491 = vmatpush.msra.mxu0 %v318_v34  ;;  %v222_v46 = vld [vmem:[#allocation2 + $0x468] sm:$0xff] }
 0x310   :  { %v1245_v13 = vld [vmem:[#allocation2 + $0x2460] sm:$0xff]  ;;  %3456 = vmatpush.msra.mxu1 %v1517_v6  ;;  %3514 = vmatpush.msrb.mxu2 %v526_v35  ;;  %v430_v6 = vld [vmem:[#allocation2 + $0xae8] sm:$0xff]  ;;  %v4572_v35 = vpop.f32.mrf.mxu0 }
 0x311   :  { %v1501_v7 = vld [vmem:[#allocation2 + $0x2c60] sm:$0xff]  ;;  %3437 = vmatpush.msra.mxu3 %v1245_v13  ;;  %3492 = vmatpush.msra.mxu0 %v302_v21  ;;  %v4574_v13 = vpop.f32.mrf.mxu2  ;;  %v206_v21 = vld [vmem:[#allocation2 + $0x3e8] sm:$0xff] }
 0x312   :  { %v1229_v28 = vld [vmem:[#allocation2 + $0x23e0] sm:$0xff]  ;;  %3457 = vmatpush.msra.mxu1 %v1501_v7  ;;  %3515 = vmatpush.msrb.mxu2 %v510_v59  ;;  %v414_v59 = vld [vmem:[#allocation2 + $0xa68] sm:$0xff] }
 0x313   :  { %v1485_v31 = vld [vmem:[#allocation2 + $0x2be0] sm:$0xff]  ;;  %3438 = vmatpush.msra.mxu3 %v1229_v28  ;;  %3493 = vmatpush.msra.mxu0 %v286_v33  ;;  %v190_v33 = vld [vmem:[#allocation2 + $0x368] sm:$0xff] }
 0x314   :  { %v1213_v38 = vld [vmem:[#allocation2 + $0x2360] sm:$0xff]  ;;  %3458 = vmatpush.msra.mxu1 %v1485_v31  ;;  %3516 = vmatpush.msrb.mxu2 %v494_v36  ;;  %v398_v36 = vld [vmem:[#allocation2 + $0x9e8] sm:$0xff] }
 0x315   :  { %v1469_v47 = vld [vmem:[#allocation2 + $0x2b60] sm:$0xff]  ;;  %3439 = vmatpush.msra.mxu3 %v1213_v38  ;;  %3494 = vmatpush.msra.mxu0 %v270_v43 }
 0x316   :  { %v1197_v54 = vld [vmem:[#allocation2 + $0x22e0] sm:$0xff]  ;;  %3459 = vmatpush.msra.mxu1 %v1469_v47  ;;  %3517 = vmatpush.msrb.mxu2 %v478_v32  ;;  %v3107_v47 = vpop.f32.mrf.mxu3  ;;  %v174_v32 = vld [vmem:[#allocation2 + $0x2e8] sm:$0xff] }
 0x317   :  { %v1453_v62 = vld [vmem:[#allocation2 + $0x2ae0] sm:$0xff]  ;;  %3440 = vmatpush.msra.mxu3 %v1197_v54  ;;  %3495 = vmatpush.msra.mxu0 %v254_v45  ;;  %v382_v54 = vld [vmem:[#allocation2 + $0x968] sm:$0xff] }
 0x318   :  { %v1181_v29 = vld [vmem:[#allocation2 + $0x2260] sm:$0xff]  ;;  %3460 = vmatpush.msra.mxu1 %v1453_v62  ;;  %3518 = vmatpush.msrb.mxu2 %v462_v39  ;;  %v3087_v62 = vpop.f32.mrf.mxu1  ;;  %v846_v45 = vld [vmem:[#allocation2 + $0x17e8] sm:$0xff] }
 0x319   :  { %v1437_v10 = vld [vmem:[#allocation2 + $0x2a60] sm:$0xff]  ;;  %3441 = vmatpush.msra.mxu3 %v1181_v29  ;;  %3496 = vmatpush.msra.mxu0 %v238_v56  ;;  %v1102_v39 = vld [vmem:[#allocation2 + $0x1fe8] sm:$0xff]  ;;  %v3108_v29 = vadd.f32 %v3107_v47, %v3087_v62 }
 0x31a   :  { %v1165_v60 = vld [vmem:[#allocation2 + $0x21e0] sm:$0xff]  ;;  %3461 = vmatpush.msra.mxu1 %v1437_v10  ;;  %3519 = vmatpush.msrb.mxu2 %v446_v55  ;;  %v158_v10 = vld [vmem:[#allocation2 + $0x268] sm:$0xff]  ;;  %v4576_v55 = vld.sshfl [vmem:[#allocation1 + $0x20] sm:$0xff pattern:$0x73625140] }
 0x31b   :  { %v1421_v5 = vld [vmem:[#allocation2 + $0x29e0] sm:$0xff]  ;;  %3442 = vmatpush.msra.mxu3 %v1165_v60  ;;  %3497 = vmatpush.msra.mxu0 %v222_v46  ;;  %v366_v56 = vld [vmem:[#allocation2 + $0x8e8] sm:$0xff]  ;;  %v3127_v46 = vpop.f32.mrf.mxu0 }
 0x31c   :  { %v1149_v34 = vld [vmem:[#allocation2 + $0x2160] sm:$0xff]  ;;  %3462 = vmatpush.msra.mxu1 %v1421_v5  ;;  %3520 = vmatpush.msrb.mxu2 %v430_v6  ;;  %v830_v60 = vld [vmem:[#allocation2 + $0x1768] sm:$0xff]  ;;  %v3147_v6 = vpop.f32.mrf.mxu2 }
 0x31d   :  { %v1405_v7 = vld [vmem:[#allocation2 + $0x2960] sm:$0xff]  ;;  %3443 = vmatpush.msra.mxu3 %v1149_v34  ;;  %3498 = vmatpush.msra.mxu0 %v206_v21  ;;  %v1086_v5 = vld [vmem:[#allocation2 + $0x1f68] sm:$0xff] }
 0x31e   :  { %v1133_v28 = vld [vmem:[#allocation2 + $0x20e0] sm:$0xff]  ;;  %3463 = vmatpush.msra.mxu1 %v1405_v7  ;;  %3521 = vmatpush.msrb.mxu2 %v414_v59  ;;  %v142_v34 = vld [vmem:[#allocation2 + $0x1e8] sm:$0xff]  ;;  %v3128_v7 = vadd.f32 %v3127_v46, %v3108_v29 }
 0x31f   :  { %v1389_v31 = vld [vmem:[#allocation2 + $0x28e0] sm:$0xff]  ;;  %3444 = vmatpush.msra.mxu3 %v1133_v28  ;;  %3499 = vmatpush.msra.mxu0 %v190_v33  ;;  %v350_v21 = vld [vmem:[#allocation2 + $0x868] sm:$0xff] }
 0x320   :  { %v1117_v38 = vld [vmem:[#allocation2 + $0x2060] sm:$0xff]  ;;  %3464 = vmatpush.msra.mxu1 %v1389_v31  ;;  %3522 = vmatpush.msrb.mxu2 %v398_v36  ;;  %v814_v59 = vld [vmem:[#allocation2 + $0x16e8] sm:$0xff]  ;;  %v4579_v33 = vadd.f32 %v3147_v6, %v3128_v7 }
 0x321   :  { %v1373_v43 = vld [vmem:[#allocation2 + $0x2860] sm:$0xff]  ;;  %3445 = vmatpush.msra.mxu3 %v1117_v38  ;;  %3500 = vmatpush.msra.mxu0 %v174_v32  ;;  %v1070_v28 = vld [vmem:[#allocation2 + $0x1ee8] sm:$0xff] }
 0x322   :  { %3465 = vmatpush.msra.mxu1 %v1373_v43  ;;  %3446 = vmatmul.f32.vlgmr.msra.gmra.mxu3 %v4576_v55  ;;  %v126_v31 = vld [vmem:[#allocation2 + $0x168] sm:$0xff] }
 0x323   :  { %3523 = vmatpush.msrb.mxu2 %v382_v54  ;;  %3530 = vmatpush.msrb.mxu3 %v846_v45  ;;  %v4581_v36 = vld.sshfl [vmem:[#allocation1 + $0x30] sm:$0xff pattern:$0x73625140] }
 0x324   :  { %3550 = vmatpush.msrb.mxu1 %v1102_v39  ;;  %3501 = vmatpush.msra.mxu0 %v158_v10  ;;  %v1614_v38 = vld [vmem:[#allocation2 + $0x2fe8] sm:$0xff]  ;;  %v4585_v10 = vld.sshfl [vmem:[#allocation1 + $0x28] sm:$0xff pattern:$0x73625140] }
 0x325   :  { %3524 = vmatpush.msrb.mxu2 %v366_v56  ;;  %3531 = vmatpush.msrb.mxu3 %v830_v60  ;;  %v798_v47 = vld [vmem:[#allocation2 + $0x1668] sm:$0xff] }
 0x326   :  { %3551 = vmatpush.msrb.mxu1 %v1086_v5  ;;  %3502 = vmatpush.msra.mxu0 %v142_v34  ;;  %v1054_v43 = vld [vmem:[#allocation2 + $0x1e68] sm:$0xff] }
 0x327   :  { %4109 = vmatmul.msk.f32.vlgmr.msra.gmra.mxu2 %vm1667_vm0, %v4581_v36  ;;  %3532 = vmatpush.msrb.mxu3 %v814_v59  ;;  %v110_v32 = vld [vmem:[#allocation2 + $0xe8] sm:$0xff] }
 0x328   :  { %3525 = vmatpush.msrb.mxu2 %v350_v21  ;;  %3552 = vmatpush.msrb.mxu1 %v1070_v28  ;;  %v1598_v54 = vld [vmem:[#allocation2 + $0x2f68] sm:$0xff] }
 0x329   :  { %3503 = vmatpush.msra.mxu0 %v126_v31  ;;  %3533 = vmatpush.msrb.mxu3 %v798_v47  ;;  %v782_v62 = vld [vmem:[#allocation2 + $0x15e8] sm:$0xff] }
 0x32a   :  { %3590 = vmatpush.msra.mxu2 %v1614_v38  ;;  %v1038_v45 = vld [vmem:[#allocation2 + $0x1de8] sm:$0xff]  ;;  %3553 = vmatpush.msrb.mxu1 %v1054_v43 }
 0x32b   :  { %3504 = vmatpush.msra.mxu0 %v110_v32  ;;  %v94_v39 = vld [vmem:[#allocation2 + $0x68] sm:$0xff]  ;;  %3466 = vmatmul.f32.vlgmr.msra.gmra.mxu1 %v4585_v10 }
 0x32c   :  { %v1582_v29 = vld [vmem:[#allocation2 + $0x2ee8] sm:$0xff]  ;;  %3591 = vmatpush.msra.mxu2 %v1598_v54  ;;  %3534 = vmatpush.msrb.mxu3 %v782_v62 }
 0x32d   :  { %v766_v56 = vld [vmem:[#allocation2 + $0x1568] sm:$0xff]  ;;  %3554 = vmatpush.msrb.mxu1 %v1038_v45  ;;  %3505 = vmatpush.msra.mxu0 %v94_v39 }
 0x32e   :  { %v1022_v60 = vld [vmem:[#allocation2 + $0x1d68] sm:$0xff]  ;;  %3592 = vmatpush.msra.mxu2 %v1582_v29  ;;  %3535 = vmatpush.msrb.mxu3 %v766_v56  ;;  %v3167_v56 = vpop.f32.mrf.mxu1 }
 0x32f   :  { %v1358_v5 = vld [vmem:[#allocation2 + $0x27e8] sm:$0xff]  ;;  %3555 = vmatpush.msrb.mxu1 %v1022_v60  ;;  %3526 = vmatmul.f32.vlgmr.msrb.gmra.mxu2 %v4556_v63 }
 0x330   :  { %v1566_v46 = vld [vmem:[#allocation2 + $0x2e68] sm:$0xff]  ;;  %3570 = vmatpush.msrb.mxu0 %v1358_v5 }
 0x331   :  { %v750_v6 = vld [vmem:[#allocation2 + $0x14e8] sm:$0xff]  ;;  %3593 = vmatpush.msra.mxu2 %v1566_v46  ;;  %v3168_v46 = vadd.f32 %v3167_v56, %v4579_v33  ;;  %v3187_v56 = vpop.f32.mrf.mxu3  ;;  %3506 = vmatmul.f32.vlgmr.msra.gmra.mxu0 %v4542_v42 }
 0x332   :  { %v1006_v34 = vld [vmem:[#allocation2 + $0x1ce8] sm:$0xff]  ;;  %3536 = vmatpush.msrb.mxu3 %v750_v6 }
 0x333   :  { %v1342_v7 = vld [vmem:[#allocation2 + $0x2768] sm:$0xff]  ;;  %3556 = vmatpush.msrb.mxu1 %v1006_v34 }
 0x334   :  { %v1550_v21 = vld [vmem:[#allocation2 + $0x2de8] sm:$0xff]  ;;  %3571 = vmatpush.msrb.mxu0 %v1342_v7 }
 0x335   :  { %v734_v59 = vld [vmem:[#allocation2 + $0x1468] sm:$0xff]  ;;  %3594 = vmatpush.msra.mxu2 %v1550_v21 }
 0x336   :  { %v990_v28 = vld [vmem:[#allocation2 + $0x1c68] sm:$0xff]  ;;  %3537 = vmatpush.msrb.mxu3 %v734_v59 }
 0x337   :  { %v1326_v31 = vld [vmem:[#allocation2 + $0x26e8] sm:$0xff]  ;;  %3557 = vmatpush.msrb.mxu1 %v990_v28 }
 0x338   :  { %v1534_v38 = vld [vmem:[#allocation2 + $0x2d68] sm:$0xff]  ;;  %3572 = vmatpush.msrb.mxu0 %v1326_v31 }
 0x339   :  { %v718_v47 = vld [vmem:[#allocation2 + $0x13e8] sm:$0xff]  ;;  %3595 = vmatpush.msra.mxu2 %v1534_v38 }
 0x33a   :  { %v974_v43 = vld [vmem:[#allocation2 + $0x1be8] sm:$0xff]  ;;  %3538 = vmatpush.msrb.mxu3 %v718_v47 }
 0x33b   :  { %v1310_v32 = vld [vmem:[#allocation2 + $0x2668] sm:$0xff]  ;;  %3558 = vmatpush.msrb.mxu1 %v974_v43 }
 0x33c   :  { %v1518_v54 = vld [vmem:[#allocation2 + $0x2ce8] sm:$0xff]  ;;  %3573 = vmatpush.msrb.mxu0 %v1310_v32 }
 0x33d   :  { %v702_v62 = vld [vmem:[#allocation2 + $0x1368] sm:$0xff]  ;;  %3596 = vmatpush.msra.mxu2 %v1518_v54 }
 0x33e   :  { %v958_v45 = vld [vmem:[#allocation2 + $0x1b68] sm:$0xff]  ;;  %3539 = vmatpush.msrb.mxu3 %v702_v62 }
 0x33f   :  { %v1294_v39 = vld [vmem:[#allocation2 + $0x25e8] sm:$0xff]  ;;  %3559 = vmatpush.msrb.mxu1 %v958_v45 }
 0x340   :  { %v1502_v29 = vld [vmem:[#allocation2 + $0x2c68] sm:$0xff]  ;;  %3574 = vmatpush.msrb.mxu0 %v1294_v39 }
 0x341   :  { %v686_v60 = vld [vmem:[#allocation2 + $0x12e8] sm:$0xff]  ;;  %3597 = vmatpush.msra.mxu2 %v1502_v29 }
 0x342   :  { %v942_v5 = vld [vmem:[#allocation2 + $0x1ae8] sm:$0xff]  ;;  %3540 = vmatpush.msrb.mxu3 %v686_v60 }
 0x343   :  { %v1278_v6 = vld [vmem:[#allocation2 + $0x2568] sm:$0xff]  ;;  %3560 = vmatpush.msrb.mxu1 %v942_v5 }
 0x344   :  { %v1486_v34 = vld [vmem:[#allocation2 + $0x2be8] sm:$0xff]  ;;  %3575 = vmatpush.msrb.mxu0 %v1278_v6  ;;  %v3188_v6 = vadd.f32 %v3187_v56, %v3168_v46  ;;  %v1103_v56 = vld [vmem:[#allocation2 + $0x1ff0] sm:$0xff] }
 0x345   :  { %v670_v7 = vld [vmem:[#allocation2 + $0x1268] sm:$0xff]  ;;  %3598 = vmatpush.msra.mxu2 %v1486_v34 }
 0x346   :  { %v926_v21 = vld [vmem:[#allocation2 + $0x1a68] sm:$0xff]  ;;  %3541 = vmatpush.msrb.mxu3 %v670_v7 }
 0x347   :  { %v1262_v59 = vld [vmem:[#allocation2 + $0x24e8] sm:$0xff]  ;;  %3561 = vmatpush.msrb.mxu1 %v926_v21 }
 0x348   :  { %v1470_v28 = vld [vmem:[#allocation2 + $0x2b68] sm:$0xff]  ;;  %3576 = vmatpush.msrb.mxu0 %v1262_v59  ;;  %v3207_v59 = vpop.f32.mrf.mxu0 }
 0x349   :  { %v654_v31 = vld [vmem:[#allocation2 + $0x11e8] sm:$0xff]  ;;  %3599 = vmatpush.msra.mxu2 %v1470_v28 }
 0x34a   :  { %v910_v38 = vld [vmem:[#allocation2 + $0x19e8] sm:$0xff]  ;;  %3542 = vmatpush.msrb.mxu3 %v654_v31  ;;  %v335_v31 = vld [vmem:[#allocation2 + $0x7f0] sm:$0xff] }
 0x34b   :  { %v1246_v47 = vld [vmem:[#allocation2 + $0x2468] sm:$0xff]  ;;  %3562 = vmatpush.msrb.mxu1 %v910_v38  ;;  %v4590_v38 = vadd.f32 %v3207_v59, %v3188_v6  ;;  %v559_v6 = vld [vmem:[#allocation2 + $0xef0] sm:$0xff] }
 0x34c   :  { %v1454_v33 = vld [vmem:[#allocation2 + $0x2ae8] sm:$0xff]  ;;  %3577 = vmatpush.msrb.mxu0 %v1246_v47  ;;  %v543_v59 = vld [vmem:[#allocation2 + $0xe70] sm:$0xff] }
 0x34d   :  { %v638_v43 = vld [vmem:[#allocation2 + $0x1168] sm:$0xff]  ;;  %3600 = vmatpush.msra.mxu2 %v1454_v33 }
 0x34e   :  { %v894_v32 = vld [vmem:[#allocation2 + $0x1968] sm:$0xff]  ;;  %3543 = vmatpush.msrb.mxu3 %v638_v43  ;;  %v319_v43 = vld [vmem:[#allocation2 + $0x770] sm:$0xff] }
 0x34f   :  { %v1230_v54 = vld [vmem:[#allocation2 + $0x23e8] sm:$0xff]  ;;  %3563 = vmatpush.msrb.mxu1 %v894_v32 }
 0x350   :  { %v1438_v62 = vld [vmem:[#allocation2 + $0x2a68] sm:$0xff]  ;;  %3578 = vmatpush.msrb.mxu0 %v1230_v54  ;;  %v591_v54 = vld [vmem:[#allocation2 + $0xff0] sm:$0xff] }
 0x351   :  { %v622_v45 = vld [vmem:[#allocation2 + $0x10e8] sm:$0xff]  ;;  %3601 = vmatpush.msra.mxu2 %v1438_v62 }
 0x352   :  { %v878_v39 = vld [vmem:[#allocation2 + $0x18e8] sm:$0xff]  ;;  %3544 = vmatpush.msrb.mxu3 %v622_v45  ;;  %v303_v45 = vld [vmem:[#allocation2 + $0x6f0] sm:$0xff] }
 0x353   :  { %v1214_v29 = vld [vmem:[#allocation2 + $0x2368] sm:$0xff]  ;;  %3564 = vmatpush.msrb.mxu1 %v878_v39 }
 0x354   :  { %v1422_v60 = vld [vmem:[#allocation2 + $0x29e8] sm:$0xff]  ;;  %3579 = vmatpush.msrb.mxu0 %v1214_v29  ;;  %v575_v29 = vld [vmem:[#allocation2 + $0xf70] sm:$0xff] }
 0x355   :  { %v606_v5 = vld [vmem:[#allocation2 + $0x1068] sm:$0xff]  ;;  %3602 = vmatpush.msra.mxu2 %v1422_v60  ;;  %v287_v60 = vld [vmem:[#allocation2 + $0x670] sm:$0xff] }
 0x356   :  { %v862_v34 = vld [vmem:[#allocation2 + $0x1868] sm:$0xff]  ;;  %3545 = vmatpush.msrb.mxu3 %v606_v5 }
 0x357   :  { %v1198_v7 = vld [vmem:[#allocation2 + $0x22e8] sm:$0xff]  ;;  %3565 = vmatpush.msrb.mxu1 %v862_v34  ;;  %3546 = vmatmul.f32.vlgmr.msrb.gmra.mxu3 %v4545_v9  ;;  %v1087_v34 = vld [vmem:[#allocation2 + $0x1f70] sm:$0xff] }
 0x358   :  { %v1406_v21 = vld [vmem:[#allocation2 + $0x2968] sm:$0xff]  ;;  %3580 = vmatpush.msrb.mxu0 %v1198_v7  ;;  %v271_v7 = vld [vmem:[#allocation2 + $0x5f0] sm:$0xff]  ;;  %3566 = vmatmul.f32.vlgmr.msrb.gmra.mxu1 %v4565_v25 }
 0x359   :  { %v1646_v28 = vld [vmem:[#allocation2 + $0x30e8] sm:$0xff]  ;;  %3603 = vmatpush.msra.mxu2 %v1406_v21  ;;  %3630 = vmatpush.msra.mxu1 %v335_v31  ;;  %v255_v31 = vld [vmem:[#allocation2 + $0x570] sm:$0xff] }
 0x35a   :  { %v1182_v47 = vld [vmem:[#allocation2 + $0x2268] sm:$0xff]  ;;  %3624 = vmatpush.msra.mxu3 %v1646_v28  ;;  %v1071_v28 = vld [vmem:[#allocation2 + $0x1ef0] sm:$0xff] }
 0x35b   :  { %v1390_v33 = vld [vmem:[#allocation2 + $0x28e8] sm:$0xff]  ;;  %3581 = vmatpush.msrb.mxu0 %v1182_v47  ;;  %3631 = vmatpush.msra.mxu1 %v319_v43  ;;  %v847_v47 = vld [vmem:[#allocation2 + $0x17f0] sm:$0xff] }
 0x35c   :  { %v1630_v46 = vld [vmem:[#allocation2 + $0x3068] sm:$0xff]  ;;  %3604 = vmatpush.msra.mxu2 %v1390_v33  ;;  %v527_v33 = vld [vmem:[#allocation2 + $0xdf0] sm:$0xff] }
 0x35d   :  { %v1166_v32 = vld [vmem:[#allocation2 + $0x21e8] sm:$0xff]  ;;  %3625 = vmatpush.msra.mxu3 %v1630_v46  ;;  %3632 = vmatpush.msra.mxu1 %v303_v45  ;;  %v1055_v46 = vld [vmem:[#allocation2 + $0x1e70] sm:$0xff] }
 0x35e   :  { %v1374_v62 = vld [vmem:[#allocation2 + $0x2868] sm:$0xff]  ;;  %3582 = vmatpush.msrb.mxu0 %v1166_v32  ;;  %v239_v43 = vld [vmem:[#allocation2 + $0x4f0] sm:$0xff] }
 0x35f   :  { %v1150_v39 = vld [vmem:[#allocation2 + $0x2168] sm:$0xff]  ;;  %3650 = vmatpush.msrb.mxu3 %v591_v54  ;;  %3605 = vmatpush.msra.mxu2 %v1374_v62  ;;  %v831_v32 = vld [vmem:[#allocation2 + $0x1770] sm:$0xff] }
 0x360   :  { %3583 = vmatpush.msrb.mxu0 %v1150_v39  ;;  %v1134_v5 = vld [vmem:[#allocation2 + $0x20e8] sm:$0xff]  ;;  %3606 = vmatmul.f32.vlgmr.msra.gmra.mxu2 %v4585_v10  ;;  %v511_v54 = vld [vmem:[#allocation2 + $0xd70] sm:$0xff] }
 0x361   :  { %3651 = vmatpush.msrb.mxu3 %v575_v29  ;;  %3690 = vmatpush.msrb.mxu2 %v1103_v56  ;;  %v1118_v21 = vld [vmem:[#allocation2 + $0x2068] sm:$0xff]  ;;  %v1039_v62 = vld [vmem:[#allocation2 + $0x1df0] sm:$0xff] }
 0x362   :  { %3633 = vmatpush.msra.mxu1 %v287_v60  ;;  %3584 = vmatpush.msrb.mxu0 %v1134_v5  ;;  %v223_v45 = vld [vmem:[#allocation2 + $0x470] sm:$0xff] }
 0x363   :  { %3652 = vmatpush.msrb.mxu3 %v559_v6  ;;  %3691 = vmatpush.msrb.mxu2 %v1087_v34  ;;  %v815_v39 = vld [vmem:[#allocation2 + $0x16f0] sm:$0xff] }
 0x364   :  { %4110 = vmatmul.msk.f32.vlgmr.msra.gmra.mxu3 %vm1667_vm0, %v4581_v36  ;;  %3634 = vmatpush.msra.mxu1 %v271_v7  ;;  %v495_v29 = vld [vmem:[#allocation2 + $0xcf0] sm:$0xff] }
 0x365   :  { %3585 = vmatpush.msrb.mxu0 %v1118_v21  ;;  %3653 = vmatpush.msrb.mxu3 %v543_v59  ;;  %v1023_v56 = vld [vmem:[#allocation2 + $0x1d70] sm:$0xff] }
 0x366   :  { %3692 = vmatpush.msrb.mxu2 %v1071_v28  ;;  %3586 = vmatmul.f32.vlgmr.msrb.gmra.mxu0 %v4576_v55  ;;  %v207_v60 = vld [vmem:[#allocation2 + $0x3f0] sm:$0xff] }
 0x367   :  { %3635 = vmatpush.msra.mxu1 %v255_v31  ;;  %3670 = vmatpush.msra.mxu0 %v847_v47  ;;  %v799_v5 = vld [vmem:[#allocation2 + $0x1670] sm:$0xff] }
 0x368   :  { %3654 = vmatpush.msrb.mxu3 %v527_v33  ;;  %3693 = vmatpush.msrb.mxu2 %v1055_v46  ;;  %v479_v6 = vld [vmem:[#allocation2 + $0xc70] sm:$0xff] }
 0x369   :  { %3636 = vmatpush.msra.mxu1 %v239_v43  ;;  %3671 = vmatpush.msra.mxu0 %v831_v32  ;;  %v1007_v34 = vld [vmem:[#allocation2 + $0x1cf0] sm:$0xff] }
 0x36a   :  { %3655 = vmatpush.msrb.mxu3 %v511_v54  ;;  %3694 = vmatpush.msrb.mxu2 %v1039_v62  ;;  %v191_v7 = vld [vmem:[#allocation2 + $0x370] sm:$0xff] }
 0x36b   :  { %3637 = vmatpush.msra.mxu1 %v223_v45  ;;  %3672 = vmatpush.msra.mxu0 %v815_v39  ;;  %v783_v21 = vld [vmem:[#allocation2 + $0x15f0] sm:$0xff] }
 0x36c   :  { %3656 = vmatpush.msrb.mxu3 %v495_v29  ;;  %3695 = vmatpush.msrb.mxu2 %v1023_v56  ;;  %v463_v59 = vld [vmem:[#allocation2 + $0xbf0] sm:$0xff]  ;;  %v3227_v29 = vpop.f32.mrf.mxu2 }
 0x36d   :  { %3638 = vmatpush.msra.mxu1 %v207_v60  ;;  %3673 = vmatpush.msra.mxu0 %v799_v5  ;;  %v991_v28 = vld [vmem:[#allocation2 + $0x1c70] sm:$0xff] }
 0x36e   :  { %3657 = vmatpush.msrb.mxu3 %v479_v6  ;;  %3696 = vmatpush.msrb.mxu2 %v1007_v34  ;;  %v175_v31 = vld [vmem:[#allocation2 + $0x2f0] sm:$0xff] }
 0x36f   :  { %v767_v47 = vld [vmem:[#allocation2 + $0x1570] sm:$0xff]  ;;  %3639 = vmatpush.msra.mxu1 %v191_v7  ;;  %3674 = vmatpush.msra.mxu0 %v783_v21  ;;  %v3247_v21 = vpop.f32.mrf.mxu0 }
 0x370   :  { %v447_v33 = vld [vmem:[#allocation2 + $0xb70] sm:$0xff]  ;;  %3658 = vmatpush.msrb.mxu3 %v463_v59  ;;  %3697 = vmatpush.msrb.mxu2 %v991_v28  ;;  %v3267_v59 = vpop.f32.mrf.mxu1 }
 0x371   :  { %v975_v46 = vld [vmem:[#allocation2 + $0x1bf0] sm:$0xff]  ;;  %3640 = vmatpush.msra.mxu1 %v175_v31  ;;  %3675 = vmatpush.msra.mxu0 %v767_v47  ;;  %v3248_v47 = vadd.f32 %v3247_v21, %v3227_v29 }
 0x372   :  { %v159_v43 = vld [vmem:[#allocation2 + $0x270] sm:$0xff]  ;;  %3659 = vmatpush.msrb.mxu3 %v447_v33  ;;  %3698 = vmatpush.msrb.mxu2 %v975_v46 }
 0x373   :  { %v751_v32 = vld [vmem:[#allocation2 + $0x14f0] sm:$0xff]  ;;  %3641 = vmatpush.msra.mxu1 %v159_v43 }
 0x374   :  { %v431_v54 = vld [vmem:[#allocation2 + $0xaf0] sm:$0xff]  ;;  %3676 = vmatpush.msra.mxu0 %v751_v32 }
 0x375   :  { %v959_v62 = vld [vmem:[#allocation2 + $0x1b70] sm:$0xff]  ;;  %3660 = vmatpush.msrb.mxu3 %v431_v54  ;;  %v3268_v54 = vadd.f32 %v3267_v59, %v3248_v47 }
 0x376   :  { %v143_v45 = vld [vmem:[#allocation2 + $0x1f0] sm:$0xff]  ;;  %3699 = vmatpush.msrb.mxu2 %v959_v62 }
 0x377   :  { %v735_v39 = vld [vmem:[#allocation2 + $0x1470] sm:$0xff]  ;;  %3642 = vmatpush.msra.mxu1 %v143_v45 }
 0x378   :  { %v415_v56 = vld [vmem:[#allocation2 + $0xa70] sm:$0xff]  ;;  %3677 = vmatpush.msra.mxu0 %v735_v39  ;;  %v3287_v39 = vpop.f32.mrf.mxu3 }
 0x379   :  { %v943_v60 = vld [vmem:[#allocation2 + $0x1af0] sm:$0xff]  ;;  %3661 = vmatpush.msrb.mxu3 %v415_v56  ;;  %v3288_v16 = vadd.f32 %v3287_v39, %v3268_v54  ;;  %v3347_v39 = vpop.f32.mrf.mxu1 }
 0x37a   :  { %v127_v5 = vld [vmem:[#allocation2 + $0x170] sm:$0xff]  ;;  %3700 = vmatpush.msrb.mxu2 %v943_v60 }
 0x37b   :  { %v719_v6 = vld [vmem:[#allocation2 + $0x13f0] sm:$0xff]  ;;  %3643 = vmatpush.msra.mxu1 %v127_v5 }
 0x37c   :  { %v399_v34 = vld [vmem:[#allocation2 + $0x9f0] sm:$0xff]  ;;  %3678 = vmatpush.msra.mxu0 %v719_v6 }
 0x37d   :  { %v927_v7 = vld [vmem:[#allocation2 + $0x1a70] sm:$0xff]  ;;  %3662 = vmatpush.msrb.mxu3 %v399_v34 }
 0x37e   :  { %v111_v28 = vld [vmem:[#allocation2 + $0xf0] sm:$0xff]  ;;  %3701 = vmatpush.msrb.mxu2 %v927_v7  ;;  %v3307_v7 = vpop.f32.mrf.mxu2 }
 0x37f   :  { %v703_v31 = vld [vmem:[#allocation2 + $0x1370] sm:$0xff]  ;;  %3644 = vmatpush.msra.mxu1 %v111_v28  ;;  %v3308_v28 = vadd.f32 %v3307_v7, %v3288_v16  ;;  %v320_v16 = vld [vmem:[#allocation2 + $0x778] sm:$0xff] }
 0x380   :  { %v383_v33 = vld [vmem:[#allocation2 + $0x970] sm:$0xff]  ;;  %3679 = vmatpush.msra.mxu0 %v703_v31 }
 0x381   :  { %v911_v46 = vld [vmem:[#allocation2 + $0x19f0] sm:$0xff]  ;;  %3663 = vmatpush.msrb.mxu3 %v383_v33 }
 0x382   :  { %v95_v43 = vld [vmem:[#allocation2 + $0x70] sm:$0xff]  ;;  %3702 = vmatpush.msrb.mxu2 %v911_v46  ;;  %v3327_v46 = vpop.f32.mrf.mxu0 }
 0x383   :  { %v687_v32 = vld [vmem:[#allocation2 + $0x12f0] sm:$0xff]  ;;  %3645 = vmatpush.msra.mxu1 %v95_v43  ;;  %v336_v43 = vld [vmem:[#allocation2 + $0x7f8] sm:$0xff]  ;;  %v3328_v54 = vadd.f32 %v3327_v46, %v3308_v28 }
 0x384   :  { %v367_v62 = vld [vmem:[#allocation2 + $0x8f0] sm:$0xff]  ;;  %3680 = vmatpush.msra.mxu0 %v687_v32  ;;  %3646 = vmatmul.f32.vlgmr.msra.gmra.mxu1 %v4542_v42  ;;  %v560_v42 = vld [vmem:[#allocation2 + $0xef8] sm:$0xff] }
 0x385   :  { %v895_v45 = vld [vmem:[#allocation2 + $0x1970] sm:$0xff]  ;;  %3664 = vmatpush.msrb.mxu3 %v367_v62 }
 0x386   :  { %v1359_v56 = vld [vmem:[#allocation2 + $0x27f0] sm:$0xff]  ;;  %3703 = vmatpush.msrb.mxu2 %v895_v45 }
 0x387   :  { %v671_v60 = vld [vmem:[#allocation2 + $0x1270] sm:$0xff]  ;;  %3710 = vmatpush.msrb.mxu1 %v1359_v56 }
 0x388   :  { %v351_v29 = vld [vmem:[#allocation2 + $0x870] sm:$0xff]  ;;  %3681 = vmatpush.msra.mxu0 %v671_v60  ;;  %v4600_v60 = vadd.f32 %v3347_v39, %v3328_v54 }
 0x389   :  { %v879_v5 = vld [vmem:[#allocation2 + $0x18f0] sm:$0xff]  ;;  %3665 = vmatpush.msrb.mxu3 %v351_v29 }
 0x38a   :  { %v1343_v6 = vld [vmem:[#allocation2 + $0x2770] sm:$0xff]  ;;  %3704 = vmatpush.msrb.mxu2 %v879_v5  ;;  %3666 = vmatmul.f32.vlgmr.msrb.gmra.mxu3 %v4556_v63 }
 0x38b   :  { %v655_v34 = vld [vmem:[#allocation2 + $0x11f0] sm:$0xff]  ;;  %3711 = vmatpush.msrb.mxu1 %v1343_v6  ;;  %v304_v6 = vld [vmem:[#allocation2 + $0x6f8] sm:$0xff] }
 0x38c   :  { %v1615_v21 = vld [vmem:[#allocation2 + $0x2ff0] sm:$0xff]  ;;  %3682 = vmatpush.msra.mxu0 %v655_v34 }
 0x38d   :  { %v863_v59 = vld [vmem:[#allocation2 + $0x1870] sm:$0xff]  ;;  %3730 = vmatpush.msra.mxu3 %v1615_v21  ;;  %v288_v21 = vld [vmem:[#allocation2 + $0x678] sm:$0xff] }
 0x38e   :  { %v1327_v31 = vld [vmem:[#allocation2 + $0x26f0] sm:$0xff]  ;;  %3705 = vmatpush.msrb.mxu2 %v863_v59 }
 0x38f   :  { %v639_v47 = vld [vmem:[#allocation2 + $0x1170] sm:$0xff]  ;;  %3712 = vmatpush.msrb.mxu1 %v1327_v31  ;;  %3706 = vmatmul.f32.vlgmr.msrb.gmra.mxu2 %v4565_v25 }
 0x390   :  { %v1599_v33 = vld [vmem:[#allocation2 + $0x2f70] sm:$0xff]  ;;  %3683 = vmatpush.msra.mxu0 %v639_v47  ;;  %3770 = vmatpush.msra.mxu2 %v336_v43  ;;  %v272_v47 = vld [vmem:[#allocation2 + $0x5f8] sm:$0xff] }
 0x391   :  { %v1311_v32 = vld [vmem:[#allocation2 + $0x2670] sm:$0xff]  ;;  %3731 = vmatpush.msra.mxu3 %v1599_v33  ;;  %v592_v33 = vld [vmem:[#allocation2 + $0xff8] sm:$0xff] }
 0x392   :  { %v623_v62 = vld [vmem:[#allocation2 + $0x10f0] sm:$0xff]  ;;  %3713 = vmatpush.msrb.mxu1 %v1311_v32  ;;  %3771 = vmatpush.msra.mxu2 %v320_v16  ;;  %v256_v43 = vld [vmem:[#allocation2 + $0x578] sm:$0xff] }
 0x393   :  { %v1583_v45 = vld [vmem:[#allocation2 + $0x2ef0] sm:$0xff]  ;;  %3684 = vmatpush.msra.mxu0 %v623_v62  ;;  %v576_v32 = vld [vmem:[#allocation2 + $0xf78] sm:$0xff] }
 0x394   :  { %v1295_v56 = vld [vmem:[#allocation2 + $0x25f0] sm:$0xff]  ;;  %3732 = vmatpush.msra.mxu3 %v1583_v45  ;;  %3772 = vmatpush.msra.mxu2 %v304_v6  ;;  %v240_v45 = vld [vmem:[#allocation2 + $0x4f8] sm:$0xff] }
 0x395   :  { %v607_v29 = vld [vmem:[#allocation2 + $0x1070] sm:$0xff]  ;;  %3714 = vmatpush.msrb.mxu1 %v1295_v56  ;;  %v224_v56 = vld [vmem:[#allocation2 + $0x478] sm:$0xff] }
 0x396   :  { %v1567_v5 = vld [vmem:[#allocation2 + $0x2e70] sm:$0xff]  ;;  %3685 = vmatpush.msra.mxu0 %v607_v29  ;;  %3773 = vmatpush.msra.mxu2 %v288_v21  ;;  %v544_v29 = vld [vmem:[#allocation2 + $0xe78] sm:$0xff] }
 0x397   :  { %v1279_v34 = vld [vmem:[#allocation2 + $0x2570] sm:$0xff]  ;;  %3733 = vmatpush.msra.mxu3 %v1567_v5  ;;  %3686 = vmatmul.f32.vlgmr.msra.gmra.mxu0 %v4545_v9  ;;  %v208_v6 = vld [vmem:[#allocation2 + $0x3f8] sm:$0xff] }
 0x398   :  { %v1647_v63 = vld [vmem:[#allocation2 + $0x30f0] sm:$0xff]  ;;  %3715 = vmatpush.msrb.mxu1 %v1279_v34  ;;  %3774 = vmatpush.msra.mxu2 %v272_v47  ;;  %v528_v34 = vld [vmem:[#allocation2 + $0xdf8] sm:$0xff] }
 0x399   :  { %v1551_v7 = vld [vmem:[#allocation2 + $0x2df0] sm:$0xff]  ;;  %3764 = vmatpush.msrb.mxu0 %v1647_v63  ;;  %v192_v21 = vld [vmem:[#allocation2 + $0x378] sm:$0xff] }
 0x39a   :  { %v1263_v59 = vld [vmem:[#allocation2 + $0x24f0] sm:$0xff]  ;;  %3734 = vmatpush.msra.mxu3 %v1551_v7  ;;  %3775 = vmatpush.msra.mxu2 %v256_v43  ;;  %v176_v47 = vld [vmem:[#allocation2 + $0x2f8] sm:$0xff] }
 0x39b   :  { %v1631_v28 = vld [vmem:[#allocation2 + $0x3070] sm:$0xff]  ;;  %3716 = vmatpush.msrb.mxu1 %v1263_v59  ;;  %v512_v59 = vld [vmem:[#allocation2 + $0xd78] sm:$0xff] }
 0x39c   :  { %v1535_v31 = vld [vmem:[#allocation2 + $0x2d70] sm:$0xff]  ;;  %3765 = vmatpush.msrb.mxu0 %v1631_v28  ;;  %3776 = vmatpush.msra.mxu2 %v240_v45  ;;  %v160_v43 = vld [vmem:[#allocation2 + $0x278] sm:$0xff] }
 0x39d   :  { %v1247_v46 = vld [vmem:[#allocation2 + $0x2470] sm:$0xff]  ;;  %3735 = vmatpush.msra.mxu3 %v1535_v31  ;;  %v144_v45 = vld [vmem:[#allocation2 + $0x1f8] sm:$0xff] }
 0x39e   :  { %v1519_v25 = vld [vmem:[#allocation2 + $0x2cf0] sm:$0xff]  ;;  %3790 = vmatpush.msra.mxu0 %v592_v33  ;;  %3717 = vmatpush.msrb.mxu1 %v1247_v46  ;;  %v496_v33 = vld [vmem:[#allocation2 + $0xcf8] sm:$0xff] }
 0x39f   :  { %v1231_v54 = vld [vmem:[#allocation2 + $0x23f0] sm:$0xff]  ;;  %3736 = vmatpush.msra.mxu3 %v1519_v25  ;;  %3777 = vmatpush.msra.mxu2 %v224_v56  ;;  %v128_v56 = vld [vmem:[#allocation2 + $0x178] sm:$0xff] }
 0x3a0   :  { %v1503_v62 = vld [vmem:[#allocation2 + $0x2c70] sm:$0xff]  ;;  %3791 = vmatpush.msra.mxu0 %v576_v32  ;;  %3718 = vmatpush.msrb.mxu1 %v1231_v54  ;;  %v480_v32 = vld [vmem:[#allocation2 + $0xc78] sm:$0xff] }
 0x3a1   :  { %v1215_v39 = vld [vmem:[#allocation2 + $0x2370] sm:$0xff]  ;;  %3737 = vmatpush.msra.mxu3 %v1503_v62  ;;  %3778 = vmatpush.msra.mxu2 %v208_v6  ;;  %v112_v6 = vld [vmem:[#allocation2 + $0xf8] sm:$0xff] }
 0x3a2   :  { %v1487_v16 = vld [vmem:[#allocation2 + $0x2bf0] sm:$0xff]  ;;  %3792 = vmatpush.msra.mxu0 %v560_v42  ;;  %3719 = vmatpush.msrb.mxu1 %v1215_v39  ;;  %v464_v42 = vld [vmem:[#allocation2 + $0xbf8] sm:$0xff] }
 0x3a3   :  { %v1199_v5 = vld [vmem:[#allocation2 + $0x22f0] sm:$0xff]  ;;  %3738 = vmatpush.msra.mxu3 %v1487_v16  ;;  %3779 = vmatpush.msra.mxu2 %v192_v21  ;;  %v96_v21 = vld [vmem:[#allocation2 + $0x78] sm:$0xff] }
 0x3a4   :  { %v1471_v9 = vld [vmem:[#allocation2 + $0x2b70] sm:$0xff]  ;;  %3793 = vmatpush.msra.mxu0 %v544_v29  ;;  %3720 = vmatpush.msrb.mxu1 %v1199_v5  ;;  %v448_v29 = vld [vmem:[#allocation2 + $0xb78] sm:$0xff] }
 0x3a5   :  { %v1183_v63 = vld [vmem:[#allocation2 + $0x2270] sm:$0xff]  ;;  %3739 = vmatpush.msra.mxu3 %v1471_v9  ;;  %3780 = vmatpush.msra.mxu2 %v176_v47  ;;  %v848_v9 = vld [vmem:[#allocation2 + $0x17f8] sm:$0xff] }
 0x3a6   :  { %v1455_v7 = vld [vmem:[#allocation2 + $0x2af0] sm:$0xff]  ;;  %3794 = vmatpush.msra.mxu0 %v528_v34  ;;  %3721 = vmatpush.msrb.mxu1 %v1183_v63  ;;  %v432_v34 = vld [vmem:[#allocation2 + $0xaf8] sm:$0xff] }
 0x3a7   :  { %v1167_v28 = vld [vmem:[#allocation2 + $0x21f0] sm:$0xff]  ;;  %3740 = vmatpush.msra.mxu3 %v1455_v7  ;;  %3781 = vmatpush.msra.mxu2 %v160_v43  ;;  %v832_v63 = vld [vmem:[#allocation2 + $0x1778] sm:$0xff] }
 0x3a8   :  { %v1439_v31 = vld [vmem:[#allocation2 + $0x2a70] sm:$0xff]  ;;  %3795 = vmatpush.msra.mxu0 %v512_v59  ;;  %3722 = vmatpush.msrb.mxu1 %v1167_v28  ;;  %v1104_v7 = vld [vmem:[#allocation2 + $0x1ff8] sm:$0xff] }
 0x3a9   :  { %v1151_v46 = vld [vmem:[#allocation2 + $0x2170] sm:$0xff]  ;;  %3741 = vmatpush.msra.mxu3 %v1439_v31  ;;  %3782 = vmatpush.msra.mxu2 %v144_v45  ;;  %v416_v59 = vld [vmem:[#allocation2 + $0xa78] sm:$0xff] }
 0x3aa   :  { %v1423_v25 = vld [vmem:[#allocation2 + $0x29f0] sm:$0xff]  ;;  %3796 = vmatpush.msra.mxu0 %v496_v33  ;;  %3723 = vmatpush.msrb.mxu1 %v1151_v46  ;;  %v1360_v28 = vld [vmem:[#allocation2 + $0x27f8] sm:$0xff] }
 0x3ab   :  { %v1135_v54 = vld [vmem:[#allocation2 + $0x20f0] sm:$0xff]  ;;  %3742 = vmatpush.msra.mxu3 %v1423_v25  ;;  %3783 = vmatpush.msra.mxu2 %v128_v56  ;;  %v1088_v31 = vld [vmem:[#allocation2 + $0x1f78] sm:$0xff] }
 0x3ac   :  { %v1407_v62 = vld [vmem:[#allocation2 + $0x2970] sm:$0xff]  ;;  %3797 = vmatpush.msra.mxu0 %v480_v32  ;;  %3724 = vmatpush.msrb.mxu1 %v1135_v54  ;;  %v816_v47 = vld [vmem:[#allocation2 + $0x16f8] sm:$0xff] }
 0x3ad   :  { %v1119_v39 = vld [vmem:[#allocation2 + $0x2070] sm:$0xff]  ;;  %3743 = vmatpush.msra.mxu3 %v1407_v62  ;;  %3784 = vmatpush.msra.mxu2 %v112_v6  ;;  %v1344_v33 = vld [vmem:[#allocation2 + $0x2778] sm:$0xff] }
 0x3ae   :  { %v1391_v16 = vld [vmem:[#allocation2 + $0x28f0] sm:$0xff]  ;;  %3798 = vmatpush.msra.mxu0 %v464_v42  ;;  %3725 = vmatpush.msrb.mxu1 %v1119_v39  ;;  %v1072_v46 = vld [vmem:[#allocation2 + $0x1ef8] sm:$0xff] }
 0x3af   :  { %v1375_v5 = vld [vmem:[#allocation2 + $0x2870] sm:$0xff]  ;;  %3726 = vmatmul.f32.vlgmr.msrb.gmra.mxu1 %v4576_v55  ;;  %3744 = vmatpush.msra.mxu3 %v1391_v16  ;;  %v400_v55 = vld [vmem:[#allocation2 + $0x9f8] sm:$0xff] }
 0x3b0   :  { %3799 = vmatpush.msra.mxu0 %v448_v29  ;;  %3810 = vmatpush.msra.mxu1 %v848_v9  ;;  %v384_v25 = vld [vmem:[#allocation2 + $0x978] sm:$0xff] }
 0x3b1   :  { %3745 = vmatpush.msra.mxu3 %v1375_v5  ;;  %3785 = vmatpush.msra.mxu2 %v96_v21  ;;  %v1328_v43 = vld [vmem:[#allocation2 + $0x26f8] sm:$0xff] }
 0x3b2   :  { %3800 = vmatpush.msra.mxu0 %v432_v34  ;;  %3746 = vmatmul.f32.vlgmr.msra.gmra.mxu3 %v4585_v10  ;;  %v1056_v32 = vld [vmem:[#allocation2 + $0x1e78] sm:$0xff] }
 0x3b3   :  { %3811 = vmatpush.msra.mxu1 %v832_v63  ;;  %3830 = vmatpush.msrb.mxu3 %v1104_v7  ;;  %v800_v54 = vld [vmem:[#allocation2 + $0x1678] sm:$0xff] }
 0x3b4   :  { %3801 = vmatpush.msra.mxu0 %v416_v59  ;;  %3850 = vmatpush.msrb.mxu2 %v1360_v28  ;;  %v368_v10 = vld [vmem:[#allocation2 + $0x8f8] sm:$0xff] }
 0x3b5   :  { %3831 = vmatpush.msrb.mxu3 %v1088_v31  ;;  %3812 = vmatpush.msra.mxu1 %v816_v47  ;;  %v1312_v62 = vld [vmem:[#allocation2 + $0x2678] sm:$0xff] }
 0x3b6   :  { %3802 = vmatpush.msra.mxu0 %v400_v55  ;;  %3851 = vmatpush.msrb.mxu2 %v1344_v33  ;;  %v1040_v45 = vld [vmem:[#allocation2 + $0x1df8] sm:$0xff] }
 0x3b7   :  { %3832 = vmatpush.msrb.mxu3 %v1072_v46  ;;  %4111 = vmatmul.msk.f32.vlgmr.msrb.gmra.mxu0 %vm1667_vm0, %v4581_v36  ;;  %v784_v42 = vld [vmem:[#allocation2 + $0x15f8] sm:$0xff] }
 0x3b8   :  { %3803 = vmatpush.msra.mxu0 %v384_v25  ;;  %3852 = vmatpush.msrb.mxu2 %v1328_v43  ;;  %v352_v39 = vld [vmem:[#allocation2 + $0x878] sm:$0xff] }
 0x3b9   :  { %3833 = vmatpush.msrb.mxu3 %v1056_v32  ;;  %3813 = vmatpush.msra.mxu1 %v800_v54  ;;  %v1296_v16 = vld [vmem:[#allocation2 + $0x25f8] sm:$0xff] }
 0x3ba   :  { %3804 = vmatpush.msra.mxu0 %v368_v10  ;;  %3853 = vmatpush.msrb.mxu2 %v1312_v62  ;;  %v1024_v56 = vld [vmem:[#allocation2 + $0x1d78] sm:$0xff] }
 0x3bb   :  { %v1616_v29 = vld [vmem:[#allocation2 + $0x2ff8] sm:$0xff]  ;;  %3834 = vmatpush.msrb.mxu3 %v1040_v45  ;;  %3814 = vmatpush.msra.mxu1 %v784_v42 }
 0x3bc   :  { %v768_v5 = vld [vmem:[#allocation2 + $0x1578] sm:$0xff]  ;;  %3805 = vmatpush.msra.mxu0 %v352_v39  ;;  %3854 = vmatpush.msrb.mxu2 %v1296_v16 }
 0x3bd   :  { %v1280_v9 = vld [vmem:[#allocation2 + $0x2578] sm:$0xff]  ;;  %3835 = vmatpush.msrb.mxu3 %v1024_v56  ;;  %3815 = vmatpush.msra.mxu1 %v768_v5 }
 0x3be   :  { %v1008_v36 = vld [vmem:[#allocation2 + $0x1cf8] sm:$0xff]  ;;  %3870 = vmatpush.msrb.mxu0 %v1616_v29  ;;  %3855 = vmatpush.msrb.mxu2 %v1280_v9 }
 0x3bf   :  { %v1600_v6 = vld [vmem:[#allocation2 + $0x2f78] sm:$0xff]  ;;  %3836 = vmatpush.msrb.mxu3 %v1008_v36 }
 0x3c0   :  { %v752_v34 = vld [vmem:[#allocation2 + $0x14f8] sm:$0xff]  ;;  %3871 = vmatpush.msrb.mxu0 %v1600_v6 }
 0x3c1   :  { %v1264_v63 = vld [vmem:[#allocation2 + $0x24f8] sm:$0xff]  ;;  %3816 = vmatpush.msra.mxu1 %v752_v34 }
 0x3c2   :  { %v992_v7 = vld [vmem:[#allocation2 + $0x1c78] sm:$0xff]  ;;  %3856 = vmatpush.msrb.mxu2 %v1264_v63 }
 0x3c3   :  { %v1584_v21 = vld [vmem:[#allocation2 + $0x2ef8] sm:$0xff]  ;;  %3837 = vmatpush.msrb.mxu3 %v992_v7  ;;  %v3367_v7 = vpop.f32.mrf.mxu3 }
 0x3c4   :  { %v736_v59 = vld [vmem:[#allocation2 + $0x1478] sm:$0xff]  ;;  %3872 = vmatpush.msrb.mxu0 %v1584_v21  ;;  %v3387_v21 = vpop.f32.mrf.mxu1 }
 0x3c5   :  { %v1248_v28 = vld [vmem:[#allocation2 + $0x2478] sm:$0xff]  ;;  %3817 = vmatpush.msra.mxu1 %v736_v59 }
 0x3c6   :  { %v976_v31 = vld [vmem:[#allocation2 + $0x1bf8] sm:$0xff]  ;;  %3857 = vmatpush.msrb.mxu2 %v1248_v28 }
 0x3c7   :  { %v1568_v47 = vld [vmem:[#allocation2 + $0x2e78] sm:$0xff]  ;;  %3838 = vmatpush.msrb.mxu3 %v976_v31 }
 0x3c8   :  { %v720_v55 = vld [vmem:[#allocation2 + $0x13f8] sm:$0xff]  ;;  %3873 = vmatpush.msrb.mxu0 %v1568_v47 }
 0x3c9   :  { %v1232_v33 = vld [vmem:[#allocation2 + $0x23f8] sm:$0xff]  ;;  %3818 = vmatpush.msra.mxu1 %v720_v55 }
 0x3ca   :  { %v960_v46 = vld [vmem:[#allocation2 + $0x1b78] sm:$0xff]  ;;  %3858 = vmatpush.msrb.mxu2 %v1232_v33 }
 0x3cb   :  { %v1552_v25 = vld [vmem:[#allocation2 + $0x2df8] sm:$0xff]  ;;  %3839 = vmatpush.msrb.mxu3 %v960_v46 }
 0x3cc   :  { %v704_v43 = vld [vmem:[#allocation2 + $0x1378] sm:$0xff]  ;;  %3874 = vmatpush.msrb.mxu0 %v1552_v25  ;;  %v3388_v25 = vadd.f32 %v3387_v21, %v3367_v7 }
 0x3cd   :  { %v1216_v32 = vld [vmem:[#allocation2 + $0x2378] sm:$0xff]  ;;  %3819 = vmatpush.msra.mxu1 %v704_v43 }
 0x3ce   :  { %v944_v54 = vld [vmem:[#allocation2 + $0x1af8] sm:$0xff]  ;;  %3859 = vmatpush.msrb.mxu2 %v1216_v32  ;;  %v3407_v32 = vpop.f32.mrf.mxu2 }
 0x3cf   :  { %v1536_v10 = vld [vmem:[#allocation2 + $0x2d78] sm:$0xff]  ;;  %3840 = vmatpush.msrb.mxu3 %v944_v54 }
 0x3d0   :  { %v688_v62 = vld [vmem:[#allocation2 + $0x12f8] sm:$0xff]  ;;  %3875 = vmatpush.msrb.mxu0 %v1536_v10  ;;  %v2828_v10 = vadd.f32 %v4548_v53, %v4536_v12 }
 0x3d1   :  { %v1200_v45 = vld [vmem:[#allocation2 + $0x22f8] sm:$0xff]  ;;  %3820 = vmatpush.msra.mxu1 %v688_v62 }
 0x3d2   :  { %v928_v42 = vld [vmem:[#allocation2 + $0x1a78] sm:$0xff]  ;;  %3860 = vmatpush.msrb.mxu2 %v1200_v45 }
 0x3d3   :  { %v1520_v39 = vld [vmem:[#allocation2 + $0x2cf8] sm:$0xff]  ;;  %3841 = vmatpush.msrb.mxu3 %v928_v42  ;;  %v4150_v42 = vld.sshfl [vmem:[#allocation1 + $0x18] sm:$0xff pattern:$0x73625140] }
 0x3d4   :  { %v672_v16 = vld [vmem:[#allocation2 + $0x1278] sm:$0xff]  ;;  %3876 = vmatpush.msrb.mxu0 %v1520_v39 }
 0x3d5   :  { %v1184_v56 = vld [vmem:[#allocation2 + $0x2278] sm:$0xff]  ;;  %3821 = vmatpush.msra.mxu1 %v672_v16  ;;  %v1708_v16 = vadd.f32 %v4387_v40, %v4385_v37  ;;  %v3447_v37 = vpop.f32.mrf.mxu3 }
 0x3d6   :  { %v912_v29 = vld [vmem:[#allocation2 + $0x19f8] sm:$0xff]  ;;  %3861 = vmatpush.msrb.mxu2 %v1184_v56  ;;  %v3408_v56 = vadd.f32 %v3407_v32, %v3388_v25  ;;  %v3467_v25 = vpop.f32.mrf.mxu1 }
 0x3d7   :  { %v1504_v5 = vld [vmem:[#allocation2 + $0x2c78] sm:$0xff]  ;;  %3842 = vmatpush.msrb.mxu3 %v912_v29  ;;  %v4151_v29 = vld.sshfl [vmem:[#allocation1 + $0x8] sm:$0xff pattern:$0x73625140]  ;;  %v1728_v21 = vadd.f32 %v4383_v27, %v1708_v16 }
 0x3d8   :  { %v656_v9 = vld [vmem:[#allocation2 + $0x11f8] sm:$0xff]  ;;  %3877 = vmatpush.msrb.mxu0 %v1504_v5  ;;  %v4155_v16 = vld.sshfl [vmem:[#allocation1 + $0x28] sm:$0xff pattern:$0x73625140] }
 0x3d9   :  { %v896_v36 = vld [vmem:[#allocation2 + $0x1978] sm:$0xff]  ;;  %3822 = vmatpush.msra.mxu1 %v656_v9  ;;  %3806 = vmatmul.f32.vlgmr.msra.gmra.mxu0 %v4151_v29  ;;  %v3427_v9 = vpop.f32.mrf.mxu0  ;;  %v1748_v27 = vadd.f32 %v4381_v17, %v1728_v21  ;;  %v3968_v17 = vld [vmem:[#allocation6 + $0xe0] sm:$0xff] }
 0x3da   :  { %v1168_v6 = vld [vmem:[#allocation2 + $0x21f8] sm:$0xff]  ;;  %3843 = vmatpush.msrb.mxu3 %v896_v36  ;;  %v2848_v36 = vadd.f32 %v4538_v30, %v2828_v10  ;;  %v3969_v10 = vld [vmem:[#allocation6 + $0xe8] sm:$0xff]  ;;  %v3944_v21 = vld [vmem:[#allocation6 + $0x20] sm:$0xff] }
 0x3db   :  { %v1488_v34 = vld [vmem:[#allocation2 + $0x2bf8] sm:$0xff]  ;;  %3862 = vmatpush.msrb.mxu2 %v1168_v6  ;;  %v4152_v6 = vld.sshfl [vmem:[#allocation1 + $0x10] sm:$0xff pattern:$0x73625140] }
 0x3dc   :  { %v640_v63 = vld [vmem:[#allocation2 + $0x1178] sm:$0xff]  ;;  %3878 = vmatpush.msrb.mxu0 %v1488_v34  ;;  %v3953_v34 = vld [vmem:[#allocation6 + $0x68] sm:$0xff]  ;;  %v2868_v30 = vadd.f32 %v4550_v50, %v2848_v36  ;;  %v1768_v50 = vadd.f32 %v4393_v57, %v1748_v27 }
 0x3dd   :  { %v4149_v59 = vld.sshfl [vmem:[#allocation1] sm:$0xff pattern:$0x73625140]  ;;  %3823 = vmatpush.msra.mxu1 %v640_v63 }
 0x3de   :  { %3786 = vmatmul.f32.vlgmr.msra.gmra.mxu2 %v4149_v59  ;;  %v880_v28 = vld [vmem:[#allocation2 + $0x18f8] sm:$0xff]  ;;  %v3428_v59 = vadd.f32 %v3427_v9, %v3408_v56  ;;  %v2888_v32 = vadd.f32 %v4540_v4, %v2868_v30  ;;  %v3948_v56 = vld [vmem:[#allocation6 + $0x40] sm:$0xff] }
 0x3df   :  { %v1152_v31 = vld [vmem:[#allocation2 + $0x2178] sm:$0xff]  ;;  %3844 = vmatpush.msrb.mxu3 %v880_v28  ;;  %v3952_v28 = vld [vmem:[#allocation6 + $0x60] sm:$0xff] }
 0x3e0   :  { %v1472_v47 = vld [vmem:[#allocation2 + $0x2b78] sm:$0xff]  ;;  %3863 = vmatpush.msrb.mxu2 %v1152_v31  ;;  %v2908_v4 = vadd.f32 %v4559_v44, %v2888_v32  ;;  %v3965_v44 = vld [vmem:[#allocation6 + $0xc8] sm:$0xff]  ;;  %v3960_v32 = vld [vmem:[#allocation6 + $0xa0] sm:$0xff] }
 0x3e1   :  { %v624_v55 = vld [vmem:[#allocation2 + $0x10f8] sm:$0xff]  ;;  %3879 = vmatpush.msrb.mxu0 %v1472_v47 }
 0x3e2   :  { %v864_v33 = vld [vmem:[#allocation2 + $0x1878] sm:$0xff]  ;;  %3824 = vmatpush.msra.mxu1 %v624_v55  ;;  %v3448_v55 = vadd.f32 %v3447_v37, %v3428_v59  ;;  %v3945_v37 = vld [vmem:[#allocation6 + $0x28] sm:$0xff] }
 0x3e3   :  { %v1136_v46 = vld [vmem:[#allocation2 + $0x20f8] sm:$0xff]  ;;  %3845 = vmatpush.msrb.mxu3 %v864_v33 }
 0x3e4   :  { %v1456_v43 = vld [vmem:[#allocation2 + $0x2af8] sm:$0xff]  ;;  %3864 = vmatpush.msrb.mxu2 %v1136_v46  ;;  %3846 = vmatmul.f32.vlgmr.msrb.gmra.mxu3 %v4150_v42  ;;  %v3949_v42 = vld [vmem:[#allocation6 + $0x48] sm:$0xff] }
 0x3e5   :  { %v3955_v54 = vld [vmem:[#allocation6 + $0x78] sm:$0xff]  ;;  %3880 = vmatpush.msrb.mxu0 %v1456_v43  ;;  %v3954_v5 = vld [vmem:[#allocation6 + $0x70] sm:$0xff] }
 0x3e6   :  { %v608_v62 = vld [vmem:[#allocation2 + $0x1078] sm:$0xff]  ;;  %4008 = vmatpush.msra.mxu3 %v3955_v54 }
 0x3e7   :  { %v1120_v45 = vld [vmem:[#allocation2 + $0x2078] sm:$0xff]  ;;  %3825 = vmatpush.msra.mxu1 %v608_v62  ;;  %v3468_v62 = vadd.f32 %v3467_v25, %v3448_v55  ;;  %v3941_v25 = vld [vmem:[#allocation6 + $0x8] sm:$0xff] }
 0x3e8   :  { %v1440_v39 = vld [vmem:[#allocation2 + $0x2a78] sm:$0xff]  ;;  %3865 = vmatpush.msrb.mxu2 %v1120_v45  ;;  %3826 = vmatmul.f32.vlgmr.msra.gmra.mxu1 %v4152_v6  ;;  %v4154_v45 = vld.sshfl [vmem:[#allocation1 + $0x30] sm:$0xff pattern:$0x73625140]  ;;  %v2968_v6 = vadd.f32 %v4563_v18, %v4561_v24 }
 0x3e9   :  { %v1424_v12 = vld [vmem:[#allocation2 + $0x29f8] sm:$0xff]  ;;  %3881 = vmatpush.msrb.mxu0 %v1440_v39  ;;  %4009 = vmatpush.msra.mxu3 %v3954_v5  ;;  %v3487_v39 = vpop.f32.mrf.mxu2  ;;  %v1788_v5 = vadd.f32 %v4395_v2, %v1768_v50  ;;  %v1848_v2 = vadd.f32 %v4400_v0, %v4389_v41 }
 0x3ea   :  { %v1648_v53 = vld [vmem:[#allocation2 + $0x30f8] sm:$0xff]  ;;  %v3488_v57 = vadd.f32 %v3487_v39, %v3468_v62  ;;  %v2988_v24 = vadd.f32 %v4554_v1, %v2968_v6  ;;  %v3547_v1 = vpop.f32.mrf.mxu3 }
 0x3eb   :  { %v4153_v63 = vld.sshfl [vmem:[#allocation1 + $0x20] sm:$0xff pattern:$0x73625140]  ;;  %3882 = vmatpush.msrb.mxu0 %v1424_v12  ;;  %3904 = vmatpush.msrb.mxu1 %v1648_v53  ;;  %v2928_v53 = vadd.f32 %v4552_v52, %v2908_v4  ;;  %v1868_v41 = vadd.f32 %v4404_v14, %v1848_v2  ;;  %v3957_v4 = vld [vmem:[#allocation6 + $0x88] sm:$0xff] }
 0x3ec   :  { %3866 = vmatmul.f32.vlgmr.msrb.gmra.mxu2 %v4153_v63  ;;  %v1408_v40 = vld [vmem:[#allocation2 + $0x2978] sm:$0xff]  ;;  %4010 = vmatpush.msra.mxu3 %v3953_v34  ;;  %v1808_v34 = vadd.f32 %v4391_v48, %v1788_v5  ;;  %v3981_v2 = vld [vmem:[#allocation6 + $0x148] sm:$0xff] }
 0x3ed   :  { %v1632_v7 = vld [vmem:[#allocation2 + $0x3078] sm:$0xff]  ;;  %3883 = vmatpush.msrb.mxu0 %v1408_v40  ;;  %v3914_v63 = vmax.f32 %v2928_v53, %v3488_v57  ;;  %v4628_v40 = vld [vmem:[#allocation4] sm:$0xf]  ;;  %v1888_v27 = vadd.f32 %v4406_v15, %v1868_v41  ;;  %v4001_v41 = vld [vmem:[#allocation6 + $0x1e8] sm:$0xff] }
 0x3ee   :  { %v3971_v31 = vld [vmem:[#allocation6 + $0xf8] sm:$0xff]  ;;  %3905 = vmatpush.msrb.mxu1 %v1632_v7  ;;  %v3970_v46 = vld [vmem:[#allocation6 + $0xf0] sm:$0xff]  ;;  %4011 = vmatpush.msra.mxu3 %v3952_v28  ;;  %v3964_v7 = vld [vmem:[#allocation6 + $0xc0] sm:$0xff]  ;;  %v3910_v52 = vmax.f32 %v1808_v34, %v4459_v51  ;;  %v3924_v48 = vperm.slane %v4628_v40, 0  ;;  %v3008_v51 = vadd.f32 %v4570_v23, %v2988_v24 }
 0x3ef   :  { %v1392_v47 = vld [vmem:[#allocation2 + $0x28f8] sm:$0xff]  ;;  %v3985_v34 = vld [vmem:[#allocation6 + $0x168] sm:$0xff]  ;;  %v3976_v24 = vld [vmem:[#allocation6 + $0x120] sm:$0xff] }
 0x3f0   :  { %v3951_v33 = vld [vmem:[#allocation6 + $0x58] sm:$0xff]  ;;  %4028 = vmatpush.msra.mxu1 %v3971_v31  ;;  %3884 = vmatpush.msrb.mxu0 %v1392_v47  ;;  %v3950_v54 = vld [vmem:[#allocation6 + $0x50] sm:$0xff]  ;;  %v3918_v59 = vmax.f32 %v3910_v52, %v3914_v63  ;;  %v3507_v31 = vpop.f32.mrf.mxu0  ;;  %v3028_v14 = vadd.f32 %v4572_v35, %v3008_v51 }
 0x3f1   :  { %v1376_v43 = vld [vmem:[#allocation2 + $0x2878] sm:$0xff]  ;;  %4012 = vmatpush.msra.mxu3 %v3951_v33  ;;  %4112 = vmatmul.msk.f32.vlgmr.msrb.gmra.mxu1 %vm1667_vm0, %v4154_v45  ;;  %v3527_v47 = vpop.f32.mrf.mxu2  ;;  %v3961_v33 = vld [vmem:[#allocation6 + $0xa8] sm:$0xff]  ;;  %v1908_v45 = vadd.f32 %v4398_v61, %v1888_v27 }
 0x3f2   :  { %4029 = vmatpush.msra.mxu1 %v3970_v46  ;;  %3885 = vmatpush.msrb.mxu0 %v1376_v43  ;;  %v3967_v29 = vld [vmem:[#allocation6 + $0xd8] sm:$0xff]  ;;  %v3966_v12 = vld [vmem:[#allocation6 + $0xd0] sm:$0xff]  ;;  %v3528_v0 = vadd.f32 %v3527_v47, %v3507_v31  ;;  %v3932_v46 = vadd.f32 %v3924_v48, %v3918_v59  ;;  %v3048_v15 = vadd.f32 %v4574_v13, %v3028_v14  ;;  %v3627_v5 = vpop.f32.mrf.mxu3  ;;  %v3925_v13 = vperm.slane %v4628_v40, 1  ;;  %v3973_v48 = vld [vmem:[#allocation6 + $0x108] sm:$0xff] }
 0x3f3   :  { %3886 = vmatmul.f32.vlgmr.msrb.gmra.mxu0 %v4155_v16  ;;  %4013 = vmatpush.msra.mxu3 %v3950_v54  ;;  %v3947_v9 = vld [vmem:[#allocation6 + $0x38] sm:$0xff]  ;;  %v3946_v36 = vld [vmem:[#allocation6 + $0x30] sm:$0xff]  ;;  %v3940_v54 = vld [vmem:[#allocation6] sm:$0xff]  ;;  %v1928_v35 = vadd.f32 %v4411_v26, %v1908_v45 }
 0x3f4   :  { %4030 = vmatpush.msra.mxu1 %v3969_v10  ;;  %v3963_v18 = vld [vmem:[#allocation6 + $0xb8] sm:$0xff]  ;;  %v3962_v30 = vld [vmem:[#allocation6 + $0xb0] sm:$0xff]  ;;  %v3548_v43 = vadd.f32 %v3547_v1, %v3528_v0  ;;  %v3567_v10 = vpop.f32.mrf.mxu1  ;;  %v3936_v62 = vmax.f32 %v3932_v46, 0.0  ;;  %v3068_v61 = vadd.f32 %v4568_v49, %v3048_v15  ;;  %v4000_v0 = vld [vmem:[#allocation6 + $0x1e0] sm:$0xff]  ;;  %v3926_v15 = vperm.slane %v4628_v40, 2 }
 0x3f5   :  { %4014 = vmatpush.msra.mxu3 %v3949_v42  ;;  %v3943_v28 = vld [vmem:[#allocation6 + $0x18] sm:$0xff]  ;;  %v3942_v55 = vld [vmem:[#allocation6 + $0x10] sm:$0xff]  ;;  %v1948_v57 = vadd.f32 %v4408_v22, %v1928_v35 }
 0x3f6   :  { %4031 = vmatpush.msra.mxu1 %v3968_v17  ;;  %v3959_v50 = vld [vmem:[#allocation6 + $0x98] sm:$0xff]  ;;  %v3568_v23 = vadd.f32 %v3567_v10, %v3548_v43  ;;  %v3958_v42 = vld [vmem:[#allocation6 + $0x90] sm:$0xff] }
 0x3f7   :  { %4015 = vmatpush.msra.mxu3 %v3948_v56  ;;  %v3987_v6 = vld [vmem:[#allocation6 + $0x178] sm:$0xff]  ;;  %v3982_v49 = vld [vmem:[#allocation6 + $0x150] sm:$0xff] }
 0x3f8   :  { %4032 = vmatpush.msra.mxu1 %v3967_v29  ;;  %v3587_v39 = vpop.f32.mrf.mxu0  ;;  %v3956_v29 = vld [vmem:[#allocation6 + $0x80] sm:$0xff]  ;;  %4048 = vmatpush.msra.mxu2 %v3987_v6  ;;  %v3983_v22 = vld [vmem:[#allocation6 + $0x158] sm:$0xff]  ;;  %v3978_v52 = vld [vmem:[#allocation6 + $0x130] sm:$0xff] }
 0x3f9   :  { %4016 = vmatpush.msra.mxu3 %v3947_v9  ;;  %v3588_v16 = vadd.f32 %v3587_v39, %v3568_v23  ;;  %v3607_v17 = vpop.f32.mrf.mxu2  ;;  %v3974_v59 = vld [vmem:[#allocation6 + $0x110] sm:$0xff]  ;;  %v4003_v31 = vld [vmem:[#allocation6 + $0x1f8] sm:$0xff]  ;;  %v3996_v23 = vld [vmem:[#allocation6 + $0x1c0] sm:$0xff] }
 0x3fa   :  { %4033 = vmatpush.msra.mxu1 %v3966_v12  ;;  %v3911_v12 = vmax.f32 %v1948_v57, %v4468_v20  ;;  %v3980_v20 = vld [vmem:[#allocation6 + $0x140] sm:$0xff]  ;;  %v4002_v47 = vld [vmem:[#allocation6 + $0x1f0] sm:$0xff]  ;;  %4068 = vmatpush.msra.mxu0 %v4003_v31 }
 0x3fb   :  { %4017 = vmatpush.msra.mxu3 %v3946_v36  ;;  %v3608_v56 = vadd.f32 %v3607_v17, %v3588_v16  ;;  %v3994_v16 = vld [vmem:[#allocation6 + $0x1b0] sm:$0xff] }
 0x3fc   :  { %4034 = vmatpush.msra.mxu1 %v3965_v44  ;;  %v3986_v44 = vld [vmem:[#allocation6 + $0x170] sm:$0xff]  ;;  %4069 = vmatpush.msra.mxu0 %v4002_v47 }
 0x3fd   :  { %4018 = vmatpush.msra.mxu3 %v3945_v37  ;;  %v3628_v9 = vadd.f32 %v3627_v5, %v3608_v56  ;;  %4049 = vmatpush.msra.mxu2 %v3986_v44  ;;  %v3984_v37 = vld [vmem:[#allocation6 + $0x160] sm:$0xff]  ;;  %v3991_v5 = vld [vmem:[#allocation6 + $0x198] sm:$0xff]  ;;  %v3990_v57 = vld [vmem:[#allocation6 + $0x190] sm:$0xff] }
 0x3fe   :  { %4035 = vmatpush.msra.mxu1 %v3964_v7  ;;  %v3979_v7 = vld [vmem:[#allocation6 + $0x138] sm:$0xff]  ;;  %4070 = vmatpush.msra.mxu0 %v4001_v41  ;;  %v3992_v56 = vld [vmem:[#allocation6 + $0x1a0] sm:$0xff] }
 0x3ff   :  { %4019 = vmatpush.msra.mxu3 %v3944_v21  ;;  %v3915_v53 = vmax.f32 %v3068_v61, %v3628_v9  ;;  %4050 = vmatpush.msra.mxu2 %v3985_v34  ;;  %v3977_v21 = vld [vmem:[#allocation6 + $0x128] sm:$0xff]  ;;  %v3988_v61 = vld [vmem:[#allocation6 + $0x180] sm:$0xff] }
 0x400   :  { %4036 = vmatpush.msra.mxu1 %v3963_v18  ;;  %v3975_v18 = vld [vmem:[#allocation6 + $0x118] sm:$0xff]  ;;  %4071 = vmatpush.msra.mxu0 %v4000_v0 }
 0x401   :  { %4020 = vmatpush.msra.mxu3 %v3943_v28  ;;  %v3919_v36 = vmax.f32 %v3911_v12, %v3915_v53  ;;  %4051 = vmatpush.msra.mxu2 %v3984_v37  ;;  %v3972_v28 = vld [vmem:[#allocation6 + $0x100] sm:$0xff] }
 0x402   :  { %4037 = vmatpush.msra.mxu1 %v3962_v30  ;;  %v3647_v30 = vpop.f32.mrf.mxu1 }
 0x403   :  { %4021 = vmatpush.msra.mxu3 %v3942_v55  ;;  %v3933_v26 = vadd.f32 %v3925_v13, %v3919_v36  ;;  %4052 = vmatpush.msra.mxu2 %v3983_v22  ;;  %v3927_v22 = vperm.slane %v4628_v40, 3 }
 0x404   :  { %4038 = vmatpush.msra.mxu1 %v3961_v33 }
 0x405   :  { %4022 = vmatpush.msra.mxu3 %v3941_v25  ;;  %v3937_v63 = vmax.f32 %v3933_v26, 0.0  ;;  %4053 = vmatpush.msra.mxu2 %v3982_v49  ;;  %v3999_v25 = vld [vmem:[#allocation6 + $0x1d8] sm:$0xff]  ;;  %v4663_v49 = vmax.f32 %v4434_v11, %v4516_v8 }
 0x406   :  { %4039 = vmatpush.msra.mxu1 %v3960_v32  ;;  %4072 = vmatpush.msra.mxu0 %v3999_v25  ;;  %v3998_v32 = vld [vmem:[#allocation6 + $0x1d0] sm:$0xff] }
 0x407   :  { %4023 = vmatpush.msra.mxu3 %v3940_v54  ;;  %4054 = vmatpush.msra.mxu2 %v3981_v2  ;;  %v3997_v54 = vld [vmem:[#allocation6 + $0x1c8] sm:$0xff] }
 0x408   :  { %4024 = vmatmul.f32.vlgmr.msra.gmra.mxu3 %v3936_v62  ;;  %4040 = vmatpush.msra.mxu1 %v3959_v50 }
 0x409   :  { %4055 = vmatpush.msra.mxu2 %v3980_v20  ;;  %4073 = vmatpush.msra.mxu0 %v3998_v32 }
 0x40a   :  { %4041 = vmatpush.msra.mxu1 %v3958_v42  ;;  %v3995_v42 = vld [vmem:[#allocation6 + $0x1b8] sm:$0xff] }
 0x40b   :  { %4056 = vmatpush.msra.mxu2 %v3979_v7  ;;  %4074 = vmatpush.msra.mxu0 %v3997_v54 }
 0x40c   :  { %4042 = vmatpush.msra.mxu1 %v3957_v4  ;;  %v3993_v4 = vld [vmem:[#allocation6 + $0x1a8] sm:$0xff] }
 0x40d   :  { %4057 = vmatpush.msra.mxu2 %v3978_v52  ;;  %v3667_v55 = vpop.f32.mrf.mxu3  ;;  %4075 = vmatpush.msra.mxu0 %v3996_v23  ;;  %v4120_v52 = vld [vmem:[#allocation7] ss:$0 sm:$0xff] }
 0x40e   :  { %4043 = vmatpush.msra.mxu1 %v3956_v29  ;;  %v3668_v51 = vadd.f32 %v3667_v55, %v3647_v30 }
 0x40f   :  { %4044 = vmatmul.f32.vlgmr.msra.gmra.mxu1 %v3937_v63  ;;  %4058 = vmatpush.msra.mxu2 %v3977_v21 }
 0x410   :  { %4076 = vmatpush.msra.mxu0 %v3995_v42 }
 0x411   :  { %4059 = vmatpush.msra.mxu2 %v3976_v24 }
 0x412   :  { %v3707_v46 = vpop.f32.mrf.mxu2  ;;  %4077 = vmatpush.msra.mxu0 %v3994_v16 }
 0x413   :  { %4060 = vmatpush.msra.mxu2 %v3975_v18 }
 0x414   :  { %v3687_v1 = vpop.f32.mrf.mxu0  ;;  %4078 = vmatpush.msra.mxu0 %v3993_v4 }
 0x415   :  { %4061 = vmatpush.msra.mxu2 %v3974_v59  ;;  %v3688_v33 = vadd.f32 %v3687_v1, %v3668_v51 }
 0x416   :  { %4079 = vmatpush.msra.mxu0 %v3992_v56 }
 0x417   :  { %4062 = vmatpush.msra.mxu2 %v3973_v48  ;;  %v3708_v27 = vadd.f32 %v3707_v46, %v3688_v33 }
 0x418   :  { %4080 = vmatpush.msra.mxu0 %v3991_v5 }
 0x419   :  { %4063 = vmatpush.msra.mxu2 %v3972_v28 }
 0x41a   :  { %4081 = vmatpush.msra.mxu0 %v3990_v57 }
 0x42c   :  { %v3727_v43 = vpop.f32.mrf.mxu1 }
 0x42d   :  { %v3728_v14 = vadd.f32 %v3727_v43, %v3708_v27 }
 0x434   :  { %v3767_v50 = vpop.f32.mrf.mxu0 }
 0x435   :  { %v3747_v10 = vpop.f32.mrf.mxu3 }
 0x436   :  { %v3748_v62 = vadd.f32 %v3747_v10, %v3728_v14 }
 0x438   :  { %v3768_v45 = vadd.f32 %v3767_v50, %v3748_v62 }
 0x43a   :  { %v3916_v39 = vmax.f32 %v4590_v38, %v3768_v45  ;;  %v3989_v38 = vld [vmem:[#allocation6 + $0x188] sm:$0xff] }
 0x43b   :  { %4082 = vmatpush.msra.mxu0 %v3989_v38 }
 0x43c   :  { %v3920_v17 = vmax.f32 %v3912_v58, %v3916_v39 }
 0x43d   :  { %4083 = vmatpush.msra.mxu0 %v3988_v61 }
 0x43e   :  { %v3934_v35 = vadd.f32 %v3926_v15, %v3920_v17 }
 0x440   :  { %v3938_v29 = vmax.f32 %v3934_v35, 0.0 }
 0x442   :  { %4064 = vmatmul.f32.vlgmr.msra.gmra.mxu2 %v3938_v29 }
 0x456   :  { %v3807_v12 = vpop.f32.mrf.mxu0 }
 0x461   :  { %v3787_v9 = vpop.f32.mrf.mxu2 }
 0x462   :  { %v3808_v53 = vadd.f32 %v3807_v12, %v3787_v9 }
 0x465   :  { %v3827_v3 = vpop.f32.mrf.mxu1 }
 0x466   :  { %v3828_v19 = vadd.f32 %v3827_v3, %v3808_v53 }
 0x467   :  { %v3847_v58 = vpop.f32.mrf.mxu3 }
 0x468   :  { %v3848_v13 = vadd.f32 %v3847_v58, %v3828_v19 }
 0x46e   :  { %v3907_v26 = vpop.f32.mrf.mxu1 }
 0x46f   :  { %v3867_v36 = vpop.f32.mrf.mxu2 }
 0x470   :  { %v3868_v6 = vadd.f32 %v3867_v36, %v3848_v13  ;;  %v3887_v44 = vpop.f32.mrf.mxu0 }
 0x472   :  { %v3888_v34 = vadd.f32 %v3887_v44, %v3868_v6 }
 0x474   :  { %v3908_v63 = vadd.f32 %v3907_v26, %v3888_v34 }
 0x476   :  { %v3917_v37 = vmax.f32 %v4600_v60, %v3908_v63 }
 0x478   :  { %v3921_v2 = vmax.f32 %v4663_v49, %v3917_v37 }
 0x47a   :  { %v3935_v20 = vadd.f32 %v3927_v22, %v3921_v2 }
 0x47c   :  { %v3939_v7 = vmax.f32 %v3935_v20, 0.0 }
 0x47e   :  { %4084 = vmatmul.f32.vlgmr.msra.gmra.mxu0 %v3939_v7 }
 0x48b   :  { %v4025_v21 = vpop.f32.mrf.mxu3 }
 0x48c   :  { %v4045_v24 = vpop.f32.mrf.mxu1  ;;  %v4026_v18 = vadd.f32 %v4120_v52, %v4025_v21 }
 0x48e   :  { %v4046_v48 = vadd.f32 %v4045_v24, %v4026_v18 }
 0x4c5   :  { %v4065_v59 = vpop.f32.mrf.mxu2 }
 0x4c6   :  { %v4066_v28 = vadd.f32 %v4065_v59, %v4046_v48 }
 0x4fb   :  { %v4085_v31 = vpop.f32.mrf.mxu0 }
 0x4fc   :  { %v4086_v47 = vadd.f32 %v4085_v31, %v4066_v28 }
 0x4fe   :  { %v4088_v41 = vmax.f32 %v4086_v47, 0.0 }
 0x500   :  { %4089 = vst [vmem:[%s4662_s5] sm:$0x3] %v4088_v41 }
 0x501   :  { %4094 = vsyncpa [#allocation3], 1 }
 0x502   :  { %4095 = vsyncpa [#allocation5], 1 }
 0x503   :  { %4096 = vsyncpa [#allocation8], 1 }

</bundles_post_ra>
